<compile_context>
chip_gen: v6e
topology: v6e:2x2x1
jax: 0.10.0
libtpu: 0.0.40
codegen_flags: <defaults>
</compile_context>

<pallas_src>
import numpy as np
import jax
import jax.numpy as jnp
from jax.experimental import pallas as pl
from jax.experimental.pallas import tpu as pltpu

_VMEM_LIMIT = 64 * 1024 * 1024


# ----------------------------- Pallas kernels -----------------------------

def _fused_updown_kernel(x_ref, wd_ref, wu_ref, y_ref, ss_ref):
    """LeakyReLU -> Conv2d(4,2,1) -> ReLU -> ConvTranspose2d(4,2,1) + BN partials.

    One batch element per grid step; the whole (H, W) image lives in VMEM, so
    padding and the stride-2 parity gather happen on VMEM values and the hidden
    activation never touches HBM.
    """
    _, hh, ww, cin = x_ref.shape
    ho, wo = hh // 2, ww // 2
    inner = wd_ref.shape[-1]
    outer = ss_ref.shape[-1]

    # ---- LeakyReLU(0.2) and zero padding (conv padding = 1) ----
    x = x_ref[0]
    x = jnp.where(x >= 0, x, 0.2 * x).astype(jnp.bfloat16)
    zc = jnp.zeros((hh, 1, cin), jnp.bfloat16)
    zr = jnp.zeros((1, ww + 2, cin), jnp.bfloat16)
    xp = jnp.concatenate([zr, jnp.concatenate([zc, x, zc], axis=1), zr], axis=0)

    # ---- stride-2 parity planes of the padded input, packed on channels ----
    # pc[i, j, (p, q, c)] = xp[2i + p, 2j + q, c]
    xph = xp.reshape(ho + 1, 2, ww + 2, cin)
    planes = []
    for p in (0, 1):
        t = xph[:, p].reshape(ho + 1, wo + 1, 2, cin)
        for q in (0, 1):
            planes.append(t[:, :, q:q + 1, :].reshape(ho + 1, wo + 1, cin))
    pc = jnp.concatenate(planes, axis=-1)                        # (Ho+1, Wo+1, 4*Cin)

    # ---- down conv: single K = 16*Cin matmul over the 4 (a, b) tap shifts ----
    f = jnp.concatenate(
        [pc[a:a + ho, b:b + wo, :] for a in (0, 1) for b in (0, 1)], axis=-1)
    f = f.reshape(ho * wo, 16 * cin)
    h = jnp.dot(f, wd_ref[...], preferred_element_type=jnp.float32)   # (Ho*Wo, inner)

    # ---- ReLU + zero padding for the transposed conv ----
    hb = jnp.maximum(h, 0.0).astype(jnp.bfloat16).reshape(ho, wo, inner)
    zch = jnp.zeros((ho, 1, inner), jnp.bfloat16)
    zrh = jnp.zeros((1, wo + 2, inner), jnp.bfloat16)
    hp = jnp.concatenate([zrh, jnp.concatenate([zch, hb, zch], axis=1), zrh], axis=0)

    # ---- transposed conv: all 4 output phases from ONE K = 9*inner matmul
    #      against a zero-structured weight whose columns are ordered (r, s, c) ----
    g = jnp.concatenate(
        [hp[i:i + ho, j:j + wo, :] for i in (0, 1, 2) for j in (0, 1, 2)], axis=-1)
    g = g.reshape(ho * wo, 9 * inner)
    acc = jnp.dot(g, wu_ref[...], preferred_element_type=jnp.float32)  # (Ho*Wo, 4*outer)

    # ---- BatchNorm partial sums for this image (phases partition the pixels) ----
    ssum = jnp.sum(acc, axis=0, keepdims=True)
    ssq = jnp.sum(acc * acc, axis=0, keepdims=True)
    s1 = (ssum[:, 0 * outer:1 * outer] + ssum[:, 1 * outer:2 * outer]
          + ssum[:, 2 * outer:3 * outer] + ssum[:, 3 * outer:4 * outer])
    s2 = (ssq[:, 0 * outer:1 * outer] + ssq[:, 1 * outer:2 * outer]
          + ssq[:, 2 * outer:3 * outer] + ssq[:, 3 * outer:4 * outer])
    ss_ref[0, :, :] = jnp.concatenate([s1, s2], axis=0)

    # ---- direct per-row-parity stores; y layout (Ho, 2, Wo, 2*outer) reshapes
    #      to NHWC (H, W, outer) for free in the wrapper ----
    for r in (0, 1):
        a_r = acc[:, (2 * r) * outer:(2 * r + 2) * outer]        # columns (s, c)
        y_ref[0, :, r, :, :] = a_r.reshape(ho, wo, 2 * outer).astype(y_ref.dtype)


def _bn_concat_kernel(x_ref, y_ref, sb_ref, o_ref):
    """BatchNorm affine (precomputed scale/shift) fused with the U-Net skip concat."""
    outer = y_ref.shape[-1]
    sb = sb_ref[...]                                             # (2, outer) f32
    scale = sb[0:1, :].reshape(1, 1, outer)
    shift = sb[1:2, :].reshape(1, 1, outer)
    yn = y_ref[0].astype(jnp.float32) * scale + shift
    o_ref[0, :, :, :] = jnp.concatenate([x_ref[0], yn], axis=-1)


# ----------------------------- pallas_call wrappers -----------------------------

def _fused_updown(x_nhwc, wd, wu, outer):
    n, hh, ww, cin = x_nhwc.shape
    ho, wo = hh // 2, ww // 2
    inner = wd.shape[-1]
    return pl.pallas_call(
        _fused_updown_kernel,
        out_shape=(
            jax.ShapeDtypeStruct((n, ho, 2, wo, 2 * outer), jnp.bfloat16),
            jax.ShapeDtypeStruct((n, 2, outer), jnp.float32),
        ),
        grid_spec=pltpu.PrefetchScalarGridSpec(
            num_scalar_prefetch=0,
            grid=(n,),
            in_specs=[
                pl.BlockSpec((1, hh, ww, cin), lambda i: (i, 0, 0, 0)),
                pl.BlockSpec((16 * cin, inner), lambda i: (0, 0)),
                pl.BlockSpec((9 * inner, 4 * outer), lambda i: (0, 0)),
            ],
            out_specs=[
                pl.BlockSpec((1, ho, 2, wo, 2 * outer), lambda i: (i, 0, 0, 0, 0)),
                pl.BlockSpec((1, 2, outer), lambda i: (i, 0, 0)),
            ],
        ),
        compiler_params=pltpu.CompilerParams(
            dimension_semantics=("parallel",),
            vmem_limit_bytes=_VMEM_LIMIT),
    )(x_nhwc, wd, wu)


def _bn_concat(x_nhwc, y_nhwc, sb):
    n, hh, ww, cin = x_nhwc.shape
    outer = y_nhwc.shape[-1]
    return pl.pallas_call(
        _bn_concat_kernel,
        out_shape=jax.ShapeDtypeStruct((n, hh, ww, cin + outer), jnp.float32),
        grid_spec=pltpu.PrefetchScalarGridSpec(
            num_scalar_prefetch=0,
            grid=(n,),
            in_specs=[
                pl.BlockSpec((1, hh, ww, cin), lambda i: (i, 0, 0, 0)),
                pl.BlockSpec((1, hh, ww, outer), lambda i: (i, 0, 0, 0)),
                pl.BlockSpec((2, outer), lambda i: (0, 0)),
            ],
            out_specs=pl.BlockSpec((1, hh, ww, cin + outer), lambda i: (i, 0, 0, 0)),
        ),
        compiler_params=pltpu.CompilerParams(
            dimension_semantics=("parallel",),
            vmem_limit_bytes=_VMEM_LIMIT),
    )(x_nhwc, y_nhwc, sb)


# ----------------------------- weight packing (tiny, XLA side) -----------------------------

def _pack_down_weight(w_down):
    # Conv2d weight (inner, cin, 4, 4) -> (16*cin, inner) with rows ordered
    # (a, b, p, q, c) where kh = 2a + p, kw = 2b + q (matches the in-kernel
    # parity-packed im2col column order).
    inner, cin = w_down.shape[0], w_down.shape[1]
    wd = jnp.transpose(w_down, (2, 3, 1, 0))          # (kh, kw, cin, inner)
    wd = wd.reshape(2, 2, 2, 2, cin, inner)           # (a, p, b, q, cin, inner)
    wd = jnp.transpose(wd, (0, 2, 1, 3, 4, 5))        # (a, b, p, q, cin, inner)
    return wd.reshape(16 * cin, inner).astype(jnp.bfloat16)


def _pack_up_weight(w_up):
    # ConvTranspose2d weight (inner, outer, 4, 4) -> zero-structured (9*inner,
    # 4*outer).  Row block (i, j) = 3i+j corresponds to the padded-h window
    # shift; column block (r, s) = 2r+s is the output phase.  Phase (r, s) uses
    # taps (d, e) at window shift (i, j) = (r+d, s+e) with flipped kernel index
    # (kh, kw) = (3-r-2d, 3-s-2e); all other entries are zero.
    inner, outer = w_up.shape[0], w_up.shape[1]
    wt = jnp.transpose(w_up, (2, 3, 0, 1))            # (kh, kw, inner, outer)
    wu = jnp.zeros((9, inner, 4, outer), w_up.dtype)
    for r in (0, 1):
        for s in (0, 1):
            for d in (0, 1):
                for e in (0, 1):
                    blk = 3 * (r + d) + (s + e)
                    wu = wu.at[blk, :, 2 * r + s, :].set(wt[3 - r - 2 * d, 3 - s - 2 * e])
    return wu.reshape(9 * inner, 4 * outer).astype(jnp.bfloat16)


# ----------------------------- Forward (glue + kernels) -----------------------------

def unet_innermost_forward(x_nchw, params):
    w_down = params["w_down"]   # (inner_nc, input_nc, 4, 4)  -- Conv2d weight
    w_up = params["w_up"]       # (inner_nc, outer_nc, 4, 4)  -- ConvTranspose2d weight
    gamma = params["gamma"]     # (outer_nc,)
    beta = params["beta"]       # (outer_nc,)

    n, cin, hh, ww = x_nchw.shape
    outer = w_up.shape[1]

    # Single XLA-side prep copy: NCHW -> NHWC (shared by both Pallas passes).
    # Padding / parity gather / bf16 cast all happen inside pass 1's kernel.
    x_nhwc = jnp.transpose(x_nchw, (0, 2, 3, 1)).astype(jnp.float32)

    wd = _pack_down_weight(w_down)
    wu = _pack_up_weight(w_up)

    # Pass 1: fused LeakyReLU + down conv + ReLU + transposed conv + BN partials.
    y_pack, ss = _fused_updown(x_nhwc, wd, wu, outer)
    # y_pack layout (N, Ho, 2, Wo, 2*outer) has memory order (n, oh, r, ow, (s, c)),
    # so this reshape to spatially-interleaved NHWC (N, H, W, outer) is free.
    y = y_pack.reshape(n, hh, ww, outer)

    # BatchNorm2d training-mode statistics from the per-image f32 partials.
    m_total = n * hh * ww
    s1 = jnp.sum(ss[:, 0, :], axis=0)
    s2 = jnp.sum(ss[:, 1, :], axis=0)
    mean = s1 / m_total
    var = jnp.maximum(s2 / m_total - mean * mean, 0.0)           # biased variance
    scale = gamma * jax.lax.rsqrt(var + 1e-5)
    shift = beta - mean * scale
    sb = jnp.stack([scale, shift], axis=0).astype(jnp.float32)   # (2, outer)

    # Pass 2: BN affine + skip concat fused (NHWC), then one small NCHW transpose.
    out_nhwc = _bn_concat(x_nhwc, y, sb)
    return jnp.transpose(out_nhwc, (0, 3, 1, 2))                 # -> NCHW


# ----------------------------- numpy reference -----------------------------

def _ref_forward(x, w_down, w_up, gamma, beta):
    x = np.asarray(x, np.float64)
    w1 = np.asarray(w_down, np.float64)
    w2 = np.asarray(w_up, np.float64)
    g = np.asarray(gamma, np.float64)
    b = np.asarray(beta, np.float64)
    N, Cin, H, W = x.shape
    inner = w1.shape[0]
    outer = w2.shape[1]
    Ho, Wo = H // 2, W // 2

    a = np.where(x >= 0, x, 0.2 * x)                       # LeakyReLU(0.2)
    ap = np.pad(a, ((0, 0), (0, 0), (1, 1), (1, 1)))
    h = np.zeros((N, inner, Ho, Wo))
    for oh in range(Ho):
        for ow in range(Wo):
            patch = ap[:, :, 2 * oh:2 * oh + 4, 2 * ow:2 * ow + 4]
            h[:, :, oh, ow] = np.einsum('ncij,dcij->nd', patch, w1)
    r = np.maximum(h, 0.0)                                 # ReLU
    u = np.zeros((N, outer, H, W))
    for ih in range(Ho):
        for iw in range(Wo):
            for kh in range(4):
                for kw in range(4):
                    oh = 2 * ih - 1 + kh
                    ow = 2 * iw - 1 + kw
                    if 0 <= oh < H and 0 <= ow < W:
                        u[:, :, oh, ow] += np.einsum(
                            'nc,cd->nd', r[:, :, ih, iw], w2[:, :, kh, kw])
    mean = u.mean(axis=(0, 2, 3), keepdims=True)           # BatchNorm2d (train mode)
    var = u.var(axis=(0, 2, 3), keepdims=True)
    un = (u - mean) / np.sqrt(var + 1e-5)
    un = un * g.reshape(1, -1, 1, 1) + b.reshape(1, -1, 1, 1)
    return np.concatenate([x, un], axis=1)


# ----------------------------- main -----------------------------

if __name__ == "__main__":
    N, outer_nc, inner_nc, H, W = 2, 4, 8, 16, 16
    input_nc = outer_nc    # input_nc=None in the module -> outer_nc

    key = jax.random.PRNGKey(0)
    k1, k2, k3, k4, k5 = jax.random.split(key, 5)
    x = jax.random.normal(k1, (N, input_nc, H, W), jnp.float32)
    # BatchNorm norm layer -> use_bias=False for both convs (matches module logic).
    w_down = 0.05 * jax.random.normal(k2, (inner_nc, input_nc, 4, 4), jnp.float32)
    w_up = 0.05 * jax.random.normal(k3, (inner_nc, outer_nc, 4, 4), jnp.float32)
    gamma = 1.0 + 0.1 * jax.random.normal(k4, (outer_nc,), jnp.float32)
    beta = 0.1 * jax.random.normal(k5, (outer_nc,), jnp.float32)
    params = dict(w_down=w_down, w_up=w_up, gamma=gamma, beta=beta)

    out = jax.jit(unet_innermost_forward)(x, params)
    out = jax.block_until_ready(out)

    ref = _ref_forward(np.asarray(x), np.asarray(w_down), np.asarray(w_up),
                       np.asarray(gamma), np.asarray(beta))
    # bf16 MXU inputs / bf16 y intermediate (f32 accumulation & stats) -> relaxed tol.
    np.testing.assert_allclose(np.asarray(out), ref, rtol=2e-2, atol=3e-2)
    print("KERNEL_OK")
</pallas_src>

<mosaic_0001>
module attributes {stable_mosaic.version = 11 : i64} {
  func.func @_bn_concat_kernel(%arg0: i32, %arg1: memref<1x16x16x4xf32, #tpu.memory_space<vmem>>, %arg2: memref<1x16x16x4xbf16, #tpu.memory_space<vmem>>, %arg3: memref<2x4xf32, #tpu.memory_space<vmem>>, %arg4: memref<1x16x16x8xf32, #tpu.memory_space<vmem>>) attributes {dimension_semantics = [#tpu.dimension_semantics<parallel>], iteration_bounds = array<i64: 2>, scalar_prefetch = 0 : i64, scratch_operands = 0 : i64, tpu.core_type = #tpu.core_type<tc>, window_params = [{transform_indices = @transform_0, window_bounds = array<i64: 1, 16, 16, 4>}, {transform_indices = @transform_1, window_bounds = array<i64: 1, 16, 16, 4>}, {pipeline_mode = #tpu.pipeline_mode<synchronous>, transform_indices = @transform_2, window_bounds = array<i64: 2, 4>}, {transform_indices = @transform_3, window_bounds = array<i64: 1, 16, 16, 8>}]} {
    %c0 = arith.constant 0 : index
    %c0_0 = arith.constant 0 : index
    %0 = vector.load %arg3[%c0, %c0_0] : memref<2x4xf32, #tpu.memory_space<vmem>>, vector<2x4xf32>
    %1 = vector.extract_strided_slice %0 {offsets = [0, 0], sizes = [1, 4], strides = [1, 1]} : vector<2x4xf32> to vector<1x4xf32>
    %2 = vector.shape_cast %1 : vector<1x4xf32> to vector<1x1x4xf32>
    %3 = vector.extract_strided_slice %0 {offsets = [1, 0], sizes = [1, 4], strides = [1, 1]} : vector<2x4xf32> to vector<1x4xf32>
    %4 = vector.shape_cast %3 : vector<1x4xf32> to vector<1x1x4xf32>
    %c0_1 = arith.constant 0 : index
    %c0_2 = arith.constant 0 : index
    %c0_3 = arith.constant 0 : index
    %c0_4 = arith.constant 0 : index
    %5 = vector.load %arg2[%c0_1, %c0_2, %c0_3, %c0_4] : memref<1x16x16x4xbf16, #tpu.memory_space<vmem>>, vector<1x16x16x4xbf16>
    %6 = vector.shape_cast %5 : vector<1x16x16x4xbf16> to vector<16x16x4xbf16>
    %7 = arith.extf %6 : vector<16x16x4xbf16> to vector<16x16x4xf32>
    %8 = vector.broadcast %2 : vector<1x1x4xf32> to vector<16x16x4xf32>
    %9 = arith.mulf %7, %8 : vector<16x16x4xf32>
    %10 = vector.broadcast %4 : vector<1x1x4xf32> to vector<16x16x4xf32>
    %11 = arith.addf %9, %10 : vector<16x16x4xf32>
    %c0_5 = arith.constant 0 : index
    %c0_6 = arith.constant 0 : index
    %c0_7 = arith.constant 0 : index
    %c0_8 = arith.constant 0 : index
    %12 = vector.load %arg1[%c0_5, %c0_6, %c0_7, %c0_8] : memref<1x16x16x4xf32, #tpu.memory_space<vmem>>, vector<1x16x16x4xf32>
    %13 = vector.shape_cast %12 : vector<1x16x16x4xf32> to vector<16x16x4xf32>
    %14 = tpu.concatenate %13, %11 in 2 : vector<16x16x4xf32>, vector<16x16x4xf32> -> vector<16x16x8xf32>
    %c0_9 = arith.constant 0 : index
    %c0_10 = arith.constant 0 : index
    %c0_11 = arith.constant 0 : index
    %c0_12 = arith.constant 0 : index
    %15 = vector.load %arg4[%c0_9, %c0_10, %c0_11, %c0_12] : memref<1x16x16x8xf32, #tpu.memory_space<vmem>>, vector<1x16x16x8xf32>
    %16 = vector.shape_cast %15 : vector<1x16x16x8xf32> to vector<16x16x8xf32>
    %17 = vector.shape_cast %14 : vector<16x16x8xf32> to vector<1x16x16x8xf32>
    tpu.vector_store %arg4[%c0_9, %c0_10, %c0_11, %c0_12], %17 {strides = array<i32>} : memref<1x16x16x8xf32, #tpu.memory_space<vmem>>, vector<1x16x16x8xf32>,
    return
  }
  func.func @transform_0(%arg0: i32) -> (i32, i32, i32, i32) {
    %c0_i32 = arith.constant 0 : i32
    %c0_i32_0 = arith.constant 0 : i32
    %c0_i32_1 = arith.constant 0 : i32
    %c0_i32_2 = arith.constant 0 : i32
    return %arg0, %c0_i32, %c0_i32_0, %c0_i32_1 : i32, i32, i32, i32
  }
  func.func @transform_1(%arg0: i32) -> (i32, i32, i32, i32) {
    %c0_i32 = arith.constant 0 : i32
    %c0_i32_0 = arith.constant 0 : i32
    %c0_i32_1 = arith.constant 0 : i32
    %c0_i32_2 = arith.constant 0 : i32
    return %arg0, %c0_i32, %c0_i32_0, %c0_i32_1 : i32, i32, i32, i32
  }
  func.func @transform_2(%arg0: i32) -> (i32, i32) {
    %c0_i32 = arith.constant 0 : i32
    %c0_i32_0 = arith.constant 0 : i32
    %c0_i32_1 = arith.constant 0 : i32
    return %c0_i32, %c0_i32_0 : i32, i32
  }
  func.func @transform_3(%arg0: i32) -> (i32, i32, i32, i32) {
    %c0_i32 = arith.constant 0 : i32
    %c0_i32_0 = arith.constant 0 : i32
    %c0_i32_1 = arith.constant 0 : i32
    %c0_i32_2 = arith.constant 0 : i32
    return %arg0, %c0_i32, %c0_i32_0, %c0_i32_1 : i32, i32, i32, i32
  }
}

module attributes {stable_mosaic.version = 11 : i64} {
  func.func @_fused_updown_kernel(%arg0: i32, %arg1: memref<1x16x16x4xf32, #tpu.memory_space<vmem>>, %arg2: memref<64x8xbf16, #tpu.memory_space<vmem>>, %arg3: memref<72x16xbf16, #tpu.memory_space<vmem>>, %arg4: memref<1x8x2x8x8xbf16, #tpu.memory_space<vmem>>, %arg5: memref<1x2x4xf32, #tpu.memory_space<vmem>>) attributes {dimension_semantics = [#tpu.dimension_semantics<parallel>], iteration_bounds = array<i64: 2>, scalar_prefetch = 0 : i64, scratch_operands = 0 : i64, tpu.core_type = #tpu.core_type<tc>, window_params = [{transform_indices = @transform_0, window_bounds = array<i64: 1, 16, 16, 4>}, {pipeline_mode = #tpu.pipeline_mode<synchronous>, transform_indices = @transform_1, window_bounds = array<i64: 64, 8>}, {pipeline_mode = #tpu.pipeline_mode<synchronous>, transform_indices = @transform_2, window_bounds = array<i64: 72, 16>}, {transform_indices = @transform_3, window_bounds = array<i64: 1, 8, 2, 8, 8>}, {transform_indices = @transform_4, window_bounds = array<i64: 1, 2, 4>}]} {
    %c0 = arith.constant 0 : index
    %c0_0 = arith.constant 0 : index
    %c0_1 = arith.constant 0 : index
    %c0_2 = arith.constant 0 : index
    %0 = vector.load %arg1[%c0, %c0_0, %c0_1, %c0_2] : memref<1x16x16x4xf32, #tpu.memory_space<vmem>>, vector<1x16x16x4xf32>
    %1 = vector.shape_cast %0 : vector<1x16x16x4xf32> to vector<16x16x4xf32>
    %cst = arith.constant 0.000000e+00 : f32
    %2 = vector.broadcast %cst : f32 to vector<16x16x4xf32>
    %3 = arith.cmpf oge, %1, %2 : vector<16x16x4xf32>
    %cst_3 = arith.constant 2.000000e-01 : f32
    %4 = vector.broadcast %cst_3 : f32 to vector<16x16x4xf32>
    %5 = arith.mulf %4, %1 : vector<16x16x4xf32>
    %6 = arith.select %3, %1, %5 : vector<16x16x4xi1>, vector<16x16x4xf32>
    %7 = arith.truncf %6 : vector<16x16x4xf32> to vector<16x16x4xbf16>
    %cst_4 = arith.constant 0.000000e+00 : bf16
    %8 = vector.broadcast %cst_4 : bf16 to vector<16x1x4xbf16>
    %cst_5 = arith.constant 0.000000e+00 : bf16
    %9 = vector.broadcast %cst_5 : bf16 to vector<1x18x4xbf16>
    %10 = tpu.concatenate %8, %7, %8 in 1 : vector<16x1x4xbf16>, vector<16x16x4xbf16>, vector<16x1x4xbf16> -> vector<16x18x4xbf16>
    %11 = tpu.concatenate %9, %10, %9 in 0 : vector<1x18x4xbf16>, vector<16x18x4xbf16>, vector<1x18x4xbf16> -> vector<18x18x4xbf16>
    %12 = vector.shape_cast %11 : vector<18x18x4xbf16> to vector<9x2x18x4xbf16>
    %13 = vector.extract_strided_slice %12 {offsets = [0, 0, 0, 0], sizes = [9, 1, 18, 4], strides = [1, 1, 1, 1]} : vector<9x2x18x4xbf16> to vector<9x1x18x4xbf16>
    %14 = vector.shape_cast %13 : vector<9x1x18x4xbf16> to vector<9x18x4xbf16>
    %15 = vector.shape_cast %14 : vector<9x18x4xbf16> to vector<9x9x2x4xbf16>
    %16 = vector.extract_strided_slice %15 {offsets = [0, 0, 0, 0], sizes = [9, 9, 1, 4], strides = [1, 1, 1, 1]} : vector<9x9x2x4xbf16> to vector<9x9x1x4xbf16>
    %17 = vector.shape_cast %16 : vector<9x9x1x4xbf16> to vector<9x9x4xbf16>
    %18 = vector.extract_strided_slice %15 {offsets = [0, 0, 1, 0], sizes = [9, 9, 1, 4], strides = [1, 1, 1, 1]} : vector<9x9x2x4xbf16> to vector<9x9x1x4xbf16>
    %19 = vector.shape_cast %18 : vector<9x9x1x4xbf16> to vector<9x9x4xbf16>
    %20 = vector.extract_strided_slice %12 {offsets = [0, 1, 0, 0], sizes = [9, 1, 18, 4], strides = [1, 1, 1, 1]} : vector<9x2x18x4xbf16> to vector<9x1x18x4xbf16>
    %21 = vector.shape_cast %20 : vector<9x1x18x4xbf16> to vector<9x18x4xbf16>
    %22 = vector.shape_cast %21 : vector<9x18x4xbf16> to vector<9x9x2x4xbf16>
    %23 = vector.extract_strided_slice %22 {offsets = [0, 0, 0, 0], sizes = [9, 9, 1, 4], strides = [1, 1, 1, 1]} : vector<9x9x2x4xbf16> to vector<9x9x1x4xbf16>
    %24 = vector.shape_cast %23 : vector<9x9x1x4xbf16> to vector<9x9x4xbf16>
    %25 = vector.extract_strided_slice %22 {offsets = [0, 0, 1, 0], sizes = [9, 9, 1, 4], strides = [1, 1, 1, 1]} : vector<9x9x2x4xbf16> to vector<9x9x1x4xbf16>
    %26 = vector.shape_cast %25 : vector<9x9x1x4xbf16> to vector<9x9x4xbf16>
    %27 = tpu.concatenate %17, %19, %24, %26 in 2 : vector<9x9x4xbf16>, vector<9x9x4xbf16>, vector<9x9x4xbf16>, vector<9x9x4xbf16> -> vector<9x9x16xbf16>
    %28 = vector.extract_strided_slice %27 {offsets = [0, 0, 0], sizes = [8, 8, 16], strides = [1, 1, 1]} : vector<9x9x16xbf16> to vector<8x8x16xbf16>
    %29 = vector.extract_strided_slice %27 {offsets = [0, 1, 0], sizes = [8, 8, 16], strides = [1, 1, 1]} : vector<9x9x16xbf16> to vector<8x8x16xbf16>
    %30 = vector.extract_strided_slice %27 {offsets = [1, 0, 0], sizes = [8, 8, 16], strides = [1, 1, 1]} : vector<9x9x16xbf16> to vector<8x8x16xbf16>
    %31 = vector.extract_strided_slice %27 {offsets = [1, 1, 0], sizes = [8, 8, 16], strides = [1, 1, 1]} : vector<9x9x16xbf16> to vector<8x8x16xbf16>
    %32 = tpu.concatenate %28, %29, %30, %31 in 2 : vector<8x8x16xbf16>, vector<8x8x16xbf16>, vector<8x8x16xbf16>, vector<8x8x16xbf16> -> vector<8x8x64xbf16>
    %33 = vector.shape_cast %32 : vector<8x8x64xbf16> to vector<64x64xbf16>
    %c0_6 = arith.constant 0 : index
    %c0_7 = arith.constant 0 : index
    %34 = vector.load %arg2[%c0_6, %c0_7] : memref<64x8xbf16, #tpu.memory_space<vmem>>, vector<64x8xbf16>
    %cst_8 = arith.constant dense<0.000000e+00> : vector<64x8xf32>
    %35 = tpu.matmul %33, %34, %cst_8 {dimension_numbers = #tpu.dot_dimension_numbers<[1], [0], [0], [1], [0, 0, 1, 1], [], []>} : vector<64x64xbf16>, vector<64x8xbf16>, vector<64x8xf32> -> vector<64x8xf32>
    %cst_9 = arith.constant 0.000000e+00 : f32
    %36 = vector.broadcast %cst_9 : f32 to vector<64x8xf32>
    %37 = arith.maximumf %35, %36 : vector<64x8xf32>
    %38 = arith.truncf %37 : vector<64x8xf32> to vector<64x8xbf16>
    %39 = vector.shape_cast %38 : vector<64x8xbf16> to vector<8x8x8xbf16>
    %cst_10 = arith.constant 0.000000e+00 : bf16
    %40 = vector.broadcast %cst_10 : bf16 to vector<8x1x8xbf16>
    %cst_11 = arith.constant 0.000000e+00 : bf16
    %41 = vector.broadcast %cst_11 : bf16 to vector<1x10x8xbf16>
    %42 = tpu.concatenate %40, %39, %40 in 1 : vector<8x1x8xbf16>, vector<8x8x8xbf16>, vector<8x1x8xbf16> -> vector<8x10x8xbf16>
    %43 = tpu.concatenate %41, %42, %41 in 0 : vector<1x10x8xbf16>, vector<8x10x8xbf16>, vector<1x10x8xbf16> -> vector<10x10x8xbf16>
    %44 = vector.extract_strided_slice %43 {offsets = [0, 0, 0], sizes = [8, 8, 8], strides = [1, 1, 1]} : vector<10x10x8xbf16> to vector<8x8x8xbf16>
    %45 = vector.extract_strided_slice %43 {offsets = [0, 1, 0], sizes = [8, 8, 8], strides = [1, 1, 1]} : vector<10x10x8xbf16> to vector<8x8x8xbf16>
    %46 = vector.extract_strided_slice %43 {offsets = [0, 2, 0], sizes = [8, 8, 8], strides = [1, 1, 1]} : vector<10x10x8xbf16> to vector<8x8x8xbf16>
    %47 = vector.extract_strided_slice %43 {offsets = [1, 0, 0], sizes = [8, 8, 8], strides = [1, 1, 1]} : vector<10x10x8xbf16> to vector<8x8x8xbf16>
    %48 = vector.extract_strided_slice %43 {offsets = [1, 1, 0], sizes = [8, 8, 8], strides = [1, 1, 1]} : vector<10x10x8xbf16> to vector<8x8x8xbf16>
    %49 = vector.extract_strided_slice %43 {offsets = [1, 2, 0], sizes = [8, 8, 8], strides = [1, 1, 1]} : vector<10x10x8xbf16> to vector<8x8x8xbf16>
    %50 = vector.extract_strided_slice %43 {offsets = [2, 0, 0], sizes = [8, 8, 8], strides = [1, 1, 1]} : vector<10x10x8xbf16> to vector<8x8x8xbf16>
    %51 = vector.extract_strided_slice %43 {offsets = [2, 1, 0], sizes = [8, 8, 8], strides = [1, 1, 1]} : vector<10x10x8xbf16> to vector<8x8x8xbf16>
    %52 = vector.extract_strided_slice %43 {offsets = [2, 2, 0], sizes = [8, 8, 8], strides = [1, 1, 1]} : vector<10x10x8xbf16> to vector<8x8x8xbf16>
    %53 = tpu.concatenate %44, %45, %46, %47, %48, %49, %50, %51, %52 in 2 : vector<8x8x8xbf16>, vector<8x8x8xbf16>, vector<8x8x8xbf16>, vector<8x8x8xbf16>, vector<8x8x8xbf16>, vector<8x8x8xbf16>, vector<8x8x8xbf16>, vector<8x8x8xbf16>, vector<8x8x8xbf16> -> vector<8x8x72xbf16>
    %54 = vector.shape_cast %53 : vector<8x8x72xbf16> to vector<64x72xbf16>
    %c0_12 = arith.constant 0 : index
    %c0_13 = arith.constant 0 : index
    %55 = vector.load %arg3[%c0_12, %c0_13] : memref<72x16xbf16, #tpu.memory_space<vmem>>, vector<72x16xbf16>
    %cst_14 = arith.constant dense<0.000000e+00> : vector<64x16xf32>
    %56 = tpu.matmul %54, %55, %cst_14 {dimension_numbers = #tpu.dot_dimension_numbers<[1], [0], [0], [1], [0, 0, 1, 1], [], []>} : vector<64x72xbf16>, vector<72x16xbf16>, vector<64x16xf32> -> vector<64x16xf32>
    %cst_15 = arith.constant dense<0.000000e+00> : vector<16xf32>
    %57 = vector.multi_reduction <add>, %56, %cst_15 [0] : vector<64x16xf32> to vector<16xf32>
    %58 = vector.shape_cast %57 : vector<16xf32> to vector<1x16xf32>
    %59 = arith.mulf %56, %56 : vector<64x16xf32>
    %cst_16 = arith.constant dense<0.000000e+00> : vector<16xf32>
    %60 = vector.multi_reduction <add>, %59, %cst_16 [0] : vector<64x16xf32> to vector<16xf32>
    %61 = vector.shape_cast %60 : vector<16xf32> to vector<1x16xf32>
    %62 = vector.extract_strided_slice %58 {offsets = [0, 0], sizes = [1, 4], strides = [1, 1]} : vector<1x16xf32> to vector<1x4xf32>
    %63 = vector.extract_strided_slice %58 {offsets = [0, 4], sizes = [1, 4], strides = [1, 1]} : vector<1x16xf32> to vector<1x4xf32>
    %64 = arith.addf %62, %63 : vector<1x4xf32>
    %65 = vector.extract_strided_slice %58 {offsets = [0, 8], sizes = [1, 4], strides = [1, 1]} : vector<1x16xf32> to vector<1x4xf32>
    %66 = arith.addf %64, %65 : vector<1x4xf32>
    %67 = vector.extract_strided_slice %58 {offsets = [0, 12], sizes = [1, 4], strides = [1, 1]} : vector<1x16xf32> to vector<1x4xf32>
    %68 = arith.addf %66, %67 : vector<1x4xf32>
    %69 = vector.extract_strided_slice %61 {offsets = [0, 0], sizes = [1, 4], strides = [1, 1]} : vector<1x16xf32> to vector<1x4xf32>
    %70 = vector.extract_strided_slice %61 {offsets = [0, 4], sizes = [1, 4], strides = [1, 1]} : vector<1x16xf32> to vector<1x4xf32>
    %71 = arith.addf %69, %70 : vector<1x4xf32>
    %72 = vector.extract_strided_slice %61 {offsets = [0, 8], sizes = [1, 4], strides = [1, 1]} : vector<1x16xf32> to vector<1x4xf32>
    %73 = arith.addf %71, %72 : vector<1x4xf32>
    %74 = vector.extract_strided_slice %61 {offsets = [0, 12], sizes = [1, 4], strides = [1, 1]} : vector<1x16xf32> to vector<1x4xf32>
    %75 = arith.addf %73, %74 : vector<1x4xf32>
    %76 = tpu.concatenate %68, %75 in 0 : vector<1x4xf32>, vector<1x4xf32> -> vector<2x4xf32>
    %c0_17 = arith.constant 0 : index
    %c0_18 = arith.constant 0 : index
    %c0_19 = arith.constant 0 : index
    %77 = vector.load %arg5[%c0_17, %c0_18, %c0_19] : memref<1x2x4xf32, #tpu.memory_space<vmem>>, vector<1x2x4xf32>
    %78 = vector.shape_cast %77 : vector<1x2x4xf32> to vector<2x4xf32>
    %79 = vector.shape_cast %76 : vector<2x4xf32> to vector<1x2x4xf32>
    tpu.vector_store %arg5[%c0_17, %c0_18, %c0_19], %79 {strides = array<i32>} : memref<1x2x4xf32, #tpu.memory_space<vmem>>, vector<1x2x4xf32>,
    %80 = vector.extract_strided_slice %56 {offsets = [0, 0], sizes = [64, 8], strides = [1, 1]} : vector<64x16xf32> to vector<64x8xf32>
    %81 = vector.shape_cast %80 : vector<64x8xf32> to vector<8x8x8xf32>
    %82 = arith.truncf %81 : vector<8x8x8xf32> to vector<8x8x8xbf16>
    %c0_20 = arith.constant 0 : index
    %c0_21 = arith.constant 0 : index
    %c0_22 = arith.constant 0 : index
    %c0_23 = arith.constant 0 : index
    %c0_24 = arith.constant 0 : index
    %83 = vector.load %arg4[%c0_20, %c0_21, %c0_22, %c0_23, %c0_24] : memref<1x8x2x8x8xbf16, #tpu.memory_space<vmem>>, vector<1x8x1x8x8xbf16>
    %84 = vector.shape_cast %83 : vector<1x8x1x8x8xbf16> to vector<8x8x8xbf16>
    %85 = vector.shape_cast %82 : vector<8x8x8xbf16> to vector<1x8x1x8x8xbf16>
    tpu.vector_store %arg4[%c0_20, %c0_21, %c0_22, %c0_23, %c0_24], %85 {strides = array<i32>} : memref<1x8x2x8x8xbf16, #tpu.memory_space<vmem>>, vector<1x8x1x8x8xbf16>,
    %86 = vector.extract_strided_slice %56 {offsets = [0, 8], sizes = [64, 8], strides = [1, 1]} : vector<64x16xf32> to vector<64x8xf32>
    %87 = vector.shape_cast %86 : vector<64x8xf32> to vector<8x8x8xf32>
    %88 = arith.truncf %87 : vector<8x8x8xf32> to vector<8x8x8xbf16>
    %c0_25 = arith.constant 0 : index
    %c0_26 = arith.constant 0 : index
    %c1 = arith.constant 1 : index
    %c0_27 = arith.constant 0 : index
    %c0_28 = arith.constant 0 : index
    %89 = vector.load %arg4[%c0_25, %c0_26, %c1, %c0_27, %c0_28] : memref<1x8x2x8x8xbf16, #tpu.memory_space<vmem>>, vector<1x8x1x8x8xbf16>
    %90 = vector.shape_cast %89 : vector<1x8x1x8x8xbf16> to vector<8x8x8xbf16>
    %91 = vector.shape_cast %88 : vector<8x8x8xbf16> to vector<1x8x1x8x8xbf16>
    tpu.vector_store %arg4[%c0_25, %c0_26, %c1, %c0_27, %c0_28], %91 {strides = array<i32>} : memref<1x8x2x8x8xbf16, #tpu.memory_space<vmem>>, vector<1x8x1x8x8xbf16>,
    return
  }
  func.func @transform_0(%arg0: i32) -> (i32, i32, i32, i32) {
    %c0_i32 = arith.constant 0 : i32
    %c0_i32_0 = arith.constant 0 : i32
    %c0_i32_1 = arith.constant 0 : i32
    %c0_i32_2 = arith.constant 0 : i32
    return %arg0, %c0_i32, %c0_i32_0, %c0_i32_1 : i32, i32, i32, i32
  }
  func.func @transform_1(%arg0: i32) -> (i32, i32) {
    %c0_i32 = arith.constant 0 : i32
    %c0_i32_0 = arith.constant 0 : i32
    %c0_i32_1 = arith.constant 0 : i32
    return %c0_i32, %c0_i32_0 : i32, i32
  }
  func.func @transform_2(%arg0: i32) -> (i32, i32) {
    %c0_i32 = arith.constant 0 : i32
    %c0_i32_0 = arith.constant 0 : i32
    %c0_i32_1 = arith.constant 0 : i32
    return %c0_i32, %c0_i32_0 : i32, i32
  }
  func.func @transform_3(%arg0: i32) -> (i32, i32, i32, i32, i32) {
    %c0_i32 = arith.constant 0 : i32
    %c0_i32_0 = arith.constant 0 : i32
    %c0_i32_1 = arith.constant 0 : i32
    %c0_i32_2 = arith.constant 0 : i32
    %c0_i32_3 = arith.constant 0 : i32
    return %arg0, %c0_i32, %c0_i32_0, %c0_i32_1, %c0_i32_2 : i32, i32, i32, i32, i32
  }
  func.func @transform_4(%arg0: i32) -> (i32, i32, i32) {
    %c0_i32 = arith.constant 0 : i32
    %c0_i32_0 = arith.constant 0 : i32
    %c0_i32_1 = arith.constant 0 : i32
    return %arg0, %c0_i32, %c0_i32_0 : i32, i32, i32
  }
}

</mosaic_0001>

<bundles_post_ra>
// kernel: unet_innermost_forward.3
= control target key start
LH: loop header
LB: loop body
LE: loop exit
PB: predicated region body
PF: predicated region fallthrough
CT: control target
= control target key end

     0   :  { %s754_s12 = smov 0   ;;  %s1031_s0 = inlined_call_operand.vmem [shape: f32[2,16,16,4], index: 0, kind: input, shape index: {}]   ;;  %s1032_s1 = inlined_call_operand.vmem [shape: bf16[2,16,16,4], index: 1, kind: input, shape index: {}]   ;;  %s1033_s2 = inlined_call_operand.vmem [shape: f32[2,4], index: 2, kind: input, shape index: {}]   ;;  %s1034_s3 = inlined_call_operand.vmem [shape: f32[2,16,16,8], index: 3, kind: output, shape index: {}]  }
   0x1 LB: > { %s621_s13 = sadd.s32 4294967295, %s731_s12   ;;  %p625_p0 = scmp.ge.s32.totalorder %s731_s12, 1  ;;  %s731_s12 = sphi %s754_s12, %s13_s12  }
   0x2   : > { %p147_p1 = scmp.lt.s32.totalorder %s731_s12, 3 }
   0x4   : > { %p148_p2 = pnand %p625_p0, %p147_p1 }
   0x5   : > { %p176_p3 = scmp.lt.s32.totalorder (!%p148_p2), %s621_s13, 1  ;;  %s733_s20 = smov (!%p148_p2), 4  }
   0x6   : > { %151 = sbr.rel (%p148_p2) target bundleno = 200 (0xc8), region = 32 }
   0xb   : > { %v256_v0 = vlaneseq  ;;  %s1036_s13 = smov (!%p176_p3, %s621_s13), 1  ;;  %v191_v2 = vld [vmem:[%s1033_s2] sm:$0x3]  ;;  %vm488_vm0 = vcmask 31744   ;;  %vm521_vm1 = vcmask 64512  }
   0xc   : > { %s635_s16 = sshll.u32 %s1036_s13, 7  ;;  %s634_s21 = sshll.u32 %s1036_s13, 8 }
   0xd   : > { %v257_v1 = vshrl.u32 %v256_v0, 7  ;;  %s771_s19 = scalar_lea.vmem %s1032_s1, %s635_s16  ;;  %s893_s24 = scalar_lea.vmem %s1031_s0, %s634_s21 }
   0xe   : > { %v701_v5 = vld [vmem:[%s771_s19 + $0x8] sm:$0xff]   ;;  %v638_v8 = vld [vmem:[%s771_s19] sm:$0xff]   ;;  %v702_v9 = vld [vmem:[%s771_s19 + $0x10] sm:$0xff]   ;;  %s900_s27 = scalar_lea.vmem %s1034_s3, %s634_s21 }
   0xf   : > { %v258_v3 = vsub.s32 0, %v257_v1  ;;  %v294_v4 = vsub.s32 1, %v257_v1  ;;  %v643_v10 = vunpack.c.l.bf16 %v701_v5  ;;  %v644_v11 = vunpack.c.h.bf16 %v701_v5  ;;  %v703_v20 = vld [vmem:[%s771_s19 + $0x18] sm:$0xff]   ;;  %v704_v29 = vld [vmem:[%s771_s19 + $0x20] sm:$0xff]   ;;  %v705_v36 = vld [vmem:[%s771_s19 + $0x28] sm:$0xff]  }
  0x10   : > { %v639_v12 = vunpack.c.l.bf16 %v638_v8  ;;  %v640_v13 = vunpack.c.h.bf16 %v638_v8  ;;  %v648_v14 = vunpack.c.h.bf16 %v702_v9  ;;  %v647_v15 = vunpack.c.l.bf16 %v702_v9  ;;  %v706_v43 = vld [vmem:[%s771_s19 + $0x30] sm:$0xff]   ;;  %v707_v50 = vld [vmem:[%s771_s19 + $0x38] sm:$0xff]   ;;  %v708_v57 = vld [vmem:[%s771_s19 + $0x40] sm:$0xff]  }
  0x11   : > { %v774_v6 = vrot.slane %v191_v2, %v258_v3  ;;  %v776_v7 = vrot.slane %v191_v2, %v294_v4  ;;  %v652_v24 = vunpack.c.h.bf16 %v703_v20  ;;  %v651_v25 = vunpack.c.l.bf16 %v703_v20  ;;  %v709_v0 = vld [vmem:[%s771_s19 + $0x48] sm:$0xff]   ;;  %v710_v9 = vld [vmem:[%s771_s19 + $0x50] sm:$0xff]  }
  0x12   : > { %v656_v34 = vunpack.c.h.bf16 %v704_v29  ;;  %v655_v35 = vunpack.c.l.bf16 %v704_v29  ;;  %v660_v38 = vunpack.c.h.bf16 %v705_v36  ;;  %v659_v42 = vunpack.c.l.bf16 %v705_v36 }
  0x13   : > { %v262_v16 = vmul.f32 %v643_v10, %v774_v6  ;;  %v260_v17 = vmul.f32 %v639_v12, %v774_v6  ;;  %v263_v18 = vmul.f32 %v644_v11, %v774_v6  ;;  %v261_v19 = vmul.f32 %v640_v13, %v774_v6 }
  0x14   : > { %v265_v23 = vmul.f32 %v648_v14, %v774_v6  ;;  %v264_v28 = vmul.f32 %v647_v15, %v774_v6  ;;  %v267_v30 = vmul.f32 %v652_v24, %v774_v6  ;;  %v266_v31 = vmul.f32 %v651_v25, %v774_v6 }
  0x15   : > { %v298_v21 = vadd.f32 %v776_v7, %v262_v16  ;;  %v296_v22 = vadd.f32 %v776_v7, %v260_v17  ;;  %v299_v26 = vadd.f32 %v776_v7, %v263_v18  ;;  %v297_v27 = vadd.f32 %v776_v7, %v261_v19  ;;  %v711_v16 = vld [vmem:[%s771_s19 + $0x58] sm:$0xff]  }
  0x16   : > { %v301_v32 = vadd.f32 %v776_v7, %v265_v23  ;;  %v300_v33 = vadd.f32 %v776_v7, %v264_v28  ;;  %v303_v37 = vadd.f32 %v776_v7, %v267_v30  ;;  %v302_v39 = vadd.f32 %v776_v7, %v266_v31  ;;  %v712_v23 = vld [vmem:[%s771_s19 + $0x60] sm:$0xff]   ;;  %v713_v30 = vld [vmem:[%s771_s19 + $0x68] sm:$0xff]  }
  0x17   : > { %396 = vrot.lane.b32.xlu1 %v298_v21, %s733_s20  ;;  %392 = vrot.lane.b32.xlu0 %v296_v22, %s733_s20  ;;  %v269_v40 = vmul.f32 %v656_v34, %v774_v6  ;;  %v268_v41 = vmul.f32 %v655_v35, %v774_v6  ;;  %v271_v44 = vmul.f32 %v660_v38, %v774_v6  ;;  %v664_v45 = vunpack.c.h.bf16 %v706_v43 }
  0x18   : > { %v270_v48 = vmul.f32 %v659_v42, %v774_v6  ;;  %v663_v49 = vunpack.c.l.bf16 %v706_v43  ;;  %v668_v52 = vunpack.c.h.bf16 %v707_v50  ;;  %v667_v56 = vunpack.c.l.bf16 %v707_v50 }
  0x19   : > { %v305_v46 = vadd.f32 %v776_v7, %v269_v40  ;;  %v304_v47 = vadd.f32 %v776_v7, %v268_v41  ;;  %v273_v51 = vmul.f32 %v664_v45, %v774_v6  ;;  %v307_v53 = vadd.f32 %v776_v7, %v271_v44  ;;  %v715_v44 = vld [vmem:[%s771_s19 + $0x78] sm:$0xff]  }
  0x1a   : > { %v306_v54 = vadd.f32 %v776_v7, %v270_v48  ;;  %v272_v55 = vmul.f32 %v663_v49, %v774_v6  ;;  %v275_v58 = vmul.f32 %v668_v52, %v774_v6  ;;  %v672_v59 = vunpack.c.h.bf16 %v708_v57 }
  0x1b   : > { %398 = vrot.lane.b32.xlu1 %v299_v26, %s733_s20  ;;  %394 = vrot.lane.b32.xlu0 %v297_v27, %s733_s20  ;;  %v309_v60 = vadd.f32 %v776_v7, %v273_v51  ;;  %v274_v62 = vmul.f32 %v667_v56, %v774_v6  ;;  %v671_v63 = vunpack.c.l.bf16 %v708_v57  ;;  %v676_v5 = vunpack.c.h.bf16 %v709_v0  ;;  %v328_v57 = vld [vmem:[%s893_s24] sm:$0xff] }
  0x1c   : > { %v308_v61 = vadd.f32 %v776_v7, %v272_v55  ;;  %v311_v1 = vadd.f32 %v776_v7, %v275_v58  ;;  %v277_v2 = vmul.f32 %v672_v59, %v774_v6  ;;  %v675_v8 = vunpack.c.l.bf16 %v709_v0 }
  0x1d   : > { %v310_v3 = vadd.f32 %v776_v7, %v274_v62  ;;  %v276_v4 = vmul.f32 %v671_v63, %v774_v6  ;;  %v680_v11 = vunpack.c.h.bf16 %v710_v9  ;;  %v279_v13 = vmul.f32 %v676_v5, %v774_v6  ;;  %v329_v62 = vld [vmem:[%s893_s24 + $0x8] sm:$0xff] }
  0x1e   : > { %v313_v10 = vadd.f32 %v776_v7, %v277_v2  ;;  %v278_v14 = vmul.f32 %v675_v8, %v774_v6  ;;  %v679_v15 = vunpack.c.l.bf16 %v710_v9  ;;  %v684_v18 = vunpack.c.h.bf16 %v711_v16 }
  0x1f   : > { %402 = vrot.lane.b32.xlu1 %v301_v32, %s733_s20  ;;  %400 = vrot.lane.b32.xlu0 %v300_v33, %s733_s20  ;;  %v312_v12 = vadd.f32 %v776_v7, %v276_v4  ;;  %v281_v17 = vmul.f32 %v680_v11, %v774_v6  ;;  %v315_v19 = vadd.f32 %v776_v7, %v279_v13  ;;  %v683_v22 = vunpack.c.l.bf16 %v711_v16  ;;  %v332_v4 = vld [vmem:[%s893_s24 + $0x20] sm:$0xff]  ;;  %v335_v11 = vld [vmem:[%s893_s24 + $0x38] sm:$0xff] }
  0x20   : > { %v314_v20 = vadd.f32 %v776_v7, %v278_v14  ;;  %v280_v21 = vmul.f32 %v679_v15, %v774_v6  ;;  %v283_v24 = vmul.f32 %v684_v18, %v774_v6  ;;  %v688_v25 = vunpack.c.h.bf16 %v712_v23  ;;  %v336_v18 = vld [vmem:[%s893_s24 + $0x40] sm:$0xff] }
  0x21   : > { %v317_v26 = vadd.f32 %v776_v7, %v281_v17  ;;  %v282_v28 = vmul.f32 %v683_v22, %v774_v6  ;;  %v687_v29 = vunpack.c.l.bf16 %v712_v23  ;;  %v692_v35 = vunpack.c.h.bf16 %v713_v30  ;;  %v337_v17 = vld [vmem:[%s893_s24 + $0x48] sm:$0xff]  ;;  %v339_v23 = vld [vmem:[%s893_s24 + $0x58] sm:$0xff] }
  0x22   : > { %v316_v27 = vadd.f32 %v776_v7, %v280_v21  ;;  %v319_v31 = vadd.f32 %v776_v7, %v283_v24  ;;  %v285_v32 = vmul.f32 %v688_v25, %v774_v6  ;;  %v691_v36 = vunpack.c.l.bf16 %v713_v30  ;;  %v338_v24 = vld [vmem:[%s893_s24 + $0x50] sm:$0xff]  ;;  %v340_v30 = vld [vmem:[%s893_s24 + $0x60] sm:$0xff] }
  0x23   : > { %406 = vrot.lane.b32.xlu1 %v303_v37, %s733_s20  ;;  %404 = vrot.lane.b32.xlu0 %v302_v39, %s733_s20  ;;  %v318_v33 = vadd.f32 %v776_v7, %v282_v28  ;;  %v284_v34 = vmul.f32 %v687_v29, %v774_v6  ;;  %v714_v37 = vld [vmem:[%s771_s19 + $0x70] sm:$0xff]   ;;  %v287_v41 = vmul.f32 %v692_v35, %v774_v6  ;;  %v699_v50 = vunpack.c.l.bf16 %v715_v44  ;;  %v341_v29 = vld [vmem:[%s893_s24 + $0x68] sm:$0xff] }
  0x24   : > { %v321_v38 = vadd.f32 %v776_v7, %v285_v32  ;;  %v696_v39 = vunpack.c.h.bf16 %v714_v37  ;;  %v286_v42 = vmul.f32 %v691_v36, %v774_v6  ;;  %v695_v43 = vunpack.c.l.bf16 %v714_v37  ;;  %v343_v35 = vld [vmem:[%s893_s24 + $0x78] sm:$0xff]  ;;  %v342_v36 = vld [vmem:[%s893_s24 + $0x70] sm:$0xff] }
  0x25   : > { %v320_v40 = vadd.f32 %v776_v7, %v284_v34 }
  0x26   : > { %v289_v45 = vmul.f32 %v696_v39, %v774_v6  ;;  %v322_v48 = vadd.f32 %v776_v7, %v286_v42  ;;  %v288_v49 = vmul.f32 %v695_v43, %v774_v6  ;;  %v344_v42 = vld [vmem:[%s893_s24 + $0x80] sm:$0xff] }
  0x27   : > { %410 = vrot.lane.b32.xlu1 %v305_v46, %s733_s20  ;;  %408 = vrot.lane.b32.xlu0 %v304_v47, %s733_s20  ;;  %v700_v46 = vunpack.c.h.bf16 %v715_v44  ;;  %v323_v47 = vadd.f32 %v776_v7, %v287_v41  ;;  %v345_v41 = vld [vmem:[%s893_s24 + $0x88] sm:$0xff] }
  0x28   : > { %v325_v52 = vadd.f32 %v776_v7, %v289_v45 }
  0x29   : > { %v291_v51 = vmul.f32 %v700_v46, %v774_v6 }
  0x2b   : > { %414 = vrot.lane.b32.xlu1 %v307_v53, %s733_s20  ;;  %412 = vrot.lane.b32.xlu0 %v306_v54, %s733_s20  ;;  %v324_v53 = vadd.f32 %v776_v7, %v288_v49  ;;  %v290_v54 = vmul.f32 %v699_v50, %v774_v6  ;;  %v327_v55 = vadd.f32 %v776_v7, %v291_v51  ;;  %v330_v6 = vld [vmem:[%s893_s24 + $0x10] sm:$0xff] }
  0x2d   : > { %v326_v56 = vadd.f32 %v776_v7, %v290_v54  ;;  %v348_v54 = vld [vmem:[%s893_s24 + $0xa0] sm:$0xff] }
  0x2f   : > { %418 = vrot.lane.b32.xlu1 %v309_v60, %s733_s20  ;;  %416 = vrot.lane.b32.xlu0 %v308_v61, %s733_s20  ;;  %v331_v61 = vld [vmem:[%s893_s24 + $0x18] sm:$0xff] }
  0x33   : > { %422 = vrot.lane.b32.xlu1 %v311_v1, %s733_s20  ;;  %420 = vrot.lane.b32.xlu0 %v310_v3, %s733_s20  ;;  %v333_v3 = vld [vmem:[%s893_s24 + $0x28] sm:$0xff] }
  0x37   : > { %426 = vrot.lane.b32.xlu1 %v313_v10, %s733_s20  ;;  %424 = vrot.lane.b32.xlu0 %v312_v12, %s733_s20  ;;  %v334_v12 = vld [vmem:[%s893_s24 + $0x30] sm:$0xff] }
  0x3b   : > { %430 = vrot.lane.b32.xlu1 %v315_v19, %s733_s20  ;;  %428 = vrot.lane.b32.xlu0 %v314_v20, %s733_s20 }
  0x3f   : > { %434 = vrot.lane.b32.xlu1 %v317_v26, %s733_s20  ;;  %432 = vrot.lane.b32.xlu0 %v316_v27, %s733_s20 }
  0x43   : > { %438 = vrot.lane.b32.xlu1 %v319_v31, %s733_s20  ;;  %436 = vrot.lane.b32.xlu0 %v318_v33, %s733_s20 }
  0x47   : > { %442 = vrot.lane.b32.xlu1 %v321_v38, %s733_s20  ;;  %440 = vrot.lane.b32.xlu0 %v320_v40, %s733_s20 }
  0x4b   : > { %446 = vrot.lane.b32.xlu1 %v323_v47, %s733_s20  ;;  %444 = vrot.lane.b32.xlu0 %v322_v48, %s733_s20  ;;  %v347_v47 = vld [vmem:[%s893_s24 + $0x98] sm:$0xff]  ;;  %v346_v48 = vld [vmem:[%s893_s24 + $0x90] sm:$0xff] }
  0x4f   : > { %450 = vrot.lane.b32.xlu1 %v325_v52, %s733_s20  ;;  %448 = vrot.lane.b32.xlu0 %v324_v53, %s733_s20  ;;  %v349_v53 = vld [vmem:[%s893_s24 + $0xa8] sm:$0xff] }
  0x53   : > { %454 = vrot.lane.b32.xlu1 %v327_v55, %s733_s20  ;;  %452 = vrot.lane.b32.xlu0 %v326_v56, %s733_s20 }
  0x89   : > { %v397_v7 = vpop.permute.xlu1 %396  ;;  %v393_v58 = vpop.permute.xlu0 %392 }
  0x8a   : > { %v491_v59 = vsel %vm488_vm0, %v330_v6, %v397_v7  ;;  %v489_v60 = vsel %vm488_vm0, %v328_v57, %v393_v58  ;;  %v351_v7 = vld [vmem:[%s893_s24 + $0xb8] sm:$0xff]  ;;  %v350_v58 = vld [vmem:[%s893_s24 + $0xb0] sm:$0xff] }
  0x8b   : > { %524 = vst.msk [vmem:[%s900_s27 + $0x10] sm:$0xff] %vm521_vm1, %v491_v59  ;;  %522 = vst.msk [vmem:[%s900_s27] sm:$0xff] %vm521_vm1, %v489_v60 }
  0x8d   : > { %v399_v63 = vpop.permute.xlu1 %398  ;;  %v395_v0 = vpop.permute.xlu0 %394 }
  0x8e   : > { %v492_v1 = vsel %vm488_vm0, %v331_v61, %v399_v63  ;;  %v490_v2 = vsel %vm488_vm0, %v329_v62, %v395_v0  ;;  %v353_v63 = vld [vmem:[%s893_s24 + $0xc8] sm:$0xff]  ;;  %v352_v0 = vld [vmem:[%s893_s24 + $0xc0] sm:$0xff] }
  0x8f   : > { %525 = vst.msk [vmem:[%s900_s27 + $0x18] sm:$0xff] %vm521_vm1, %v492_v1  ;;  %523 = vst.msk [vmem:[%s900_s27 + $0x8] sm:$0xff] %vm521_vm1, %v490_v2 }
  0x91   : > { %v403_v5 = vpop.permute.xlu1 %402  ;;  %v401_v8 = vpop.permute.xlu0 %400 }
  0x92   : > { %v494_v9 = vsel %vm488_vm0, %v333_v3, %v403_v5  ;;  %v493_v10 = vsel %vm488_vm0, %v332_v4, %v401_v8  ;;  %v355_v5 = vld [vmem:[%s893_s24 + $0xd8] sm:$0xff]  ;;  %v354_v8 = vld [vmem:[%s893_s24 + $0xd0] sm:$0xff] }
  0x93   : > { %527 = vst.msk [vmem:[%s900_s27 + $0x28] sm:$0xff] %vm521_vm1, %v494_v9  ;;  %526 = vst.msk [vmem:[%s900_s27 + $0x20] sm:$0xff] %vm521_vm1, %v493_v10 }
  0x95   : > { %v407_v13 = vpop.permute.xlu1 %406  ;;  %v405_v14 = vpop.permute.xlu0 %404 }
  0x96   : > { %v496_v15 = vsel %vm488_vm0, %v335_v11, %v407_v13  ;;  %v495_v16 = vsel %vm488_vm0, %v334_v12, %v405_v14  ;;  %v357_v13 = vld [vmem:[%s893_s24 + $0xe8] sm:$0xff]  ;;  %v356_v14 = vld [vmem:[%s893_s24 + $0xe0] sm:$0xff] }
  0x97   : > { %529 = vst.msk [vmem:[%s900_s27 + $0x38] sm:$0xff] %vm521_vm1, %v496_v15  ;;  %528 = vst.msk [vmem:[%s900_s27 + $0x30] sm:$0xff] %vm521_vm1, %v495_v16 }
  0x99   : > { %v411_v19 = vpop.permute.xlu1 %410  ;;  %v409_v20 = vpop.permute.xlu0 %408 }
  0x9a   : > { %v498_v21 = vsel %vm488_vm0, %v337_v17, %v411_v19  ;;  %v497_v22 = vsel %vm488_vm0, %v336_v18, %v409_v20  ;;  %v359_v19 = vld [vmem:[%s893_s24 + $0xf8] sm:$0xff]  ;;  %v358_v20 = vld [vmem:[%s893_s24 + $0xf0] sm:$0xff] }
  0x9b   : > { %531 = vst.msk [vmem:[%s900_s27 + $0x48] sm:$0xff] %vm521_vm1, %v498_v21  ;;  %530 = vst.msk [vmem:[%s900_s27 + $0x40] sm:$0xff] %vm521_vm1, %v497_v22 }
  0x9d   : > { %v415_v25 = vpop.permute.xlu1 %414  ;;  %v413_v26 = vpop.permute.xlu0 %412 }
  0x9e   : > { %v500_v27 = vsel %vm488_vm0, %v339_v23, %v415_v25  ;;  %v499_v28 = vsel %vm488_vm0, %v338_v24, %v413_v26 }
  0x9f   : > { %533 = vst.msk [vmem:[%s900_s27 + $0x58] sm:$0xff] %vm521_vm1, %v500_v27  ;;  %532 = vst.msk [vmem:[%s900_s27 + $0x50] sm:$0xff] %vm521_vm1, %v499_v28 }
  0xa1   : > { %v419_v31 = vpop.permute.xlu1 %418  ;;  %v417_v32 = vpop.permute.xlu0 %416 }
  0xa2   : > { %v502_v33 = vsel %vm488_vm0, %v341_v29, %v419_v31  ;;  %v501_v34 = vsel %vm488_vm0, %v340_v30, %v417_v32 }
  0xa3   : > { %535 = vst.msk [vmem:[%s900_s27 + $0x68] sm:$0xff] %vm521_vm1, %v502_v33  ;;  %534 = vst.msk [vmem:[%s900_s27 + $0x60] sm:$0xff] %vm521_vm1, %v501_v34 }
  0xa5   : > { %v423_v37 = vpop.permute.xlu1 %422  ;;  %v421_v38 = vpop.permute.xlu0 %420 }
  0xa6   : > { %v504_v39 = vsel %vm488_vm0, %v343_v35, %v423_v37  ;;  %v503_v40 = vsel %vm488_vm0, %v342_v36, %v421_v38 }
  0xa7   : > { %537 = vst.msk [vmem:[%s900_s27 + $0x78] sm:$0xff] %vm521_vm1, %v504_v39  ;;  %536 = vst.msk [vmem:[%s900_s27 + $0x70] sm:$0xff] %vm521_vm1, %v503_v40 }
  0xa9   : > { %v427_v43 = vpop.permute.xlu1 %426  ;;  %v425_v44 = vpop.permute.xlu0 %424 }
  0xaa   : > { %v506_v45 = vsel %vm488_vm0, %v345_v41, %v427_v43  ;;  %v505_v46 = vsel %vm488_vm0, %v344_v42, %v425_v44 }
  0xab   : > { %539 = vst.msk [vmem:[%s900_s27 + $0x88] sm:$0xff] %vm521_vm1, %v506_v45  ;;  %538 = vst.msk [vmem:[%s900_s27 + $0x80] sm:$0xff] %vm521_vm1, %v505_v46 }
  0xad   : > { %v431_v49 = vpop.permute.xlu1 %430  ;;  %v429_v50 = vpop.permute.xlu0 %428 }
  0xae   : > { %v508_v51 = vsel %vm488_vm0, %v347_v47, %v431_v49  ;;  %v507_v52 = vsel %vm488_vm0, %v346_v48, %v429_v50 }
  0xaf   : > { %541 = vst.msk [vmem:[%s900_s27 + $0x98] sm:$0xff] %vm521_vm1, %v508_v51  ;;  %540 = vst.msk [vmem:[%s900_s27 + $0x90] sm:$0xff] %vm521_vm1, %v507_v52 }
  0xb1   : > { %v435_v55 = vpop.permute.xlu1 %434  ;;  %v433_v56 = vpop.permute.xlu0 %432 }
  0xb2   : > { %v510_v6 = vsel %vm488_vm0, %v349_v53, %v435_v55  ;;  %v509_v57 = vsel %vm488_vm0, %v348_v54, %v433_v56 }
  0xb3   : > { %543 = vst.msk [vmem:[%s900_s27 + $0xa8] sm:$0xff] %vm521_vm1, %v510_v6  ;;  %542 = vst.msk [vmem:[%s900_s27 + $0xa0] sm:$0xff] %vm521_vm1, %v509_v57 }
  0xb5   : > { %v439_v59 = vpop.permute.xlu1 %438  ;;  %v437_v60 = vpop.permute.xlu0 %436 }
  0xb6   : > { %v512_v61 = vsel %vm488_vm0, %v351_v7, %v439_v59  ;;  %v511_v62 = vsel %vm488_vm0, %v350_v58, %v437_v60 }
  0xb7   : > { %545 = vst.msk [vmem:[%s900_s27 + $0xb8] sm:$0xff] %vm521_vm1, %v512_v61  ;;  %544 = vst.msk [vmem:[%s900_s27 + $0xb0] sm:$0xff] %vm521_vm1, %v511_v62 }
  0xb9   : > { %v443_v1 = vpop.permute.xlu1 %442  ;;  %v441_v2 = vpop.permute.xlu0 %440 }
  0xba   : > { %v514_v3 = vsel %vm488_vm0, %v353_v63, %v443_v1  ;;  %v513_v4 = vsel %vm488_vm0, %v352_v0, %v441_v2 }
  0xbb   : > { %547 = vst.msk [vmem:[%s900_s27 + $0xc8] sm:$0xff] %vm521_vm1, %v514_v3  ;;  %546 = vst.msk [vmem:[%s900_s27 + $0xc0] sm:$0xff] %vm521_vm1, %v513_v4 }
  0xbd   : > { %v447_v9 = vpop.permute.xlu1 %446  ;;  %v445_v10 = vpop.permute.xlu0 %444 }
  0xbe   : > { %v516_v11 = vsel %vm488_vm0, %v355_v5, %v447_v9  ;;  %v515_v12 = vsel %vm488_vm0, %v354_v8, %v445_v10 }
  0xbf   : > { %549 = vst.msk [vmem:[%s900_s27 + $0xd8] sm:$0xff] %vm521_vm1, %v516_v11  ;;  %548 = vst.msk [vmem:[%s900_s27 + $0xd0] sm:$0xff] %vm521_vm1, %v515_v12 }
  0xc1   : > { %v451_v15 = vpop.permute.xlu1 %450  ;;  %v449_v16 = vpop.permute.xlu0 %448 }
  0xc2   : > { %v518_v17 = vsel %vm488_vm0, %v357_v13, %v451_v15  ;;  %v517_v18 = vsel %vm488_vm0, %v356_v14, %v449_v16 }
  0xc3   : > { %551 = vst.msk [vmem:[%s900_s27 + $0xe8] sm:$0xff] %vm521_vm1, %v518_v17  ;;  %550 = vst.msk [vmem:[%s900_s27 + $0xe0] sm:$0xff] %vm521_vm1, %v517_v18 }
  0xc5   : > { %v455_v21 = vpop.permute.xlu1 %454  ;;  %v453_v22 = vpop.permute.xlu0 %452 }
  0xc6   : > { %v520_v23 = vsel %vm488_vm0, %v359_v19, %v455_v21  ;;  %v519_v24 = vsel %vm488_vm0, %v358_v20, %v453_v22 }
  0xc7   : > { %553 = vst.msk [vmem:[%s900_s27 + $0xf8] sm:$0xff] %vm521_vm1, %v520_v23  ;;  %552 = vst.msk [vmem:[%s900_s27 + $0xf0] sm:$0xff] %vm521_vm1, %v519_v24 }
  0xc8 PF: > { %s13_s12 = sadd.s32 1, %s731_s12  }
  0xc9   : > { %p10_p4 = scmp.ge.s32.totalorder %s13_s12, 4  }
  0xcb   :  { %12 = sbr.rel (!%p10_p4) target bundleno = 1 (0x1), region = 65 }

// kernel: unet_innermost_forward.2
= control target key start
LH: loop header
LB: loop body
LE: loop exit
PB: predicated region body
PF: predicated region fallthrough
CT: control target
= control target key end

     0   :  { %s5893_s15 = smov 0   ;;  %s8081_s0 = inlined_call_operand.vmem [shape: f32[2,16,16,4], index: 0, kind: input, shape index: {}]   ;;  %s8082_s1 = inlined_call_operand.vmem [shape: bf16[64,8], index: 1, kind: input, shape index: {}]   ;;  %s8083_s2 = inlined_call_operand.vmem [shape: bf16[72,16], index: 2, kind: input, shape index: {}]   ;;  %s8084_s3 = inlined_call_operand.vmem [shape: bf16[2,8,2,8,8], index: 3, kind: output, shape index: {0}]   ;;  %s8085_s4 = inlined_call_operand.vmem [shape: f32[2,2,4], index: 4, kind: output, shape index: {1}]  }
   0x1 LB: > { %s5682_s16 = sadd.s32 4294967295, %s5851_s15   ;;  %p5686_p0 = scmp.ge.s32.totalorder %s5851_s15, 1  ;;  %s5851_s15 = sphi %s5893_s15, %s15_s15  }
   0x2   : > { %p165_p1 = scmp.lt.s32.totalorder %s5851_s15, 3 }
   0x4   : > { %p166_p2 = pnand %p5686_p0, %p165_p1 }
   0x6   : > { %169 = sbr.rel (%p166_p2) target bundleno = 1407 (0x57f), region = 32 }
   0xb   : > { %v554_v0 = vlaneseq  ;;  %p195_p3 = scmp.lt.s32.totalorder %s5682_s16, 1  ;;  %v5853_v1 = vmov 1966171168   ;;  %v8086_v4 = vmov 0   ;;  %vm2824_vm2 = vcmask 1041409   ;;  %s5855_s21 = smov 4  }
   0xc   : > { %v552_v2 = vunpack.c.l.s4 %v5853_v1  ;;  %v550_v5 = vcombine.high %v8086_v4, %v8086_v4  ;;  %vm2827_vm4 = vcmask 1042434   ;;  %vm2830_vm6 = vcmask 1043459   ;;  %s5856_s22 = smov 8   ;;  %s5857_s23 = smov 12  }
   0xd   : > { %v555_v3 = vshrl.u32 %v554_v0, 7  ;;  %s8364_s16 = smov (!%p195_p3, %s5682_s16), 1  ;;  %vm2833_vm7 = vcmask 1044484   ;;  %vm498_vm8 = vcmask 1040384   ;;  %vm499_vm9 = vsmask.f32 256 }
   0xe   : > { %v553_v6 = vunpack.c.0.s8 %v552_v2  ;;  %s5743_s17 = sshll.u32 %s8364_s16, 8  ;;  %vm2836_vm10 = vcmask 1045509   ;;  %vm2839_vm11 = vcmask 1046534   ;;  %vm2842_vm12 = vcmask 1047559   ;;  %vm5983_vm13 = vmand %vm498_vm8, %vm499_vm9  ;;  %s5858_s24 = smov 32  }
   0xf   : > { %s5911_s20 = scalar_lea.vmem %s8081_s0, %s5743_s17  ;;  %s5859_s5 = smov 16  }
  0x10   : > { %v5906_v7 = vsub.s32 %v553_v6, %v555_v3  ;;  %v216_v8 = vld [vmem:[%s5911_s20 + $0x30] sm:$0xff]  ;;  %v217_v9 = vld [vmem:[%s5911_s20 + $0x38] sm:$0xff]  ;;  %s5860_s8 = smov 48   ;;  %s5861_s9 = smov 56  }
  0x11   : > { %vm248_vm0 = vcmp.ge.f32.partialorder %v216_v8, 0.0  ;;  %vm249_vm1 = vcmp.ge.f32.partialorder %v217_v9, 0.0  ;;  %v212_v12 = vld [vmem:[%s5911_s20 + $0x10] sm:$0xff]  ;;  %v280_v13 = vmul.f32 0.2, %v216_v8  ;;  %v5920_v15 = vld [vmem:[%s5911_s20 + $0x18] sm:$0xff] }
  0x12   : > { %v557_v10 = vrot.slane %v8086_v4, %v5906_v7  ;;  %v564_v11 = vrot.slane %v550_v5, %v5906_v7  ;;  %v281_v14 = vmul.f32 0.2, %v217_v9  ;;  %vm244_vm3 = vcmp.ge.f32.partialorder %v212_v12, 0.0  ;;  %v220_v3 = vld [vmem:[%s5911_s20 + $0x50] sm:$0xff]  ;;  %s5862_s10 = smov 24   ;;  %s5863_s11 = smov 64  }
  0x13   : > { %v312_v20 = vsel %vm248_vm0, %v216_v8, %v280_v13  ;;  %v276_v22 = vmul.f32 0.2, %v212_v12  ;;  %vm245_vm5 = vcmp.ge.f32.partialorder %v5920_v15, 0.0  ;;  %v277_v30 = vmul.f32 0.2, %v5920_v15  ;;  %s5864_s12 = smov 40  }
  0x14   : > { %v565_v16 = vcombine.high %v557_v10, %v557_v10  ;;  %v566_v17 = vcombine.high %v564_v11, %v564_v11  ;;  %v573_v18 = vrot.slane %v557_v10, %v5906_v7  ;;  %v580_v19 = vrot.slane %v564_v11, %v5906_v7  ;;  %s5865_s29 = smov 120   ;;  %s5866_s30 = smov 124  }
  0x15   : > { %v313_v21 = vsel %vm249_vm1, %v217_v9, %v281_v14  ;;  %v308_v54 = vsel %vm244_vm3, %v212_v12, %v276_v22  ;;  %v309_v9 = vsel %vm245_vm5, %v5920_v15, %v277_v30  ;;  %v221_v14 = vld [vmem:[%s5911_s20 + $0x58] sm:$0xff]  ;;  %vm252_vm14 = vcmp.ge.f32.partialorder %v220_v3, 0.0  ;;  %s5691_s6 = sshll.u32 %s8364_s16, 1 }
  0x16   : > { %v587_v23 = vrot.slane %v565_v16, %v5906_v7  ;;  %v594_v24 = vrot.slane %v566_v17, %v5906_v7  ;;  %v595_v25 = vcombine.high %v573_v18, %v573_v18  ;;  %v596_v26 = vcombine.high %v580_v19, %v580_v19 }
  0x17   : > { %v1629_v27 = vrot.slane %v573_v18, %v5906_v7  ;;  %v1685_v28 = vrot.slane %v580_v19, %v5906_v7  ;;  %v341_v29 = vpack.c.bf16 %v313_v21, %v312_v20  ;;  %v339_v13 = vpack.c.bf16 %v309_v9, %v308_v54 }
  0x18   : > { %v597_v31 = vcombine.high %v587_v23, %v587_v23  ;;  %v598_v32 = vcombine.high %v594_v24, %v594_v24  ;;  %v1643_v33 = vrot.slane %v587_v23, %v5906_v7  ;;  %v1657_v34 = vrot.slane %v595_v25, %v5906_v7 }
  0x19   : > { %v1636_v35 = vrot.slane %v1629_v27, %v5906_v7  ;;  %v5934_v36 = vrot.slane %v1685_v28, %v5906_v7  ;;  %v1699_v37 = vrot.slane %v594_v24, %v5906_v7  ;;  %v1713_v38 = vrot.slane %v596_v26, %v5906_v7 }
  0x1a   : > { %v1650_v39 = vrot.slane %v1643_v33, %v5906_v7  ;;  %v1664_v40 = vrot.slane %v1657_v34, %v5906_v7  ;;  %v1671_v41 = vrot.slane %v597_v31, %v5906_v7  ;;  %v1727_v42 = vrot.slane %v598_v32, %v5906_v7 }
  0x1b   : > { %v5943_v43 = vrot.slane %v1699_v37, %v5906_v7  ;;  %v1720_v44 = vrot.slane %v1713_v38, %v5906_v7  ;;  %v5946_v45 = vunpack.c.l.b16 %v1636_v35  ;;  %v8096_v46 = vunpack.c.l.b16 %v5934_v36 }
  0x1c   : > { %v1678_v47 = vrot.slane %v1671_v41, %v5906_v7  ;;  %v1734_v48 = vrot.slane %v1727_v42, %v5906_v7  ;;  %v2744_v49 = vunpack.c.l.b16 %v1650_v39  ;;  %v2745_v50 = vunpack.c.l.b16 %v1664_v40 }
  0x1d   : > { %8192 = vst [vmem:[#allocation2_spill] sm:$0xff] %v5946_v45  ;;  %v8095_v51 = vunpack.c.l.b16 %v5943_v43  ;;  %v5952_v52 = vunpack.c.l.b16 %v1720_v44  ;;  %v2965_v53 = vrot.slane %v5946_v45, 1  ;;  %v2971_v61 = vrot.slane %v8096_v46, 5 }
  0x1e   : > { %v5956_v55 = vunpack.c.l.b16 %v1678_v47  ;;  %v5958_v56 = vunpack.c.l.b16 %v1734_v48  ;;  %v2823_v57 = vrot.slane %v2744_v49, 7  ;;  %v2826_v58 = vrot.slane %v2745_v50, 6 }
  0x1f   : > { %v2966_v59 = vsel %vm2824_vm2, %v2744_v49, %v2965_v53  ;;  %v2967_v60 = vrot.slane %v2745_v50, 7  ;;  %v2973_v62 = vrot.slane %v8095_v51, 4  ;;  %v2975_v1 = vrot.slane %v5952_v52, 3 }
  0x20   : > { %8193 = vst [vmem:[#allocation3_spill] sm:$0xff] %v5958_v56  ;;  %v2825_v63 = vsel %vm2824_vm2, %v2823_v57, %v5946_v45  ;;  %v2969_v0 = vrot.slane %v5956_v55, 6  ;;  %v376_v2 = vshrl.u32 %v341_v29, 16  ;;  %v379_v8 = vshll.u32 %v341_v29, 16 }
  0x21   : > { %v5971_v5 = vsel %vm2827_vm4, %v2826_v58, %v2825_v63  ;;  %v2968_v6 = vsel %vm2827_vm4, %v2967_v60, %v2966_v59  ;;  %v2977_v11 = vrot.slane %v5958_v56, 2  ;;  %v8194_v17 = vmov 0 }
  0x22   : > { %v2970_v10 = vsel %vm2830_vm6, %v2969_v0, %v2968_v6  ;;  %v378_v12 = vrot.slane %v376_v2, 7  ;;  %v8195_v17 = vsel %vm5983_vm13, 4294967295, %v8194_v17  ;;  %v284_v18 = vmul.f32 0.2, %v220_v3 }
  0x23   : > { %v2972_v16 = vsel %vm2833_vm7, %v2971_v61, %v2970_v10  ;;  %8196 = vst [vmem:[#allocation4_spill] sm:$0xff] %v8195_v17  ;;  %v362_v21 = vshrl.u32 %v339_v13, 16  ;;  %v365_v24 = vshll.u32 %v339_v13, 16  ;;  %v285_v25 = vmul.f32 0.2, %v221_v14 }
  0x24   : > { %v2974_v15 = vsel %vm2836_vm10, %v2973_v62, %v2972_v16  ;;  %v381_v19 = vor.u32 %v379_v8, %v378_v12  ;;  %v520_v20 = vsel %vm5983_vm13, %v378_v12, 0  ;;  %vm253_vm15 = vcmp.ge.f32.partialorder %v221_v14, 0.0 }
  0x25   : > { %v2976_v22 = vsel %vm2839_vm11, %v2975_v1, %v2974_v15  ;;  %v717_v23 = vrot.slane %v520_v20, %v5906_v7  ;;  %v364_v28 = vrot.slane %v362_v21, 7  ;;  %v316_v34 = vsel %vm252_vm14, %v220_v3, %v284_v18 }
  0x26   : > { %v2978_v26 = vsel %vm2842_vm12, %v2977_v11, %v2976_v22  ;;  %v504_v27 = vsel %vm5983_vm13, 0, %v381_v19  ;;  %v317_v39 = vsel %vm253_vm15, %v221_v14, %v285_v25 }
  0x27   : > { %v5995_v29 = vpack.c.b16 %v2965_v53, %v2978_v26  ;;  %v662_v30 = vcombine.high %v504_v27, %v504_v27  ;;  %v669_v31 = vrot.slane %v504_v27, %v5906_v7  ;;  %v724_v32 = vrot.slane %v717_v23, %v5906_v7 }
  0x28   : > { %v367_v33 = vor.u32 %v365_v24, %v364_v28  ;;  %v518_v50 = vsel %vm5983_vm13, %v364_v28, 0  ;;  %v6012_v53 = vpack.c.bf16 %v317_v39, %v316_v34 }
  0x29   : > { %8197 = vst [vmem:[#allocation5_spill] sm:$0xff] %v5995_v29  ;;  %3108 = vrot.lane.b32.xlu0 %v5995_v29, %s5855_s21  ;;  %v676_v35 = vrot.slane %v662_v30, %v5906_v7  ;;  %v677_v37 = vcombine.high %v669_v31, %v669_v31  ;;  %v685_v38 = vrot.slane %v669_v31, %v5906_v7 }
  0x2a   : > { %v1979_v40 = vrot.slane %v724_v32, %v5906_v7  ;;  %v502_v49 = vsel %vm5983_vm13, 0, %v367_v33  ;;  %v654_v31 = vrot.slane %v518_v50, %v5906_v7  ;;  %v390_v32 = vshrl.u32 %v6012_v53, 16 }
  0x2b   : > { %v678_v41 = vcombine.high %v676_v35, %v676_v35  ;;  %v692_v42 = vrot.slane %v676_v35, %v5906_v7  ;;  %v699_v44 = vrot.slane %v677_v37, %v5906_v7  ;;  %v707_v47 = vcombine.high %v685_v38, %v685_v38 }
  0x2c   : > { %v1867_v48 = vrot.slane %v685_v38, %v5906_v7  ;;  %v1986_v63 = vrot.slane %v1979_v40, %v5906_v7  ;;  %v599_v23 = vcombine.high %v502_v49, %v502_v49  ;;  %v606_v27 = vrot.slane %v502_v49, %v5906_v7 }
  0x2d   : > { %v706_v54 = vrot.slane %v678_v41, %v5906_v7  ;;  %v708_v57 = vcombine.high %v692_v42, %v692_v42  ;;  %v709_v58 = vcombine.high %v699_v44, %v699_v44  ;;  %v1881_v59 = vrot.slane %v699_v44, %v5906_v7 }
  0x2e   : > { %v6017_v60 = vrot.slane %v1867_v48, %v5906_v7  ;;  %v1895_v61 = vrot.slane %v707_v47, %v5906_v7  ;;  %v1923_v62 = vrot.slane %v692_v42, %v5906_v7  ;;  %v6051_v25 = vunpack.c.l.b16 %v1986_v63 }
  0x2f   : > { %v710_v0 = vcombine.high %v706_v54, %v706_v54  ;;  %v6023_v1 = vrot.slane %v1881_v59, %v5906_v7  ;;  %v1909_v2 = vrot.slane %v709_v58, %v5906_v7  ;;  %v1937_v3 = vrot.slane %v706_v54, %v5906_v7 }
  0x30   : > { %8198 = vst [vmem:[#allocation6_spill] sm:$0xff] %v6017_v60  ;;  %v1902_v6 = vrot.slane %v1895_v61, %v5906_v7  ;;  %v6029_v8 = vrot.slane %v1923_v62, %v5906_v7  ;;  %v1951_v9 = vrot.slane %v708_v57, %v5906_v7  ;;  %v8092_v10 = vunpack.c.l.b16 %v6017_v60  ;;  %8199 = vst [vmem:[#allocation7_spill] sm:$0xff] %v6051_v25 }
  0x31   : > { %v1916_v11 = vrot.slane %v1909_v2, %v5906_v7  ;;  %v6035_v12 = vrot.slane %v1937_v3, %v5906_v7  ;;  %v1965_v13 = vrot.slane %v710_v0, %v5906_v7  ;;  %v8101_v14 = vunpack.c.l.b16 %v6023_v1 }
  0x32   : > { %v1958_v16 = vrot.slane %v1951_v9, %v5906_v7  ;;  %v6040_v18 = vunpack.c.l.b16 %v1902_v6  ;;  %v8100_v15 = vunpack.c.l.b16 %v6029_v8  ;;  %v2994_v19 = vrot.slane %v8092_v10, 1  ;;  %v219_v10 = vld [vmem:[%s5911_s20 + $0x48] sm:$0xff] }
  0x33   : > { %v1972_v20 = vrot.slane %v1965_v13, %v5906_v7  ;;  %v6046_v21 = vunpack.c.l.b16 %v1916_v11  ;;  %v8099_v22 = vunpack.c.l.b16 %v6035_v12  ;;  %v393_v40 = vshll.u32 %v6012_v53, 16 }
  0x34   : > { %v6049_v24 = vunpack.c.l.b16 %v1958_v16  ;;  %v2995_v26 = vsel %vm2824_vm2, %v8101_v14, %v2994_v19  ;;  %v2996_v30 = vrot.slane %v6040_v18, 7  ;;  %v3000_v34 = vrot.slane %v8100_v15, 5 }
  0x35   : > { %v6057_v28 = vunpack.c.l.b16 %v1972_v20  ;;  %v2998_v33 = vrot.slane %v6046_v21, 6  ;;  %v3002_v35 = vrot.slane %v8099_v22, 4  ;;  %v3008_v42 = vrot.slane %v6051_v25, 1 }
  0x36   : > { %v2997_v37 = vsel %vm2827_vm4, %v2996_v30, %v2995_v26  ;;  %v3004_v38 = vrot.slane %v6049_v24, 3  ;;  %v613_v44 = vrot.slane %v599_v23, %v5906_v7  ;;  %v614_v47 = vcombine.high %v606_v27, %v606_v27 }
  0x37   : > { %v3006_v39 = vrot.slane %v6057_v28, 2  ;;  %v2999_v41 = vsel %vm2830_vm6, %v2998_v33, %v2997_v37  ;;  %v622_v49 = vrot.slane %v606_v27, %v5906_v7  ;;  %v661_v50 = vrot.slane %v654_v31, %v5906_v7 }
  0x38   : > { %v3001_v48 = vsel %vm2833_vm7, %v3000_v34, %v2999_v41  ;;  %v392_v54 = vrot.slane %v390_v32, 7  ;;  %v615_v58 = vcombine.high %v613_v44, %v613_v44  ;;  %v629_v59 = vrot.slane %v613_v44, %v5906_v7 }
  0x39   : > { %v3003_v57 = vsel %vm2836_vm10, %v3002_v35, %v3001_v48  ;;  %v636_v53 = vrot.slane %v614_v47, %v5906_v7  ;;  %v644_v62 = vcombine.high %v622_v49, %v622_v49  ;;  %v1741_v63 = vrot.slane %v622_v49, %v5906_v7 }
  0x3a   : > { %v3005_v61 = vsel %vm2839_vm11, %v3004_v38, %v3003_v57  ;;  %v1853_v0 = vrot.slane %v661_v50, %v5906_v7  ;;  %v643_v3 = vrot.slane %v615_v58, %v5906_v7  ;;  %v645_v6 = vcombine.high %v629_v59, %v629_v59  ;;  %v210_v57 = vld [vmem:[%s5911_s20] sm:$0xff] }
  0x3b   : > { %v3007_v2 = vsel %vm2842_vm12, %v3006_v39, %v3005_v61  ;;  %v646_v9 = vcombine.high %v636_v53, %v636_v53  ;;  %v6086_v13 = vrot.slane %v1741_v63, %v5906_v7  ;;  %v1755_v16 = vrot.slane %v636_v53, %v5906_v7 }
  0x3c   : > { %v3101_v11 = vpack.c.b16 %v3008_v42, %v3007_v2  ;;  %v1769_v19 = vrot.slane %v644_v62, %v5906_v7  ;;  %v647_v20 = vcombine.high %v643_v3, %v643_v3  ;;  %v1797_v26 = vrot.slane %v629_v59, %v5906_v7  ;;  %v211_v2 = vld [vmem:[%s5911_s20 + $0x8] sm:$0xff] }
  0x3d   : > { %8200 = vst [vmem:[#allocation8_spill] sm:$0xff] %v6086_v13  ;;  %v1783_v23 = vrot.slane %v646_v9, %v5906_v7  ;;  %v1811_v27 = vrot.slane %v643_v3, %v5906_v7  ;;  %v6095_v30 = vrot.slane %v1755_v16, %v5906_v7  ;;  %v1825_v32 = vrot.slane %v645_v6, %v5906_v7 }
  0x3e   : > { %3112 = vrot.lane.b32.xlu1 %v3101_v11, %s5855_s21  ;;  %v1776_v31 = vrot.slane %v1769_v19, %v5906_v7  ;;  %v1860_v33 = vrot.slane %v1853_v0, %v5906_v7  ;;  %v6102_v35 = vrot.slane %v1797_v26, %v5906_v7  ;;  %v1839_v38 = vrot.slane %v647_v20, %v5906_v7 }
  0x3f   : > { %v1790_v34 = vrot.slane %v1783_v23, %v5906_v7  ;;  %v6105_v37 = vrot.slane %v1811_v27, %v5906_v7  ;;  %v1832_v39 = vrot.slane %v1825_v32, %v5906_v7  ;;  %v8091_v41 = vunpack.c.l.b16 %v6086_v13 }
  0x40   : > { %8201 = vst [vmem:[#allocation9_spill] sm:$0xff] %v6102_v35  ;;  %v8098_v42 = vunpack.c.l.b16 %v6095_v30  ;;  %v6111_v44 = vunpack.c.l.b16 %v1776_v31  ;;  %v1846_v47 = vrot.slane %v1839_v38, %v5906_v7  ;;  %v8090_v49 = vunpack.c.l.b16 %v6102_v35 }
  0x41   : > { %8202 = vst [vmem:[#allocation10_spill] sm:$0xff] %v6105_v37  ;;  %v6114_v48 = vunpack.c.l.b16 %v1790_v34  ;;  %v8089_v50 = vunpack.c.l.b16 %v6105_v37  ;;  %v6119_v58 = vunpack.c.l.b16 %v1832_v39  ;;  %v6121_v59 = vunpack.c.l.b16 %v1860_v33 }
  0x42   : > { %8203 = vst [vmem:[#allocation11_spill] sm:$0xff] %v6111_v44  ;;  %v2979_v53 = vrot.slane %v8091_v41, 1  ;;  %v6125_v61 = vunpack.c.l.b16 %v1846_v47  ;;  %v2981_v62 = vrot.slane %v6111_v44, 7  ;;  %v2985_v0 = vrot.slane %v8090_v49, 5 }
  0x43   : > { %8204 = vst [vmem:[#allocation12_spill] sm:$0xff] %v6114_v48  ;;  %8205 = vst [vmem:[#allocation13_spill] sm:$0xff] %v6119_v58  ;;  %v2983_v63 = vrot.slane %v6114_v48, 6  ;;  %v2987_v6 = vrot.slane %v8089_v50, 4  ;;  %v2989_v9 = vrot.slane %v6119_v58, 3  ;;  %vm242_vm0 = vcmp.ge.f32.partialorder %v210_v57, 0.0 }
  0x44   : > { %8206 = vst [vmem:[#allocation14_spill] sm:$0xff] %v6121_v59  ;;  %8207 = vst [vmem:[#allocation15_spill] sm:$0xff] %v6125_v61  ;;  %v2980_v3 = vsel %vm2824_vm2, %v8098_v42, %v2979_v53  ;;  %v2991_v16 = vrot.slane %v6125_v61, 2  ;;  %v395_v19 = vor.u32 %v393_v40, %v392_v54  ;;  %v522_v20 = vsel %vm5983_vm13, %v392_v54, 0 }
  0x45   : > { %v2982_v11 = vsel %vm2827_vm4, %v2981_v62, %v2980_v3  ;;  %v780_v26 = vrot.slane %v522_v20, %v5906_v7  ;;  %vm243_vm1 = vcmp.ge.f32.partialorder %v211_v2, 0.0  ;;  %v274_v27 = vmul.f32 0.2, %v210_v57 }
  0x46   : > { %v2984_v23 = vsel %vm2830_vm6, %v2983_v63, %v2982_v11  ;;  %v2993_v32 = vrot.slane %v6121_v59, 1  ;;  %v506_v33 = vsel %vm5983_vm13, 0, %v395_v19  ;;  %v275_v34 = vmul.f32 0.2, %v211_v2  ;;  %v214_v19 = vld [vmem:[%s5911_s20 + $0x20] sm:$0xff] }
  0x47   : > { %v2986_v31 = vsel %vm2833_vm7, %v2985_v0, %v2984_v23  ;;  %v725_v38 = vcombine.high %v506_v33, %v506_v33  ;;  %v732_v54 = vrot.slane %v506_v33, %v5906_v7  ;;  %v787_v39 = vrot.slane %v780_v26, %v5906_v7 }
  0x48   : > { %v2988_v40 = vsel %vm2836_vm10, %v2987_v6, %v2986_v31  ;;  %v306_v53 = vsel %vm242_vm0, %v210_v57, %v274_v27  ;;  %v307_v62 = vsel %vm243_vm1, %v211_v2, %v275_v34  ;;  %v215_v31 = vld [vmem:[%s5911_s20 + $0x28] sm:$0xff]  ;;  %vm246_vm3 = vcmp.ge.f32.partialorder %v214_v19, 0.0 }
  0x49   : > { %v2990_v47 = vsel %vm2839_vm11, %v2989_v9, %v2988_v40  ;;  %v739_v0 = vrot.slane %v725_v38, %v5906_v7  ;;  %v740_v3 = vcombine.high %v732_v54, %v732_v54  ;;  %v748_v11 = vrot.slane %v732_v54, %v5906_v7 }
  0x4a   : > { %v2992_v63 = vsel %vm2842_vm12, %v2991_v16, %v2990_v47  ;;  %v2105_v6 = vrot.slane %v787_v39, %v5906_v7  ;;  %v338_v23 = vpack.c.bf16 %v307_v62, %v306_v53  ;;  %v278_v34 = vmul.f32 0.2, %v214_v19 }
  0x4b   : > { %v3100_v20 = vpack.c.b16 %v2993_v32, %v2992_v63  ;;  %v741_v33 = vcombine.high %v739_v0, %v739_v0  ;;  %v755_v26 = vrot.slane %v739_v0, %v5906_v7  ;;  %v762_v9 = vrot.slane %v740_v3, %v5906_v7 }
  0x4c   : > { %v770_v57 = vcombine.high %v748_v11, %v748_v11  ;;  %v1993_v2 = vrot.slane %v748_v11, %v5906_v7  ;;  %v2112_v16 = vrot.slane %v2105_v6, %v5906_v7  ;;  %v355_v27 = vshrl.u32 %v338_v23, 16 }
  0x4d   : > { %3110 = vrot.lane.b32.xlu0 %v3100_v20, %s5855_s21  ;;  %v769_v32 = vrot.slane %v741_v33, %v5906_v7  ;;  %v771_v40 = vcombine.high %v755_v26, %v755_v26  ;;  %v772_v38 = vcombine.high %v762_v9, %v762_v9  ;;  %v2007_v54 = vrot.slane %v762_v9, %v5906_v7 }
  0x4e   : > { %vm247_vm5 = vcmp.ge.f32.partialorder %v215_v31, 0.0  ;;  %v6167_v39 = vrot.slane %v1993_v2, %v5906_v7  ;;  %v2021_v47 = vrot.slane %v770_v57, %v5906_v7  ;;  %v2049_v53 = vrot.slane %v755_v26, %v5906_v7 }
  0x4f   : > { %v6171_v62 = vunpack.c.l.b16 %v2112_v16  ;;  %v773_v63 = vcombine.high %v769_v32, %v769_v32  ;;  %v6174_v0 = vrot.slane %v2007_v54, %v5906_v7  ;;  %v2035_v3 = vrot.slane %v772_v38, %v5906_v7 }
  0x50   : > { %8208 = vst [vmem:[#allocation16_spill] sm:$0xff] %v6167_v39  ;;  %v2063_v11 = vrot.slane %v769_v32, %v5906_v7  ;;  %v2028_v20 = vrot.slane %v2021_v47, %v5906_v7  ;;  %v6180_v6 = vrot.slane %v2049_v53, %v5906_v7  ;;  %v2077_v33 = vrot.slane %v771_v40, %v5906_v7 }
  0x51   : > { %8209 = vst [vmem:[#allocation17_spill] sm:$0xff] %v6171_v62  ;;  %8210 = vst [vmem:[#allocation18_spill] sm:$0xff] %v6174_v0  ;;  %v8088_v9 = vunpack.c.l.b16 %v6167_v39  ;;  %v2042_v26 = vrot.slane %v2035_v3, %v5906_v7  ;;  %v2091_v2 = vrot.slane %v773_v63, %v5906_v7  ;;  %v8093_v16 = vunpack.c.l.b16 %v6174_v0 }
  0x52   : > { %8211 = vst [vmem:[#allocation19_spill] sm:$0xff] %v6180_v6  ;;  %v6186_v57 = vrot.slane %v2063_v11, %v5906_v7  ;;  %v2084_v32 = vrot.slane %v2077_v33, %v5906_v7  ;;  %v6191_v38 = vunpack.c.l.b16 %v2028_v20  ;;  %v8094_v54 = vunpack.c.l.b16 %v6180_v6 }
  0x53   : > { %v3009_v40 = vrot.slane %v8088_v9, 1  ;;  %v2098_v47 = vrot.slane %v2091_v2, %v5906_v7  ;;  %v6197_v53 = vunpack.c.l.b16 %v2042_v26  ;;  %v358_v11 = vshll.u32 %v338_v23, 16  ;;  %v218_v9 = vld [vmem:[%s5911_s20 + $0x40] sm:$0xff] }
  0x54   : > { %8212 = vst [vmem:[#allocation20_spill] sm:$0xff] %v6186_v57  ;;  %8213 = vst [vmem:[#allocation21_spill] sm:$0xff] %v6191_v38  ;;  %v8097_v3 = vunpack.c.l.b16 %v6186_v57  ;;  %v6200_v63 = vunpack.c.l.b16 %v2084_v32  ;;  %v3011_v33 = vrot.slane %v6191_v38, 7  ;;  %v3015_v4 = vrot.slane %v8094_v54, 5 }
  0x55   : > { %8214 = vst [vmem:[#allocation22_spill] sm:$0xff] %v6197_v53  ;;  %v3010_v20 = vsel %vm2824_vm2, %v8093_v16, %v3009_v40  ;;  %v6209_v50 = vunpack.c.l.b16 %v2098_v47  ;;  %v3013_v26 = vrot.slane %v6197_v53, 6  ;;  %v3023_v23 = vrot.slane %v6171_v62, 1 }
  0x56   : > { %8215 = vst [vmem:[#allocation23_spill] sm:$0xff] %v6200_v63  ;;  %v3017_v2 = vrot.slane %v8097_v3, 4  ;;  %v3012_v32 = vsel %vm2827_vm4, %v3011_v33, %v3010_v20  ;;  %v3019_v49 = vrot.slane %v6200_v63, 3  ;;  %v357_v40 = vrot.slane %v355_v27, 7 }
  0x57   : > { %8216 = vst [vmem:[#allocation24_spill] sm:$0xff] %v6209_v50  ;;  %v279_v41 = vmul.f32 0.2, %v215_v31  ;;  %v3014_v16 = vsel %vm2830_vm6, %v3013_v26, %v3012_v32  ;;  %v3021_v54 = vrot.slane %v6209_v50, 2  ;;  %v310_v47 = vsel %vm246_vm3, %v214_v19, %v278_v34 }
  0x58   : > { %vm250_vm9 = vcmp.ge.f32.partialorder %v218_v9, 0.0  ;;  %v3016_v51 = vsel %vm2833_vm7, %v3015_v4, %v3014_v16  ;;  %v360_v46 = vor.u32 %v358_v11, %v357_v40  ;;  %v517_v3 = vsel %vm5983_vm13, %v357_v40, 0 }
  0x59   : > { %v311_v20 = vsel %vm247_vm5, %v215_v31, %v279_v41  ;;  %v3018_v33 = vsel %vm2836_vm10, %v3017_v2, %v3016_v51  ;;  %v1174_v27 = vrot.slane %v517_v3, %v5906_v7  ;;  %vm251_vm14 = vcmp.ge.f32.partialorder %v219_v10, 0.0 }
  0x5a   : > { %v340_v42 = vpack.c.bf16 %v311_v20, %v310_v47  ;;  %v3020_v26 = vsel %vm2839_vm11, %v3019_v49, %v3018_v33  ;;  %v501_v19 = vsel %vm5983_vm13, 0, %v360_v46  ;;  %v282_v34 = vmul.f32 0.2, %v218_v9 }
  0x5b   : > { %v283_v32 = vmul.f32 0.2, %v219_v10  ;;  %v3022_v4 = vsel %vm2842_vm12, %v3021_v54, %v3020_v26  ;;  %v1119_v16 = vcombine.high %v501_v19, %v501_v19  ;;  %v1126_v11 = vrot.slane %v501_v19, %v5906_v7 }
  0x5c   : > { %v1181_v41 = vrot.slane %v1174_v27, %v5906_v7  ;;  %v3102_v31 = vpack.c.b16 %v3023_v23, %v3022_v4  ;;  %v369_v51 = vshrl.u32 %v340_v42, 16  ;;  %v372_v2 = vshll.u32 %v340_v42, 16 }
  0x5d   : > { %v1133_v3 = vrot.slane %v1119_v16, %v5906_v7  ;;  %v1134_v40 = vcombine.high %v1126_v11, %v1126_v11  ;;  %v1142_v49 = vrot.slane %v1126_v11, %v5906_v7  ;;  %v314_v54 = vsel %vm250_vm9, %v218_v9, %v282_v34 }
  0x5e   : > { %v3244_v47 = vrot.slane %v1181_v41, %v5906_v7  ;;  %3114 = vrot.lane.b32.xlu1 %v3102_v31, %s5855_s21  ;;  %v371_v46 = vrot.slane %v369_v51, 7  ;;  %v315_v20 = vsel %vm251_vm14, %v219_v10, %v283_v32 }
  0x5f   : > { %v1135_v33 = vcombine.high %v1133_v3, %v1133_v3  ;;  %v1149_v27 = vrot.slane %v1133_v3, %v5906_v7  ;;  %v1156_v23 = vrot.slane %v1134_v40, %v5906_v7  ;;  %v1164_v42 = vcombine.high %v1142_v49, %v1142_v49 }
  0x60   : > { %v3132_v26 = vrot.slane %v1142_v49, %v5906_v7  ;;  %v3251_v19 = vrot.slane %v3244_v47, %v5906_v7  ;;  %v374_v4 = vor.u32 %v372_v2, %v371_v46  ;;  %v519_v16 = vsel %vm5983_vm13, %v371_v46, 0 }
  0x61   : > { %v1163_v11 = vrot.slane %v1135_v33, %v5906_v7  ;;  %v1165_v41 = vcombine.high %v1149_v27, %v1149_v27  ;;  %v1166_v9 = vcombine.high %v1156_v23, %v1156_v23  ;;  %v3146_v10 = vrot.slane %v1156_v23, %v5906_v7 }
  0x62   : > { %v6248_v34 = vrot.slane %v3132_v26, %v5906_v7  ;;  %v3160_v32 = vrot.slane %v1164_v42, %v5906_v7  ;;  %v3188_v31 = vrot.slane %v1149_v27, %v5906_v7  ;;  %v6252_v51 = vunpack.c.l.b16 %v3251_v19 }
  0x63   : > { %v1167_v3 = vcombine.high %v1163_v11, %v1163_v11  ;;  %v6255_v2 = vrot.slane %v3146_v10, %v5906_v7  ;;  %v3174_v40 = vrot.slane %v1166_v9, %v5906_v7  ;;  %v3202_v49 = vrot.slane %v1163_v11, %v5906_v7 }
  0x64   : > { %v3167_v47 = vrot.slane %v3160_v32, %v5906_v7  ;;  %v6261_v46 = vrot.slane %v3188_v31, %v5906_v7  ;;  %v3216_v33 = vrot.slane %v1165_v41, %v5906_v7  ;;  %v8105_v23 = vunpack.c.l.b16 %v6248_v34 }
  0x65   : > { %v3181_v27 = vrot.slane %v3174_v40, %v5906_v7  ;;  %v6267_v42 = vrot.slane %v3202_v49, %v5906_v7  ;;  %v3230_v26 = vrot.slane %v1167_v3, %v5906_v7  ;;  %v8102_v19 = vunpack.c.l.b16 %v6255_v2 }
  0x66   : > { %v3223_v11 = vrot.slane %v3216_v33, %v5906_v7  ;;  %v6272_v9 = vunpack.c.l.b16 %v3167_v47  ;;  %v8103_v10 = vunpack.c.l.b16 %v6261_v46  ;;  %v503_v41 = vsel %vm5983_vm13, 0, %v374_v4 }
  0x67   : > { %v3237_v32 = vrot.slane %v3230_v26, %v5906_v7  ;;  %v6278_v31 = vunpack.c.l.b16 %v3181_v27  ;;  %v8106_v40 = vunpack.c.l.b16 %v6267_v42  ;;  %v4206_v3 = vrot.slane %v8102_v19, 7 }
  0x68   : > { %v6283_v49 = vunpack.c.l.b16 %v3223_v11  ;;  %v4208_v33 = vrot.slane %v6272_v9, 6  ;;  %v4212_v47 = vrot.slane %v8103_v10, 4  ;;  %v1182_v22 = vcombine.high %v503_v41, %v503_v41 }
  0x69   : > { %v6288_v15 = vunpack.c.l.b16 %v3237_v32  ;;  %v4207_v4 = vsel %vm2824_vm2, %v4206_v3, %v8105_v23  ;;  %v4210_v27 = vrot.slane %v6278_v31, 5  ;;  %v4214_v26 = vrot.slane %v8106_v40, 3 }
  0x6a   : > { %v4209_v11 = vsel %vm2827_vm4, %v4208_v33, %v4207_v4  ;;  %v4216_v14 = vrot.slane %v6283_v49, 2  ;;  %v1189_v19 = vrot.slane %v503_v41, %v5906_v7  ;;  %v1196_v10 = vrot.slane %v1182_v22, %v5906_v7 }
  0x6b   : > { %v4211_v32 = vsel %vm2830_vm6, %v4210_v27, %v4209_v11  ;;  %v4218_v62 = vrot.slane %v6288_v15, 1  ;;  %v1237_v3 = vrot.slane %v519_v16, %v5906_v7  ;;  %v6303_v23 = vpack.c.bf16 %v315_v20, %v314_v54  ;;  %v222_v11 = vld [vmem:[%s5911_s20 + $0x60] sm:$0xff] }
  0x6c   : > { %v4213_v40 = vsel %vm2833_vm7, %v4212_v47, %v4211_v32  ;;  %v1197_v59 = vcombine.high %v1189_v19, %v1189_v19  ;;  %v1198_v33 = vcombine.high %v1196_v10, %v1196_v10  ;;  %v1205_v4 = vrot.slane %v1189_v19, %v5906_v7  ;;  %v223_v47 = vld [vmem:[%s5911_s20 + $0x68] sm:$0xff] }
  0x6d   : > { %v4215_v29 = vsel %vm2836_vm10, %v4214_v26, %v4213_v40  ;;  %v1212_v41 = vrot.slane %v1196_v10, %v5906_v7  ;;  %v1244_v22 = vrot.slane %v1237_v3, %v5906_v7  ;;  %v383_v27 = vshrl.u32 %v6303_v23, 16 }
  0x6e   : > { %v4217_v50 = vsel %vm2839_vm11, %v4216_v14, %v4215_v29  ;;  %v1219_v54 = vrot.slane %v1197_v59, %v5906_v7  ;;  %v1226_v20 = vrot.slane %v1198_v33, %v5906_v7  ;;  %v1227_v16 = vcombine.high %v1205_v4, %v1205_v4 }
  0x6f   : > { %v4219_v32 = vsel %vm2842_vm12, %v4218_v62, %v4217_v50  ;;  %v1228_v19 = vcombine.high %v1212_v41, %v1212_v41  ;;  %v3258_v40 = vrot.slane %v1205_v4, %v5906_v7  ;;  %v3314_v10 = vrot.slane %v1212_v41, %v5906_v7 }
  0x70   : > { %v4318_v26 = vpack.c.b16 %v6252_v51, %v4219_v32  ;;  %v1229_v3 = vcombine.high %v1219_v54, %v1219_v54  ;;  %v1230_v63 = vcombine.high %v1226_v20, %v1226_v20  ;;  %v3272_v57 = vrot.slane %v1219_v54, %v5906_v7 }
  0x71   : > { %vm254_vm15 = vcmp.ge.f32.partialorder %v222_v11, 0.0  ;;  %v6322_v29 = vrot.slane %v3258_v40, %v5906_v7  ;;  %v3286_v14 = vrot.slane %v1227_v16, %v5906_v7  ;;  %v6326_v59 = vrot.slane %v3314_v10, %v5906_v7 }
  0x72   : > { %v3328_v50 = vrot.slane %v1226_v20, %v5906_v7  ;;  %vm255_vm0 = vcmp.ge.f32.partialorder %v223_v47, 0.0  ;;  %4326 = vrot.lane.b32.xlu0 %v4318_v26, %s5856_s22  ;;  %v6331_v62 = vrot.slane %v3272_v57, %v5906_v7  ;;  %v3300_v33 = vrot.slane %v1229_v3, %v5906_v7 }
  0x73   : > { %v3342_v4 = vrot.slane %v1228_v19, %v5906_v7  ;;  %v3356_v41 = vrot.slane %v1230_v63, %v5906_v7  ;;  %v3293_v54 = vrot.slane %v3286_v14, %v5906_v7  ;;  %v3370_v20 = vrot.slane %v1244_v22, %v5906_v7 }
  0x74   : > { %v6338_v16 = vrot.slane %v3328_v50, %v5906_v7  ;;  %v3307_v40 = vrot.slane %v3300_v33, %v5906_v7  ;;  %v8113_v26 = vunpack.c.l.b16 %v6331_v62  ;;  %v8117_v3 = vunpack.c.l.b16 %v6326_v59 }
  0x75   : > { %v3349_v57 = vrot.slane %v3342_v4, %v5906_v7  ;;  %v3363_v10 = vrot.slane %v3356_v41, %v5906_v7  ;;  %v3377_v19 = vrot.slane %v3370_v20, %v5906_v7  ;;  %v6347_v63 = vunpack.c.l.b16 %v3293_v54 }
  0x76   : > { %v8119_v14 = vunpack.c.l.b16 %v6338_v16  ;;  %v6351_v50 = vunpack.c.l.b16 %v3307_v40  ;;  %v4220_v33 = vrot.slane %v8113_v26, 7  ;;  %v4226_v54 = vrot.slane %v8117_v3, 4 }
  0x77   : > { %v6353_v22 = vunpack.c.l.b16 %v3349_v57  ;;  %v6355_v32 = vunpack.c.l.b16 %v3363_v10  ;;  %v6359_v4 = vunpack.c.l.b16 %v3377_v19  ;;  %v4222_v41 = vrot.slane %v6347_v63, 6 }
  0x78   : > { %v4228_v20 = vrot.slane %v8119_v14, 3  ;;  %v8217_v40 = vunpack.c.l.b16 %v6322_v29  ;;  %v4224_v10 = vrot.slane %v6351_v50, 5  ;;  %v385_v6 = vrot.slane %v383_v27, 7 }
  0x79   : > { %v4230_v25 = vrot.slane %v6353_v22, 2  ;;  %v4232_v26 = vrot.slane %v6355_v32, 1  ;;  %v386_v53 = vshll.u32 %v6303_v23, 16  ;;  %v286_v38 = vmul.f32 0.2, %v222_v11 }
  0x7a   : > { %v4221_v57 = vsel %vm2824_vm2, %v4220_v33, %v8217_v40  ;;  %v287_v39 = vmul.f32 0.2, %v223_v47  ;;  %v8218_v14 = vunpack.c.l.b16 %v6248_v34  ;;  %v4346_v33 = vrot.slane %v6272_v9, 7 }
  0x7b   : > { %v4223_v19 = vsel %vm2827_vm4, %v4222_v41, %v4221_v57  ;;  %v388_v58 = vor.u32 %v386_v53, %v385_v6  ;;  %v521_v45 = vsel %vm5983_vm13, %v385_v6, 0  ;;  %v318_v41 = vsel %vm254_vm15, %v222_v11, %v286_v38 }
  0x7c   : > { %v4225_v3 = vsel %vm2830_vm6, %v4224_v10, %v4223_v19  ;;  %v4344_v61 = vrot.slane %v8218_v14, 1  ;;  %v1300_v23 = vrot.slane %v521_v45, %v5906_v7  ;;  %v319_v57 = vsel %vm255_vm0, %v223_v47, %v287_v39 }
  0x7d   : > { %v4227_v40 = vsel %vm2833_vm7, %v4226_v54, %v4225_v3  ;;  %v8219_v10 = vunpack.c.l.b16 %v6255_v2  ;;  %v505_v53 = vsel %vm5983_vm13, 0, %v388_v58  ;;  %v344_v3 = vpack.c.bf16 %v319_v57, %v318_v41 }
  0x7e   : > { %v4229_v27 = vsel %vm2836_vm10, %v4228_v20, %v4227_v40  ;;  %v1245_v11 = vcombine.high %v505_v53, %v505_v53  ;;  %v1252_v14 = vrot.slane %v505_v53, %v5906_v7  ;;  %v1307_v45 = vrot.slane %v1300_v23, %v5906_v7 }
  0x7f   : > { %v4345_v34 = vsel %vm2824_vm2, %v8219_v10, %v4344_v61  ;;  %v4231_v9 = vsel %vm2839_vm11, %v4230_v25, %v4229_v27  ;;  %v397_v2 = vshrl.u32 %v344_v3, 16  ;;  %v400_v47 = vshll.u32 %v344_v3, 16 }
  0x80   : > { %v4347_v6 = vsel %vm2827_vm4, %v4346_v33, %v4345_v34  ;;  %v4233_v38 = vsel %vm2842_vm12, %v4232_v26, %v4231_v9  ;;  %v4348_v61 = vrot.slane %v6278_v31, 6  ;;  %v1259_v25 = vrot.slane %v1245_v11, %v5906_v7 }
  0x81   : > { %v4319_v39 = vpack.c.b16 %v6359_v4, %v4233_v38  ;;  %v1260_v54 = vcombine.high %v1252_v14, %v1252_v14  ;;  %v1268_v58 = vrot.slane %v1252_v14, %v5906_v7  ;;  %v3496_v20 = vrot.slane %v1307_v45, %v5906_v7 }
  0x82   : > { %v399_v26 = vrot.slane %v397_v2, 7  ;;  %v4349_v19 = vsel %vm2830_vm6, %v4348_v61, %v4347_v6  ;;  %v8220_v33 = vunpack.c.l.b16 %v6261_v46  ;;  %v8221_v41 = vunpack.c.l.b16 %v6267_v42 }
  0x83   : > { %4328 = vrot.lane.b32.xlu1 %v4319_v39, %s5856_s22  ;;  %v1261_v23 = vcombine.high %v1259_v25, %v1259_v25  ;;  %v1275_v31 = vrot.slane %v1259_v25, %v5906_v7  ;;  %v1282_v57 = vrot.slane %v1260_v54, %v5906_v7  ;;  %v1290_v10 = vcombine.high %v1268_v58, %v1268_v58 }
  0x84   : > { %v4350_v40 = vrot.slane %v8220_v33, 5  ;;  %v4352_v27 = vrot.slane %v8221_v41, 4  ;;  %v3384_v34 = vrot.slane %v1268_v58, %v5906_v7  ;;  %v3503_v9 = vrot.slane %v3496_v20, %v5906_v7 }
  0x85   : > { %v402_v53 = vor.u32 %v400_v47, %v399_v26  ;;  %v523_v3 = vsel %vm5983_vm13, %v399_v26, 0  ;;  %v1289_v46 = vrot.slane %v1261_v23, %v5906_v7  ;;  %v1291_v6 = vcombine.high %v1275_v31, %v1275_v31 }
  0x86   : > { %v1292_v38 = vcombine.high %v1282_v57, %v1282_v57  ;;  %v3398_v42 = vrot.slane %v1282_v57, %v5906_v7  ;;  %v6415_v11 = vrot.slane %v3384_v34, %v5906_v7  ;;  %v3412_v14 = vrot.slane %v1290_v10, %v5906_v7 }
  0x87   : > { %v3440_v45 = vrot.slane %v1275_v31, %v5906_v7  ;;  %v6419_v39 = vunpack.c.l.b16 %v3503_v9  ;;  %v1293_v2 = vcombine.high %v1289_v46, %v1289_v46  ;;  %v3454_v25 = vrot.slane %v1289_v46, %v5906_v7 }
  0x88   : > { %v6422_v47 = vrot.slane %v3398_v42, %v5906_v7  ;;  %v3426_v61 = vrot.slane %v1292_v38, %v5906_v7  ;;  %v3419_v54 = vrot.slane %v3412_v14, %v5906_v7  ;;  %v3468_v20 = vrot.slane %v1291_v6, %v5906_v7 }
  0x89   : > { %v6428_v58 = vrot.slane %v3440_v45, %v5906_v7  ;;  %v8126_v26 = vunpack.c.l.b16 %v6415_v11  ;;  %v6434_v41 = vrot.slane %v3454_v25, %v5906_v7  ;;  %v3482_v23 = vrot.slane %v1293_v2, %v5906_v7 }
  0x8a   : > { %v3433_v33 = vrot.slane %v3426_v61, %v5906_v7  ;;  %v8123_v31 = vunpack.c.l.b16 %v6422_v47  ;;  %v3475_v57 = vrot.slane %v3468_v20, %v5906_v7  ;;  %v6439_v10 = vunpack.c.l.b16 %v3419_v54 }
  0x8b   : > { %v8124_v34 = vunpack.c.l.b16 %v6428_v58  ;;  %v507_v9 = vsel %vm5983_vm13, 0, %v402_v53  ;;  %v3489_v46 = vrot.slane %v3482_v23, %v5906_v7  ;;  %v8128_v38 = vunpack.c.l.b16 %v6434_v41 }
  0x8c   : > { %v6445_v6 = vunpack.c.l.b16 %v3433_v33  ;;  %v4234_v42 = vrot.slane %v8123_v31, 7  ;;  %v6450_v14 = vunpack.c.l.b16 %v3475_v57  ;;  %v4236_v45 = vrot.slane %v6439_v10, 6 }
  0x8d   : > { %v4240_v2 = vrot.slane %v8124_v34, 4  ;;  %v1308_v61 = vcombine.high %v507_v9, %v507_v9  ;;  %v6455_v25 = vunpack.c.l.b16 %v3489_v46  ;;  %v4242_v20 = vrot.slane %v8128_v38, 3 }
  0x8e   : > { %v4235_v53 = vsel %vm2824_vm2, %v4234_v42, %v8126_v26  ;;  %v4238_v54 = vrot.slane %v6445_v6, 5  ;;  %v4244_v23 = vrot.slane %v6450_v14, 2  ;;  %v1315_v57 = vrot.slane %v507_v9, %v5906_v7 }
  0x8f   : > { %v4237_v33 = vsel %vm2827_vm4, %v4236_v45, %v4235_v53  ;;  %v1322_v31 = vrot.slane %v1308_v61, %v5906_v7  ;;  %v4246_v34 = vrot.slane %v6455_v25, 1  ;;  %v1363_v37 = vrot.slane %v523_v3, %v5906_v7 }
  0x90   : > { %v4239_v46 = vsel %vm2830_vm6, %v4238_v54, %v4237_v33  ;;  %v4351_v42 = vsel %vm2833_vm7, %v4350_v40, %v4349_v19  ;;  %v1323_v35 = vcombine.high %v1315_v57, %v1315_v57  ;;  %v1331_v45 = vrot.slane %v1315_v57, %v5906_v7 }
  0x91   : > { %v4241_v26 = vsel %vm2833_vm7, %v4240_v2, %v4239_v46  ;;  %v1324_v38 = vcombine.high %v1322_v31, %v1322_v31  ;;  %v1338_v9 = vrot.slane %v1322_v31, %v5906_v7  ;;  %v1370_v61 = vrot.slane %v1363_v37, %v5906_v7 }
  0x92   : > { %v4243_v53 = vsel %vm2836_vm10, %v4242_v20, %v4241_v26  ;;  %v4353_v54 = vsel %vm2836_vm10, %v4352_v27, %v4351_v42  ;;  %v1345_v3 = vrot.slane %v1323_v35, %v5906_v7  ;;  %v1353_v40 = vcombine.high %v1331_v45, %v1331_v45 }
  0x93   : > { %v4245_v33 = vsel %vm2839_vm11, %v4244_v23, %v4243_v53  ;;  %v1352_v19 = vrot.slane %v1324_v38, %v5906_v7  ;;  %v1354_v46 = vcombine.high %v1338_v9, %v1338_v9  ;;  %v3510_v57 = vrot.slane %v1331_v45, %v5906_v7 }
  0x94   : > { %v4247_v2 = vsel %vm2842_vm12, %v4246_v34, %v4245_v33  ;;  %v3566_v26 = vrot.slane %v1338_v9, %v5906_v7  ;;  %v1355_v20 = vcombine.high %v1345_v3, %v1345_v3  ;;  %v3524_v27 = vrot.slane %v1345_v3, %v5906_v7 }
  0x95   : > { %v4320_v31 = vpack.c.b16 %v6419_v39, %v4247_v2  ;;  %v1356_v37 = vcombine.high %v1352_v19, %v1352_v19  ;;  %v6486_v23 = vrot.slane %v3510_v57, %v5906_v7  ;;  %v3538_v35 = vrot.slane %v1353_v40, %v5906_v7 }
  0x96   : > { %v6490_v38 = vrot.slane %v3566_v26, %v5906_v7  ;;  %v3580_v34 = vrot.slane %v1352_v19, %v5906_v7  ;;  %v6495_v42 = vrot.slane %v3524_v27, %v5906_v7  ;;  %v3552_v45 = vrot.slane %v1355_v20, %v5906_v7 }
  0x97   : > { %4330 = vrot.lane.b32.xlu0 %v4320_v31, %s5856_s22  ;;  %v3594_v53 = vrot.slane %v1354_v46, %v5906_v7  ;;  %v3608_v9 = vrot.slane %v1356_v37, %v5906_v7  ;;  %v3545_v33 = vrot.slane %v3538_v35, %v5906_v7  ;;  %v3622_v40 = vrot.slane %v1370_v61, %v5906_v7 }
  0x98   : > { %v6502_v3 = vrot.slane %v3580_v34, %v5906_v7  ;;  %v8134_v19 = vunpack.c.l.b16 %v6486_v23  ;;  %v3559_v2 = vrot.slane %v3552_v45, %v5906_v7  ;;  %v8129_v31 = vunpack.c.l.b16 %v6495_v42 }
  0x99   : > { %v3601_v57 = vrot.slane %v3594_v53, %v5906_v7  ;;  %v3615_v26 = vrot.slane %v3608_v9, %v5906_v7  ;;  %v3629_v46 = vrot.slane %v3622_v40, %v5906_v7  ;;  %v6511_v20 = vunpack.c.l.b16 %v3545_v33 }
  0x9a   : > { %v8131_v37 = vunpack.c.l.b16 %v6490_v38  ;;  %v8132_v27 = vunpack.c.l.b16 %v6502_v3  ;;  %v6515_v35 = vunpack.c.l.b16 %v3559_v2  ;;  %v4248_v45 = vrot.slane %v8129_v31, 7 }
  0x9b   : > { %v6517_v61 = vunpack.c.l.b16 %v3601_v57  ;;  %v6519_v34 = vunpack.c.l.b16 %v3615_v26  ;;  %v6523_v53 = vunpack.c.l.b16 %v3629_v46  ;;  %v4250_v9 = vrot.slane %v6511_v20, 6 }
  0x9c   : > { %v4254_v33 = vrot.slane %v8131_v37, 4  ;;  %v4256_v40 = vrot.slane %v8132_v27, 3  ;;  %v4249_v2 = vsel %vm2824_vm2, %v4248_v45, %v8134_v19  ;;  %v4252_v57 = vrot.slane %v6515_v35, 5 }
  0x9d   : > { %v4258_v26 = vrot.slane %v6517_v61, 2  ;;  %v4260_v46 = vrot.slane %v6519_v34, 1  ;;  %v4251_v31 = vsel %vm2827_vm4, %v4250_v9, %v4249_v2  ;;  %v4354_v48 = vrot.slane %v6283_v49, 3 }
  0x9e   : > { %v4356_v37 = vrot.slane %v6288_v15, 2  ;;  %v4358_v27 = vrot.slane %v6252_v51, 1  ;;  %v4253_v44 = vsel %vm2830_vm6, %v4252_v57, %v4251_v31  ;;  %v8222_v45 = vunpack.c.l.b16 %v6322_v29  ;;  %v224_v51 = vld [vmem:[%s5911_s20 + $0x70] sm:$0xff] }
  0x9f   : > { %v4361_v13 = vrot.slane %v6347_v63, 7  ;;  %v4363_v60 = vrot.slane %v6351_v50, 6  ;;  %v4255_v0 = vsel %vm2833_vm7, %v4254_v33, %v4253_v44  ;;  %v4355_v9 = vsel %vm2839_vm11, %v4354_v48, %v4353_v54  ;;  %v225_v44 = vld [vmem:[%s5911_s20 + $0x78] sm:$0xff] }
  0xa0   : > { %v4359_v19 = vrot.slane %v8222_v45, 1  ;;  %v8223_v49 = vunpack.c.l.b16 %v6326_v59  ;;  %v8224_v15 = vunpack.c.l.b16 %v6338_v16  ;;  %v4257_v31 = vsel %vm2836_vm10, %v4256_v40, %v4255_v0 }
  0xa1   : > { %v4357_v29 = vsel %vm2842_vm12, %v4356_v37, %v4355_v9  ;;  %v8225_v57 = vunpack.c.l.b16 %v6331_v62  ;;  %v4369_v50 = vrot.slane %v6353_v22, 3  ;;  %v4259_v48 = vsel %vm2839_vm11, %v4258_v26, %v4257_v31 }
  0xa2   : > { %v4365_v2 = vrot.slane %v8223_v49, 5  ;;  %v4367_v56 = vrot.slane %v8224_v15, 4  ;;  %v4464_v54 = vpack.c.b16 %v4358_v27, %v4357_v29  ;;  %v4371_v16 = vrot.slane %v6355_v32, 2 }
  0xa3   : > { %v4360_v63 = vsel %vm2824_vm2, %v8225_v57, %v4359_v19  ;;  %v4261_v33 = vsel %vm2842_vm12, %v4260_v46, %v4259_v48  ;;  %v4373_v37 = vrot.slane %v6359_v4, 1  ;;  %vm256_vm1 = vcmp.ge.f32.partialorder %v224_v51, 0.0 }
  0xa4   : > { %v4362_v59 = vsel %vm2827_vm4, %v4361_v13, %v4360_v63  ;;  %v4321_v62 = vpack.c.b16 %v6523_v53, %v4261_v33  ;;  %4472 = vrot.lane.b32.xlu0 %v4464_v54, %s5857_s23  ;;  %vm257_vm3 = vcmp.ge.f32.partialorder %v225_v44, 0.0  ;;  %v288_v19 = vmul.f32 0.2, %v224_v51 }
  0xa5   : > { %v4364_v0 = vsel %vm2830_vm6, %v4363_v60, %v4362_v59  ;;  %v289_v27 = vmul.f32 0.2, %v225_v44  ;;  %v8226_v32 = vunpack.c.l.b16 %v6415_v11  ;;  %v4376_v60 = vrot.slane %v6439_v10, 7 }
  0xa6   : > { %v4366_v22 = vsel %vm2833_vm7, %v4365_v2, %v4364_v0  ;;  %4332 = vrot.lane.b32.xlu1 %v4321_v62, %s5856_s22  ;;  %v320_v26 = vsel %vm256_vm1, %v224_v51, %v288_v19  ;;  %v4378_v46 = vrot.slane %v6445_v6, 6  ;;  %v8227_v45 = vunpack.c.l.b16 %v6428_v58 }
  0xa7   : > { %v4368_v13 = vsel %vm2836_vm10, %v4367_v56, %v4366_v22  ;;  %v4374_v40 = vrot.slane %v8226_v32, 1  ;;  %v321_v2 = vsel %vm257_vm3, %v225_v44, %v289_v27  ;;  %v8228_v56 = vunpack.c.l.b16 %v6422_v47 }
  0xa8   : > { %v4370_v4 = vsel %vm2839_vm11, %v4369_v50, %v4368_v13  ;;  %v4380_v9 = vrot.slane %v8227_v45, 5  ;;  %v8229_v15 = vunpack.c.l.b16 %v6434_v41  ;;  %v345_v29 = vpack.c.bf16 %v321_v2, %v320_v26  ;;  %v226_v13 = vld [vmem:[%s5911_s20 + $0x80] sm:$0xff] }
  0xa9   : > { %v4372_v49 = vsel %vm2842_vm12, %v4371_v16, %v4370_v4  ;;  %v4375_v11 = vsel %vm2824_vm2, %v8228_v56, %v4374_v40  ;;  %v4384_v51 = vrot.slane %v6450_v14, 3  ;;  %v4386_v58 = vrot.slane %v6455_v25, 2  ;;  %v227_v40 = vld [vmem:[%s5911_s20 + $0x88] sm:$0xff]  ;;  %v228_v56 = vld [vmem:[%s5911_s20 + $0x90] sm:$0xff] }
  0xaa   : > { %v4382_v10 = vrot.slane %v8229_v15, 4  ;;  %v4465_v31 = vpack.c.b16 %v4373_v37, %v4372_v49  ;;  %v4377_v57 = vsel %vm2827_vm4, %v4376_v60, %v4375_v11  ;;  %v4388_v63 = vrot.slane %v6419_v39, 1 }
  0xab   : > { %v4379_v6 = vsel %vm2830_vm6, %v4378_v46, %v4377_v57  ;;  %v8230_v50 = vunpack.c.l.b16 %v6486_v23  ;;  %v404_v41 = vshrl.u32 %v345_v29, 16  ;;  %v407_v44 = vshll.u32 %v345_v29, 16 }
  0xac   : > { %4474 = vrot.lane.b32.xlu1 %v4465_v31, %s5857_s23  ;;  %v4381_v48 = vsel %vm2833_vm7, %v4380_v9, %v4379_v6  ;;  %v4391_v54 = vrot.slane %v6511_v20, 7  ;;  %v8231_v59 = vunpack.c.l.b16 %v6495_v42  ;;  %v4393_v39 = vrot.slane %v6515_v35, 6 }
  0xad   : > { %v4389_v47 = vrot.slane %v8230_v50, 1  ;;  %v4383_v14 = vsel %vm2836_vm10, %v4382_v10, %v4381_v48  ;;  %v8232_v23 = vunpack.c.l.b16 %v6490_v38  ;;  %v406_v33 = vrot.slane %v404_v41, 7 }
  0xae   : > { %v4385_v0 = vsel %vm2839_vm11, %v4384_v51, %v4383_v14  ;;  %v8233_v62 = vunpack.c.l.b16 %v6502_v3  ;;  %v4399_v19 = vrot.slane %v6517_v61, 3  ;;  %v8234_v60 = vunpack.c.l.b16 %v6023_v1 }
  0xaf   : > { %v4390_v25 = vsel %vm2824_vm2, %v8231_v59, %v4389_v47  ;;  %v4395_v16 = vrot.slane %v8232_v23, 5  ;;  %v4387_v22 = vsel %vm2842_vm12, %v4386_v58, %v4385_v0  ;;  %v409_v27 = vor.u32 %v407_v44, %v406_v33  ;;  %v229_v58 = vld [vmem:[%s5911_s20 + $0x98] sm:$0xff] }
  0xb0   : > { %v4392_v37 = vsel %vm2827_vm4, %v4391_v54, %v4390_v25  ;;  %v4397_v20 = vrot.slane %v8233_v62, 4  ;;  %v524_v38 = vsel %vm5983_vm13, %v406_v33, 0  ;;  %v4466_v35 = vpack.c.b16 %v4388_v63, %v4387_v22 }
  0xb1   : > { %v4394_v42 = vsel %vm2830_vm6, %v4393_v39, %v4392_v37  ;;  %v6614_v3 = vrot.slane %v8234_v60, 7  ;;  %v843_v4 = vrot.slane %v524_v38, %v5906_v7  ;;  %v4401_v61 = vrot.slane %v6519_v34, 2 }
  0xb2   : > { %v4396_v32 = vsel %vm2833_vm7, %v4395_v16, %v4394_v42  ;;  %v508_v46 = vsel %vm5983_vm13, 0, %v409_v27  ;;  %4476 = vrot.lane.b32.xlu1 %v4466_v35, %s5857_s23  ;;  %vm258_vm5 = vcmp.ge.f32.partialorder %v226_v13, 0.0  ;;  %v290_v9 = vmul.f32 0.2, %v226_v13 }
  0xb3   : > { %v4398_v26 = vsel %vm2836_vm10, %v4397_v20, %v4396_v32  ;;  %v788_v49 = vcombine.high %v508_v46, %v508_v46  ;;  %v795_v1 = vrot.slane %v508_v46, %v5906_v7  ;;  %v850_v2 = vrot.slane %v843_v4, %v5906_v7 }
  0xb4   : > { %v4400_v45 = vsel %vm2839_vm11, %v4399_v19, %v4398_v26  ;;  %vm259_vm9 = vcmp.ge.f32.partialorder %v227_v40, 0.0  ;;  %v8235_v34 = vunpack.c.l.b16 %v6029_v8  ;;  %v4403_v10 = vrot.slane %v6523_v53, 1 }
  0xb5   : > { %v291_v31 = vmul.f32 0.2, %v227_v40  ;;  %v802_v29 = vrot.slane %v788_v49, %v5906_v7  ;;  %v803_v57 = vcombine.high %v795_v1, %v795_v1  ;;  %v811_v51 = vrot.slane %v795_v1, %v5906_v7 }
  0xb6   : > { %v6629_v15 = vrot.slane %v8235_v34, 4  ;;  %v2231_v6 = vrot.slane %v850_v2, %v5906_v7  ;;  %v6637_v63 = vsel %vm2842_vm12, %v4401_v61, %v4400_v45  ;;  %v322_v50 = vsel %vm258_vm5, %v226_v13, %v290_v9 }
  0xb7   : > { %v323_v47 = vsel %vm259_vm9, %v227_v40, %v291_v31  ;;  %vm260_vm14 = vcmp.ge.f32.partialorder %v228_v56, 0.0  ;;  %v804_v8 = vcombine.high %v802_v29, %v802_v29  ;;  %v818_v41 = vrot.slane %v802_v29, %v5906_v7 }
  0xb8   : > { %v825_v44 = vrot.slane %v803_v57, %v5906_v7  ;;  %v833_v48 = vcombine.high %v811_v51, %v811_v51  ;;  %v2119_v54 = vrot.slane %v811_v51, %v5906_v7  ;;  %v2238_v14 = vrot.slane %v2231_v6, %v5906_v7 }
  0xb9   : > { %vm261_vm15 = vcmp.ge.f32.partialorder %v229_v58, 0.0  ;;  %v292_v59 = vmul.f32 0.2, %v228_v56  ;;  %v293_v25 = vmul.f32 0.2, %v229_v58  ;;  %v832_v39 = vrot.slane %v804_v8, %v5906_v7 }
  0xba   : > { %v834_v23 = vcombine.high %v818_v41, %v818_v41  ;;  %v835_v16 = vcombine.high %v825_v44, %v825_v44  ;;  %v2133_v33 = vrot.slane %v825_v44, %v5906_v7  ;;  %v6647_v0 = vrot.slane %v2119_v54, %v5906_v7 }
  0xbb   : > { %v2147_v37 = vrot.slane %v833_v48, %v5906_v7  ;;  %v2175_v62 = vrot.slane %v818_v41, %v5906_v7  ;;  %v346_v20 = vpack.c.bf16 %v323_v47, %v322_v50  ;;  %v836_v22 = vcombine.high %v832_v39, %v832_v39  ;;  %v232_v41 = vld [vmem:[%s5911_s20 + $0xb0] sm:$0xff] }
  0xbc   : > { %v6652_v42 = vrot.slane %v2133_v33, %v5906_v7  ;;  %v2161_v19 = vrot.slane %v835_v16, %v5906_v7  ;;  %v2189_v13 = vrot.slane %v832_v39, %v5906_v7  ;;  %v2203_v35 = vrot.slane %v834_v23, %v5906_v7  ;;  %v233_v39 = vld [vmem:[%s5911_s20 + $0xb8] sm:$0xff] }
  0xbd   : > { %v2154_v27 = vrot.slane %v2147_v37, %v5906_v7  ;;  %v6658_v38 = vrot.slane %v2175_v62, %v5906_v7  ;;  %v8148_v32 = vunpack.c.l.b16 %v6647_v0  ;;  %v2217_v4 = vrot.slane %v836_v22, %v5906_v7 }
  0xbe   : > { %v2168_v40 = vrot.slane %v2161_v19, %v5906_v7  ;;  %v6664_v60 = vrot.slane %v2189_v13, %v5906_v7  ;;  %v8149_v26 = vunpack.c.l.b16 %v6652_v42  ;;  %v2210_v61 = vrot.slane %v2203_v35, %v5906_v7 }
  0xbf   : > { %v6669_v46 = vunpack.c.l.b16 %v2154_v27  ;;  %v8145_v45 = vunpack.c.l.b16 %v6658_v38  ;;  %v3024_v9 = vrot.slane %v8148_v32, 1  ;;  %v2224_v49 = vrot.slane %v2217_v4, %v5906_v7 }
  0xc0   : > { %v6675_v1 = vunpack.c.l.b16 %v2168_v40  ;;  %v8139_v2 = vunpack.c.l.b16 %v6664_v60  ;;  %v6678_v34 = vunpack.c.l.b16 %v2238_v14  ;;  %v6680_v31 = vunpack.c.l.b16 %v2210_v61 }
  0xc1   : > { %v3025_v29 = vsel %vm2824_vm2, %v8149_v26, %v3024_v9  ;;  %v3026_v57 = vrot.slane %v6669_v46, 7  ;;  %v3030_v51 = vrot.slane %v8145_v45, 5  ;;  %v6688_v6 = vunpack.c.l.b16 %v2224_v49 }
  0xc2   : > { %v3028_v50 = vrot.slane %v6675_v1, 6  ;;  %v3032_v47 = vrot.slane %v8139_v2, 4  ;;  %v324_v8 = vsel %vm260_vm14, %v228_v56, %v292_v59  ;;  %v3034_v48 = vrot.slane %v6680_v31, 3 }
  0xc3   : > { %v3027_v44 = vsel %vm2827_vm4, %v3026_v57, %v3025_v29  ;;  %v411_v54 = vshrl.u32 %v346_v20, 16  ;;  %v414_v14 = vshll.u32 %v346_v20, 16  ;;  %v3036_v16 = vrot.slane %v6688_v6, 2 }
  0xc4   : > { %v3029_v23 = vsel %vm2830_vm6, %v3028_v50, %v3027_v44  ;;  %v3038_v33 = vrot.slane %v6678_v34, 1  ;;  %v325_v37 = vsel %vm261_vm15, %v229_v58, %v293_v25  ;;  %vm264_vm0 = vcmp.ge.f32.partialorder %v232_v41, 0.0  ;;  %v6716_v44 = vld [vmem:[%s5911_s20 + $0xd0] sm:$0xff] }
  0xc5   : > { %v3031_v62 = vsel %vm2833_vm7, %v3030_v51, %v3029_v23  ;;  %v413_v22 = vrot.slane %v411_v54, 7  ;;  %v347_v56 = vpack.c.bf16 %v325_v37, %v324_v8  ;;  %vm265_vm1 = vcmp.ge.f32.partialorder %v233_v39, 0.0 }
  0xc6   : > { %v3033_v59 = vsel %vm2836_vm10, %v3032_v47, %v3031_v62  ;;  %v296_v19 = vmul.f32 0.2, %v232_v41  ;;  %v297_v13 = vmul.f32 0.2, %v233_v39  ;;  %vm268_vm3 = vcmp.ge.f32.partialorder %v6716_v44, 0.0 }
  0xc7   : > { %v3035_v20 = vsel %vm2839_vm11, %v3034_v48, %v3033_v59  ;;  %v416_v27 = vor.u32 %v414_v14, %v413_v22  ;;  %v525_v35 = vsel %vm5983_vm13, %v413_v22, 0  ;;  %v418_v40 = vshrl.u32 %v347_v56, 16 }
  0xc8   : > { %v3037_v58 = vsel %vm2842_vm12, %v3036_v16, %v3035_v20  ;;  %v1426_v25 = vrot.slane %v525_v35, %v5906_v7  ;;  %v421_v4 = vshll.u32 %v347_v56, 16  ;;  %v328_v61 = vsel %vm264_vm0, %v232_v41, %v296_v19 }
  0xc9   : > { %v3103_v9 = vpack.c.b16 %v3038_v33, %v3037_v58  ;;  %v509_v49 = vsel %vm5983_vm13, 0, %v416_v27  ;;  %v420_v29 = vrot.slane %v418_v40, 7  ;;  %v329_v57 = vsel %vm265_vm1, %v233_v39, %v297_v13 }
  0xca   : > { %v1371_v51 = vcombine.high %v509_v49, %v509_v49  ;;  %v1378_v50 = vrot.slane %v509_v49, %v5906_v7  ;;  %v1433_v47 = vrot.slane %v1426_v25, %v5906_v7  ;;  %v6713_v8 = vpack.c.bf16 %v329_v57, %v328_v61 }
  0xcb   : > { %3116 = vrot.lane.b32.xlu0 %v3103_v9, %s5855_s21  ;;  %v4467_v41 = vpack.c.b16 %v4403_v10, %v6637_v63  ;;  %v423_v54 = vor.u32 %v421_v4, %v420_v29  ;;  %v526_v14 = vsel %vm5983_vm13, %v420_v29, 0  ;;  %v6737_v10 = vmul.f32 0.2, %v6716_v44 }
  0xcc   : > { %v1385_v39 = vrot.slane %v1371_v51, %v5906_v7  ;;  %v1386_v23 = vcombine.high %v1378_v50, %v1378_v50  ;;  %v1394_v16 = vrot.slane %v1378_v50, %v5906_v7  ;;  %v3748_v33 = vrot.slane %v1433_v47, %v5906_v7 }
  0xcd   : > { %v6730_v37 = vsel %vm5983_vm13, 0, %v423_v54  ;;  %v6733_v62 = vrot.slane %v526_v14, %v5906_v7  ;;  %v432_v53 = vshrl.u32 %v6713_v8, 16 }
  0xce   : > { %v1387_v63 = vcombine.high %v1385_v39, %v1385_v39  ;;  %v1401_v22 = vrot.slane %v1385_v39, %v5906_v7  ;;  %v1408_v56 = vrot.slane %v1386_v23, %v5906_v7  ;;  %v1416_v59 = vcombine.high %v1394_v16, %v1394_v16 }
  0xcf   : > { %4478 = vrot.lane.b32.xlu0 %v4467_v41, %s5857_s23  ;;  %v3636_v19 = vrot.slane %v1394_v16, %v5906_v7  ;;  %v3755_v13 = vrot.slane %v3748_v33, %v5906_v7  ;;  %v851_v20 = vcombine.high %v6730_v37, %v6730_v37  ;;  %v6748_v27 = vrot.slane %v6730_v37, %v5906_v7 }
  0xd0   : > { %v1415_v35 = vrot.slane %v1387_v63, %v5906_v7  ;;  %v1417_v40 = vcombine.high %v1401_v22, %v1401_v22  ;;  %v1418_v58 = vcombine.high %v1408_v56, %v1408_v56  ;;  %v3650_v25 = vrot.slane %v1408_v56, %v5906_v7 }
  0xd1   : > { %v3643_v4 = vrot.slane %v3636_v19, %v5906_v7  ;;  %v3664_v61 = vrot.slane %v1416_v59, %v5906_v7  ;;  %v3692_v9 = vrot.slane %v1401_v22, %v5906_v7  ;;  %v6755_v49 = vunpack.c.l.b16 %v3755_v13 }
  0xd2   : > { %v1419_v29 = vcombine.high %v1415_v35, %v1415_v35  ;;  %v3657_v57 = vrot.slane %v3650_v25, %v5906_v7  ;;  %v3678_v51 = vrot.slane %v1418_v58, %v5906_v7  ;;  %v3706_v50 = vrot.slane %v1415_v35, %v5906_v7 }
  0xd3   : > { %v3671_v47 = vrot.slane %v3664_v61, %v5906_v7  ;;  %v3699_v41 = vrot.slane %v3692_v9, %v5906_v7  ;;  %v3720_v54 = vrot.slane %v1417_v40, %v5906_v7  ;;  %v4170_v14 = vunpack.c.l.b16 %v3643_v4 }
  0xd4   : > { %v3685_v39 = vrot.slane %v3678_v51, %v5906_v7  ;;  %v3713_v23 = vrot.slane %v3706_v50, %v5906_v7  ;;  %v3734_v16 = vrot.slane %v1419_v29, %v5906_v7  ;;  %v4171_v33 = vunpack.c.l.b16 %v3657_v57 }
  0xd5   : > { %v3727_v37 = vrot.slane %v3720_v54, %v5906_v7  ;;  %v4172_v63 = vunpack.c.l.b16 %v3671_v47  ;;  %v4174_v22 = vunpack.c.l.b16 %v3699_v41  ;;  %v4404_v56 = vrot.slane %v4170_v14, 1 }
  0xd6   : > { %v3741_v59 = vrot.slane %v3734_v16, %v5906_v7  ;;  %v4173_v19 = vunpack.c.l.b16 %v3685_v39  ;;  %v4175_v13 = vunpack.c.l.b16 %v3713_v23  ;;  %v4262_v35 = vrot.slane %v4171_v33, 7 }
  0xd7   : > { %v4176_v58 = vunpack.c.l.b16 %v3727_v37  ;;  %v4264_v40 = vrot.slane %v4172_v63, 6  ;;  %v4268_v25 = vrot.slane %v4174_v22, 4  ;;  %v4405_v4 = vsel %vm2824_vm2, %v4171_v33, %v4404_v56 }
  0xd8   : > { %v4177_v61 = vunpack.c.l.b16 %v3741_v59  ;;  %v4263_v9 = vsel %vm2824_vm2, %v4262_v35, %v4170_v14  ;;  %v4266_v29 = vrot.slane %v4173_v19, 5  ;;  %v4270_v57 = vrot.slane %v4175_v13, 3 }
  0xd9   : > { %v4265_v51 = vsel %vm2827_vm4, %v4264_v40, %v4263_v9  ;;  %v4272_v50 = vrot.slane %v4176_v58, 2  ;;  %v4406_v47 = vrot.slane %v4172_v63, 7  ;;  %v4408_v41 = vrot.slane %v4173_v19, 6 }
  0xda   : > { %v4267_v54 = vsel %vm2830_vm6, %v4266_v29, %v4265_v51  ;;  %v4274_v39 = vrot.slane %v4177_v61, 1  ;;  %v4410_v23 = vrot.slane %v4174_v22, 5  ;;  %v4412_v16 = vrot.slane %v4175_v13, 4 }
  0xdb   : > { %v4269_v37 = vsel %vm2833_vm7, %v4268_v25, %v4267_v54  ;;  %v4407_v2 = vsel %vm2827_vm4, %v4406_v47, %v4405_v4  ;;  %v4414_v33 = vrot.slane %v4176_v58, 3  ;;  %v4416_v56 = vrot.slane %v4177_v61, 2 }
  0xdc   : > { %v4271_v14 = vsel %vm2836_vm10, %v4270_v57, %v4269_v37  ;;  %v4409_v59 = vsel %vm2830_vm6, %v4408_v41, %v4407_v2  ;;  %v4418_v35 = vrot.slane %v6755_v49, 1  ;;  %v865_v63 = vrot.slane %v851_v20, %v5906_v7 }
  0xdd   : > { %v4273_v19 = vsel %vm2839_vm11, %v4272_v50, %v4271_v14  ;;  %v4411_v40 = vsel %vm2833_vm7, %v4410_v23, %v4409_v59  ;;  %v866_v22 = vcombine.high %v6748_v27, %v6748_v27  ;;  %v874_v13 = vrot.slane %v6748_v27, %v5906_v7 }
  0xde   : > { %v4275_v58 = vsel %vm2842_vm12, %v4274_v39, %v4273_v19  ;;  %v4413_v25 = vsel %vm2836_vm10, %v4412_v16, %v4411_v40  ;;  %v867_v4 = vcombine.high %v865_v63, %v865_v63  ;;  %v881_v2 = vrot.slane %v865_v63, %v5906_v7 }
  0xdf   : > { %v4322_v61 = vpack.c.b16 %v6755_v49, %v4275_v58  ;;  %v4415_v20 = vsel %vm2839_vm11, %v4414_v33, %v4413_v25  ;;  %v888_v9 = vrot.slane %v866_v22, %v5906_v7  ;;  %v896_v29 = vcombine.high %v874_v13, %v874_v13 }
  0xe0   : > { %v4417_v57 = vsel %vm2842_vm12, %v4416_v56, %v4415_v20  ;;  %v895_v51 = vrot.slane %v867_v4, %v5906_v7  ;;  %v897_v50 = vcombine.high %v881_v2, %v881_v2  ;;  %v913_v27 = vrot.slane %v6733_v62, %v5906_v7 }
  0xe1   : > { %4334 = vrot.lane.b32.xlu1 %v4322_v61, %s5856_s22  ;;  %v4468_v47 = vpack.c.b16 %v4418_v35, %v4417_v57  ;;  %v898_v41 = vcombine.high %v888_v9, %v888_v9  ;;  %v2245_v49 = vrot.slane %v874_v13, %v5906_v7  ;;  %v2259_v54 = vrot.slane %v888_v9, %v5906_v7 }
  0xe2   : > { %v899_v39 = vcombine.high %v895_v51, %v895_v51  ;;  %v2273_v23 = vrot.slane %v896_v29, %v5906_v7  ;;  %v2301_v16 = vrot.slane %v881_v2, %v5906_v7  ;;  %v2315_v37 = vrot.slane %v895_v51, %v5906_v7  ;;  %v237_v51 = vld [vmem:[%s5911_s20 + $0xd8] sm:$0xff] }
  0xe3   : > { %4480 = vrot.lane.b32.xlu0 %v4468_v47, %s5857_s23  ;;  %v6803_v62 = vrot.slane %v2245_v49, %v5906_v7  ;;  %v6806_v33 = vrot.slane %v2259_v54, %v5906_v7  ;;  %v2287_v56 = vrot.slane %v898_v41, %v5906_v7  ;;  %v2329_v14 = vrot.slane %v897_v50, %v5906_v7 }
  0xe4   : > { %v2280_v59 = vrot.slane %v2273_v23, %v5906_v7  ;;  %v6812_v35 = vrot.slane %v2301_v16, %v5906_v7  ;;  %v6815_v63 = vrot.slane %v2315_v37, %v5906_v7  ;;  %v2343_v19 = vrot.slane %v899_v39, %v5906_v7 }
  0xe5   : > { %8236 = vst [vmem:[#allocation25_spill] sm:$0xff] %v6803_v62  ;;  %v2294_v40 = vrot.slane %v2287_v56, %v5906_v7  ;;  %v2336_v22 = vrot.slane %v2329_v14, %v5906_v7  ;;  %v2357_v13 = vrot.slane %v913_v27, %v5906_v7  ;;  %v8142_v58 = vunpack.c.l.b16 %v6803_v62 }
  0xe6   : > { %8237 = vst [vmem:[#allocation26_spill] sm:$0xff] %v6812_v35  ;;  %8238 = vst [vmem:[#allocation27_spill] sm:$0xff] %v6815_v63  ;;  %v2350_v25 = vrot.slane %v2343_v19, %v5906_v7  ;;  %v8143_v4 = vunpack.c.l.b16 %v6806_v33  ;;  %v6824_v2 = vunpack.c.l.b16 %v2280_v59  ;;  %v8141_v61 = vunpack.c.l.b16 %v6812_v35 }
  0xe7   : > { %v2364_v20 = vrot.slane %v2357_v13, %v5906_v7  ;;  %v6828_v9 = vunpack.c.l.b16 %v2294_v40  ;;  %v8140_v29 = vunpack.c.l.b16 %v6815_v63  ;;  %v6831_v57 = vunpack.c.l.b16 %v2336_v22  ;;  %v230_v22 = vld [vmem:[%s5911_s20 + $0xa0] sm:$0xff] }
  0xe8   : > { %8239 = vst [vmem:[#allocation28_spill] sm:$0xff] %v6824_v2  ;;  %v6834_v50 = vunpack.c.l.b16 %v2350_v25  ;;  %v3039_v27 = vrot.slane %v8142_v58, 1  ;;  %v3041_v47 = vrot.slane %v6824_v2, 7  ;;  %v435_v41 = vshll.u32 %v6713_v8, 16 }
  0xe9   : > { %8240 = vst [vmem:[#allocation29_spill] sm:$0xff] %v6828_v9  ;;  %8241 = vst [vmem:[#allocation30_spill] sm:$0xff] %v6831_v57  ;;  %v8243_v49 = vunpack.c.l.b16 %v6035_v12  ;;  %v6844_v39 = vunpack.c.l.b16 %v2364_v20  ;;  %v3043_v23 = vrot.slane %v6828_v9, 6  ;;  %v3045_v16 = vrot.slane %v8141_v61, 5 }
  0xea   : > { %8242 = vst [vmem:[#allocation31_spill] sm:$0xff] %v6834_v50  ;;  %v3040_v37 = vsel %vm2824_vm2, %v8143_v4, %v3039_v27  ;;  %v3047_v56 = vrot.slane %v8140_v29, 4  ;;  %v434_v14 = vrot.slane %v432_v53, 7  ;;  %vm269_vm5 = vcmp.ge.f32.partialorder %v237_v51, 0.0 }
  0xeb   : > { %v6842_v54 = vrot.slane %v8243_v49, 3  ;;  %8244 = vst [vmem:[#allocation32_spill] sm:$0xff] %v6844_v39  ;;  %v3042_v12 = vsel %vm2827_vm4, %v3041_v47, %v3040_v37  ;;  %v3049_v59 = vrot.slane %v6831_v57, 3  ;;  %v301_v19 = vmul.f32 0.2, %v237_v51 }
  0xec   : > { %v332_v40 = vsel %vm268_vm3, %v6716_v44, %v6737_v10  ;;  %v3044_v13 = vsel %vm2830_vm6, %v3043_v23, %v3042_v12  ;;  %v3051_v25 = vrot.slane %v6834_v50, 2  ;;  %v437_v20 = vor.u32 %v435_v41, %v434_v14 }
  0xed   : > { %v528_v8 = vsel %vm5983_vm13, %v434_v14, 0  ;;  %v3046_v53 = vsel %vm2833_vm7, %v3045_v16, %v3044_v13  ;;  %v3053_v27 = vrot.slane %v6844_v39, 1  ;;  %v333_v49 = vsel %vm269_vm5, %v237_v51, %v301_v19  ;;  %v231_v16 = vld [vmem:[%s5911_s20 + $0xa8] sm:$0xff] }
  0xee   : > { %v969_v47 = vrot.slane %v528_v8, %v5906_v7  ;;  %v3048_v37 = vsel %vm2836_vm10, %v3047_v56, %v3046_v53  ;;  %v512_v44 = vsel %vm5983_vm13, 0, %v437_v20  ;;  %v351_v10 = vpack.c.bf16 %v333_v49, %v332_v40 }
  0xef   : > { %vm262_vm9 = vcmp.ge.f32.partialorder %v230_v22, 0.0  ;;  %v3050_v23 = vsel %vm2839_vm11, %v3049_v59, %v3048_v37  ;;  %v914_v41 = vcombine.high %v512_v44, %v512_v44  ;;  %v921_v12 = vrot.slane %v512_v44, %v5906_v7 }
  0xf0   : > { %v976_v14 = vrot.slane %v969_v47, %v5906_v7  ;;  %v3052_v13 = vsel %vm2842_vm12, %v3051_v25, %v3050_v23  ;;  %v446_v29 = vshrl.u32 %v351_v10, 16  ;;  %v449_v8 = vshll.u32 %v351_v10, 16 }
  0xf1   : > { %v294_v51 = vmul.f32 0.2, %v230_v22  ;;  %v3104_v19 = vpack.c.b16 %v3053_v27, %v3052_v13  ;;  %v928_v56 = vrot.slane %v914_v41, %v5906_v7  ;;  %v929_v53 = vcombine.high %v921_v12, %v921_v12 }
  0xf2   : > { %v937_v40 = vrot.slane %v921_v12, %v5906_v7  ;;  %v2483_v20 = vrot.slane %v976_v14, %v5906_v7  ;;  %v448_v59 = vrot.slane %v446_v29, 7  ;;  %vm263_vm14 = vcmp.ge.f32.partialorder %v231_v16, 0.0 }
  0xf3   : > { %v295_v49 = vmul.f32 0.2, %v231_v16  ;;  %3118 = vrot.lane.b32.xlu1 %v3104_v19, %s5855_s21  ;;  %v930_v47 = vcombine.high %v928_v56, %v928_v56  ;;  %v944_v37 = vrot.slane %v928_v56, %v5906_v7  ;;  %v951_v25 = vrot.slane %v929_v53, %v5906_v7 }
  0xf4   : > { %v959_v44 = vcombine.high %v937_v40, %v937_v40  ;;  %v2371_v27 = vrot.slane %v937_v40, %v5906_v7  ;;  %v2490_v10 = vrot.slane %v2483_v20, %v5906_v7  ;;  %v451_v23 = vor.u32 %v449_v8, %v448_v59 }
  0xf5   : > { %v326_v41 = vsel %vm262_vm9, %v230_v22, %v294_v51  ;;  %v958_v12 = vrot.slane %v930_v47, %v5906_v7  ;;  %v960_v29 = vcombine.high %v944_v37, %v944_v37  ;;  %v961_v14 = vcombine.high %v951_v25, %v951_v25 }
  0xf6   : > { %v2385_v13 = vrot.slane %v951_v25, %v5906_v7  ;;  %v6890_v19 = vrot.slane %v2371_v27, %v5906_v7  ;;  %v2399_v56 = vrot.slane %v959_v44, %v5906_v7  ;;  %v2427_v53 = vrot.slane %v944_v37, %v5906_v7 }
  0xf7   : > { %v530_v40 = vsel %vm5983_vm13, %v448_v59, 0  ;;  %v962_v20 = vcombine.high %v958_v12, %v958_v12  ;;  %v2413_v22 = vrot.slane %v961_v14, %v5906_v7  ;;  %v2441_v51 = vrot.slane %v958_v12, %v5906_v7 }
  0xf8   : > { %8245 = vst [vmem:[#allocation33_spill] sm:$0xff] %v6890_v19  ;;  %v6897_v8 = vrot.slane %v2385_v13, %v5906_v7  ;;  %v2406_v47 = vrot.slane %v2399_v56, %v5906_v7  ;;  %v6903_v25 = vrot.slane %v2427_v53, %v5906_v7  ;;  %v2455_v44 = vrot.slane %v960_v29, %v5906_v7 }
  0xf9   : > { %v8144_v37 = vunpack.c.l.b16 %v6890_v19  ;;  %v2420_v27 = vrot.slane %v2413_v22, %v5906_v7  ;;  %v6909_v59 = vrot.slane %v2441_v51, %v5906_v7  ;;  %v2469_v13 = vrot.slane %v962_v20, %v5906_v7 }
  0xfa   : > { %8246 = vst [vmem:[#allocation34_spill] sm:$0xff] %v6897_v8  ;;  %8247 = vst [vmem:[#allocation35_spill] sm:$0xff] %v6903_v25  ;;  %v8146_v14 = vunpack.c.l.b16 %v6897_v8  ;;  %v2462_v12 = vrot.slane %v2455_v44, %v5906_v7  ;;  %v6914_v61 = vunpack.c.l.b16 %v2406_v47  ;;  %v8147_v56 = vunpack.c.l.b16 %v6903_v25 }
  0xfb   : > { %8248 = vst [vmem:[#allocation36_spill] sm:$0xff] %v6909_v59  ;;  %v3054_v29 = vrot.slane %v8144_v37, 1  ;;  %v2476_v53 = vrot.slane %v2469_v13, %v5906_v7  ;;  %v6920_v58 = vunpack.c.l.b16 %v2420_v27  ;;  %v8150_v22 = vunpack.c.l.b16 %v6909_v59 }
  0xfc   : > { %8249 = vst [vmem:[#allocation37_spill] sm:$0xff] %v6914_v61  ;;  %v6923_v51 = vunpack.c.l.b16 %v2490_v10  ;;  %v6925_v20 = vunpack.c.l.b16 %v2462_v12  ;;  %v3056_v44 = vrot.slane %v6914_v61, 7  ;;  %v3060_v4 = vrot.slane %v8147_v56, 5 }
  0xfd   : > { %8250 = vst [vmem:[#allocation38_spill] sm:$0xff] %v6920_v58  ;;  %v3055_v47 = vsel %vm2824_vm2, %v8146_v14, %v3054_v29  ;;  %v6933_v37 = vunpack.c.l.b16 %v2476_v53  ;;  %v3058_v27 = vrot.slane %v6920_v58, 6  ;;  %v3062_v13 = vrot.slane %v8150_v22, 4 }
  0xfe   : > { %8251 = vst [vmem:[#allocation39_spill] sm:$0xff] %v6923_v51  ;;  %8252 = vst [vmem:[#allocation40_spill] sm:$0xff] %v6925_v20  ;;  %v327_v10 = vsel %vm263_vm14, %v231_v16, %v295_v49  ;;  %v3057_v12 = vsel %vm2827_vm4, %v3056_v44, %v3055_v47  ;;  %v3064_v45 = vrot.slane %v6925_v20, 3  ;;  %v514_v29 = vsel %vm5983_vm13, 0, %v451_v23 }
  0xff   : > { %8253 = vst [vmem:[#allocation41_spill] sm:$0xff] %v6933_v37  ;;  %v1032_v14 = vrot.slane %v530_v40, %v5906_v7  ;;  %v3059_v56 = vsel %vm2830_vm6, %v3058_v27, %v3057_v12  ;;  %v3066_v53 = vrot.slane %v6933_v37, 2  ;;  %v977_v32 = vcombine.high %v514_v29, %v514_v29 }
 0x100   : > { %v984_v26 = vrot.slane %v514_v29, %v5906_v7  ;;  %v3061_v22 = vsel %vm2833_vm7, %v3060_v4, %v3059_v56  ;;  %v3068_v16 = vrot.slane %v6923_v51, 1  ;;  %v6950_v47 = vpack.c.bf16 %v327_v10, %v326_v41 }
 0x101   : > { %v1039_v49 = vrot.slane %v1032_v14, %v5906_v7  ;;  %v3063_v44 = vsel %vm2836_vm10, %v3062_v13, %v3061_v22  ;;  %v991_v23 = vrot.slane %v977_v32, %v5906_v7  ;;  %vm4490_vm14 = vcmask 31744  }
 0x102   : > { %v992_v40 = vcombine.high %v984_v26, %v984_v26  ;;  %v1000_v27 = vrot.slane %v984_v26, %v5906_v7  ;;  %v3065_v48 = vsel %vm2839_vm11, %v3064_v45, %v3063_v44  ;;  %v425_v4 = vshrl.u32 %v6950_v47, 16 }
 0x103   : > { %v2609_v29 = vrot.slane %v1039_v49, %v5906_v7  ;;  %v3067_v56 = vsel %vm2842_vm12, %v3066_v53, %v3065_v48  ;;  %v993_v14 = vcombine.high %v991_v23, %v991_v23  ;;  %v1007_v41 = vrot.slane %v991_v23, %v5906_v7 }
 0x104   : > { %v1014_v22 = vrot.slane %v992_v40, %v5906_v7  ;;  %v3105_v13 = vpack.c.b16 %v3068_v16, %v3067_v56  ;;  %v1022_v32 = vcombine.high %v1000_v27, %v1000_v27  ;;  %v2497_v10 = vrot.slane %v1000_v27, %v5906_v7 }
 0x105   : > { %v428_v26 = vshll.u32 %v6950_v47, 16  ;;  %v1021_v12 = vrot.slane %v993_v14, %v5906_v7  ;;  %v1023_v45 = vcombine.high %v1007_v41, %v1007_v41  ;;  %v2553_v16 = vrot.slane %v1007_v41, %v5906_v7 }
 0x106   : > { %v1024_v44 = vcombine.high %v1014_v22, %v1014_v22  ;;  %v2511_v49 = vrot.slane %v1014_v22, %v5906_v7  ;;  %3120 = vrot.lane.b32.xlu0 %v3105_v13, %s5855_s21  ;;  %v6968_v48 = vrot.slane %v2497_v10, %v5906_v7  ;;  %v2525_v53 = vrot.slane %v1022_v32, %v5906_v7 }
 0x107   : > { %v2616_v23 = vrot.slane %v2609_v29, %v5906_v7  ;;  %v1025_v40 = vcombine.high %v1021_v12, %v1021_v12  ;;  %v2567_v56 = vrot.slane %v1021_v12, %v5906_v7  ;;  %v6980_v22 = vrot.slane %v2553_v16, %v5906_v7  ;;  %v234_v16 = vld [vmem:[%s5911_s20 + $0xc0] sm:$0xff] }
 0x108   : > { %8254 = vst [vmem:[#allocation42_spill] sm:$0xff] %v6968_v48  ;;  %v6974_v47 = vrot.slane %v2511_v49, %v5906_v7  ;;  %v2539_v27 = vrot.slane %v1024_v44, %v5906_v7  ;;  %v2532_v14 = vrot.slane %v2525_v53, %v5906_v7  ;;  %v2581_v13 = vrot.slane %v1023_v45, %v5906_v7 }
 0x109   : > { %8256 = vst [vmem:[#allocation44_spill] sm:$0xff] %v6980_v22  ;;  %v8152_v41 = vunpack.c.l.b16 %v6968_v48  ;;  %v6986_v32 = vrot.slane %v2567_v56, %v5906_v7  ;;  %v2595_v10 = vrot.slane %v1025_v40, %v5906_v7  ;;  %v7001_v51 = vunpack.c.l.b16 %v2616_v23  ;;  %v235_v40 = vld [vmem:[%s5911_s20 + $0xc8] sm:$0xff] }
 0x10a   : > { %8255 = vst [vmem:[#allocation43_spill] sm:$0xff] %v6974_v47  ;;  %v2546_v29 = vrot.slane %v2539_v27, %v5906_v7  ;;  %v2588_v12 = vrot.slane %v2581_v13, %v5906_v7  ;;  %v6991_v49 = vunpack.c.l.b16 %v2532_v14  ;;  %v8262_v14 = vunpack.c.l.b16 %v6974_v47 }
 0x10b   : > { %8257 = vst [vmem:[#allocation45_spill] sm:$0xff] %v6986_v32  ;;  %v3069_v45 = vrot.slane %v8152_v41, 1  ;;  %v2602_v11 = vrot.slane %v2595_v10, %v5906_v7  ;;  %v8159_v56 = vunpack.c.l.b16 %v6986_v32  ;;  %8260 = vst [vmem:[#allocation48_spill] sm:$0xff] %v7001_v51  ;;  %v8263_v41 = vunpack.c.l.b16 %v6980_v22 }
 0x10c   : > { %8258 = vst [vmem:[#allocation46_spill] sm:$0xff] %v6991_v49  ;;  %v6998_v27 = vunpack.c.l.b16 %v2546_v29  ;;  %v7004_v44 = vunpack.c.l.b16 %v2588_v12  ;;  %v3071_v53 = vrot.slane %v6991_v49, 7  ;;  %vm266_vm15 = vcmp.ge.f32.partialorder %v234_v16, 0.0 }
 0x10d   : > { %v3070_v13 = vsel %vm2824_vm2, %v8262_v14, %v3069_v45  ;;  %v3075_v37 = vrot.slane %v8263_v41, 5  ;;  %v7012_v10 = vunpack.c.l.b16 %v2602_v11  ;;  %v3077_v23 = vrot.slane %v8159_v56, 4  ;;  %v238_v11 = vld [vmem:[%s5911_s20 + $0xe0] sm:$0xff] }
 0x10e   : > { %8259 = vst [vmem:[#allocation47_spill] sm:$0xff] %v6998_v27  ;;  %8261 = vst [vmem:[#allocation49_spill] sm:$0xff] %v7004_v44  ;;  %v3073_v29 = vrot.slane %v6998_v27, 6  ;;  %v3072_v12 = vsel %vm2827_vm4, %v3071_v53, %v3070_v13  ;;  %v3079_v20 = vrot.slane %v7004_v44, 3  ;;  %v427_v48 = vrot.slane %v425_v4, 7 }
 0x10f   : > { %8264 = vst [vmem:[#allocation50_spill] sm:$0xff] %v7012_v10  ;;  %vm267_vm0 = vcmp.ge.f32.partialorder %v235_v40, 0.0  ;;  %v3081_v14 = vrot.slane %v7012_v10, 2  ;;  %v298_v22 = vmul.f32 0.2, %v234_v16  ;;  %v3083_v32 = vrot.slane %v7001_v51, 1 }
 0x110   : > { %v3074_v45 = vsel %vm2830_vm6, %v3073_v29, %v3072_v12  ;;  %v299_v41 = vmul.f32 0.2, %v235_v40  ;;  %v430_v56 = vor.u32 %v428_v26, %v427_v48  ;;  %v527_v53 = vsel %vm5983_vm13, %v427_v48, 0 }
 0x111   : > { %v3076_v49 = vsel %vm2833_vm7, %v3075_v37, %v3074_v45  ;;  %v1489_v4 = vrot.slane %v527_v53, %v5906_v7  ;;  %v330_v29 = vsel %vm266_vm15, %v234_v16, %v298_v22  ;;  %vm270_vm1 = vcmp.ge.f32.partialorder %v238_v11, 0.0 }
 0x112   : > { %v3078_v13 = vsel %vm2836_vm10, %v3077_v23, %v3076_v49  ;;  %v331_v12 = vsel %vm267_vm0, %v235_v40, %v299_v41  ;;  %v511_v44 = vsel %vm5983_vm13, 0, %v430_v56  ;;  %v7036_v49 = vld [vmem:[%s5911_s20 + $0xe8] sm:$0xff]  ;;  %v302_v16 = vmul.f32 0.2, %v238_v11 }
 0x113   : > { %v3080_v10 = vsel %vm2839_vm11, %v3079_v20, %v3078_v13  ;;  %v350_v37 = vpack.c.bf16 %v331_v12, %v330_v29  ;;  %v1434_v26 = vcombine.high %v511_v44, %v511_v44  ;;  %v1441_v51 = vrot.slane %v511_v44, %v5906_v7 }
 0x114   : > { %v3082_v45 = vsel %vm2842_vm12, %v3081_v14, %v3080_v10  ;;  %v1496_v48 = vrot.slane %v1489_v4, %v5906_v7  ;;  %v303_v14 = vmul.f32 0.2, %v7036_v49  ;;  %v334_v13 = vsel %vm270_vm1, %v238_v11, %v302_v16 }
 0x115   : > { %v3106_v23 = vpack.c.b16 %v3083_v32, %v3082_v45  ;;  %v439_v53 = vshrl.u32 %v350_v37, 16  ;;  %v442_v22 = vshll.u32 %v350_v37, 16  ;;  %v1448_v20 = vrot.slane %v1434_v26, %v5906_v7 }
 0x116   : > { %v1449_v40 = vcombine.high %v1441_v51, %v1441_v51  ;;  %v1457_v56 = vrot.slane %v1441_v51, %v5906_v7  ;;  %v3874_v41 = vrot.slane %v1496_v48, %v5906_v7  ;;  %vm271_vm3 = vcmp.ge.f32.partialorder %v7036_v49, 0.0 }
 0x117   : > { %3122 = vrot.lane.b32.xlu1 %v3106_v23, %s5855_s21  ;;  %v441_v44 = vrot.slane %v439_v53, 7  ;;  %v1450_v32 = vcombine.high %v1448_v20, %v1448_v20  ;;  %v1464_v4 = vrot.slane %v1448_v20, %v5906_v7  ;;  %vm4518_vm15 = vcmask 64512  }
 0x118   : > { %v1471_v29 = vrot.slane %v1449_v40, %v5906_v7  ;;  %v1479_v12 = vcombine.high %v1457_v56, %v1457_v56  ;;  %v3762_v37 = vrot.slane %v1457_v56, %v5906_v7  ;;  %v3881_v51 = vrot.slane %v3874_v41, %v5906_v7 }
 0x119   : > { %v444_v45 = vor.u32 %v442_v22, %v441_v44  ;;  %v529_v26 = vsel %vm5983_vm13, %v441_v44, 0  ;;  %v1478_v48 = vrot.slane %v1450_v32, %v5906_v7  ;;  %v1480_v23 = vcombine.high %v1464_v4, %v1464_v4 }
 0x11a   : > { %v1481_v11 = vcombine.high %v1471_v29, %v1471_v29  ;;  %v3776_v53 = vrot.slane %v1471_v29, %v5906_v7  ;;  %v7055_v16 = vrot.slane %v3762_v37, %v5906_v7  ;;  %v3790_v20 = vrot.slane %v1479_v12, %v5906_v7 }
 0x11b   : > { %v3818_v40 = vrot.slane %v1464_v4, %v5906_v7  ;;  %v7059_v56 = vunpack.c.l.b16 %v3881_v51  ;;  %v1482_v22 = vcombine.high %v1478_v48, %v1478_v48  ;;  %v3832_v32 = vrot.slane %v1478_v48, %v5906_v7 }
 0x11c   : > { %v7062_v41 = vrot.slane %v3776_v53, %v5906_v7  ;;  %v3804_v44 = vrot.slane %v1481_v11, %v5906_v7  ;;  %v3797_v10 = vrot.slane %v3790_v20, %v5906_v7  ;;  %v3846_v37 = vrot.slane %v1480_v23, %v5906_v7 }
 0x11d   : > { %v7068_v29 = vrot.slane %v3818_v40, %v5906_v7  ;;  %v7074_v51 = vrot.slane %v3832_v32, %v5906_v7  ;;  %v3860_v53 = vrot.slane %v1482_v22, %v5906_v7  ;;  %v513_v23 = vsel %vm5983_vm13, 0, %v444_v45 }
 0x11e   : > { %v3811_v4 = vrot.slane %v3804_v44, %v5906_v7  ;;  %v8167_v11 = vunpack.c.l.b16 %v7062_v41  ;;  %v3853_v48 = vrot.slane %v3846_v37, %v5906_v7  ;;  %v7079_v27 = vunpack.c.l.b16 %v3797_v10 }
 0x11f   : > { %v8169_v20 = vunpack.c.l.b16 %v7068_v29  ;;  %v3867_v40 = vrot.slane %v3860_v53, %v5906_v7  ;;  %v8172_v44 = vunpack.c.l.b16 %v7074_v51  ;;  %v1497_v59 = vcombine.high %v513_v23, %v513_v23 }
 0x120   : > { %v7085_v12 = vunpack.c.l.b16 %v3811_v4  ;;  %v4276_v22 = vrot.slane %v8167_v11, 7  ;;  %v7090_v32 = vunpack.c.l.b16 %v3853_v48  ;;  %v4278_v37 = vrot.slane %v7079_v27, 6 }
 0x121   : > { %v4282_v10 = vrot.slane %v8169_v20, 4  ;;  %v7095_v47 = vunpack.c.l.b16 %v3867_v40  ;;  %v8265_v45 = vunpack.c.l.b16 %v7055_v16  ;;  %v4284_v25 = vrot.slane %v8172_v44, 3 }
 0x122   : > { %v4280_v53 = vrot.slane %v7085_v12, 5  ;;  %v4286_v11 = vrot.slane %v7090_v32, 2  ;;  %v1504_v58 = vrot.slane %v513_v23, %v5906_v7  ;;  %v1511_v20 = vrot.slane %v1497_v59, %v5906_v7 }
 0x123   : > { %v4277_v4 = vsel %vm2824_vm2, %v4276_v22, %v8265_v45  ;;  %v4288_v19 = vrot.slane %v7095_v47, 1  ;;  %v1552_v61 = vrot.slane %v529_v26, %v5906_v7  ;;  %v335_v22 = vsel %vm271_vm3, %v7036_v49, %v303_v14 }
 0x124   : > { %v4279_v48 = vsel %vm2827_vm4, %v4278_v37, %v4277_v4  ;;  %v1512_v44 = vcombine.high %v1504_v58, %v1504_v58  ;;  %v1513_v37 = vcombine.high %v1511_v20, %v1511_v20  ;;  %v1520_v4 = vrot.slane %v1504_v58, %v5906_v7 }
 0x125   : > { %v4281_v40 = vsel %vm2830_vm6, %v4280_v53, %v4279_v48  ;;  %v1527_v59 = vrot.slane %v1511_v20, %v5906_v7  ;;  %v1559_v53 = vrot.slane %v1552_v61, %v5906_v7  ;;  %v7118_v48 = vpack.c.bf16 %v335_v22, %v334_v13 }
 0x126   : > { %v4283_v45 = vsel %vm2833_vm7, %v4282_v10, %v4281_v40  ;;  %v1534_v8 = vrot.slane %v1512_v44, %v5906_v7  ;;  %v1541_v49 = vrot.slane %v1513_v37, %v5906_v7  ;;  %v1542_v14 = vcombine.high %v1520_v4, %v1520_v4 }
 0x127   : > { %v4285_v23 = vsel %vm2836_vm10, %v4284_v25, %v4283_v45  ;;  %v1543_v40 = vcombine.high %v1527_v59, %v1527_v59  ;;  %v3888_v58 = vrot.slane %v1520_v4, %v5906_v7  ;;  %v3944_v25 = vrot.slane %v1527_v59, %v5906_v7 }
 0x128   : > { %v4287_v26 = vsel %vm2839_vm11, %v4286_v11, %v4285_v23  ;;  %v1544_v45 = vcombine.high %v1534_v8, %v1534_v8  ;;  %v1545_v61 = vcombine.high %v1541_v49, %v1541_v49  ;;  %v3902_v13 = vrot.slane %v1534_v8, %v5906_v7 }
 0x129   : > { %v4289_v10 = vsel %vm2842_vm12, %v4288_v19, %v4287_v26  ;;  %v7129_v11 = vrot.slane %v3888_v58, %v5906_v7  ;;  %v3916_v44 = vrot.slane %v1542_v14, %v5906_v7  ;;  %v7133_v22 = vrot.slane %v3944_v25, %v5906_v7 }
 0x12a   : > { %v4323_v20 = vpack.c.b16 %v7059_v56, %v4289_v10  ;;  %v3958_v19 = vrot.slane %v1541_v49, %v5906_v7  ;;  %v7138_v37 = vrot.slane %v3902_v13, %v5906_v7  ;;  %v3930_v4 = vrot.slane %v1544_v45, %v5906_v7 }
 0x12b   : > { %v3972_v8 = vrot.slane %v1543_v40, %v5906_v7  ;;  %v3986_v23 = vrot.slane %v1545_v61, %v5906_v7  ;;  %v3923_v59 = vrot.slane %v3916_v44, %v5906_v7  ;;  %v4000_v14 = vrot.slane %v1559_v53, %v5906_v7  ;;  %v240_v44 = vld [vmem:[%s5911_s20 + $0xf0] sm:$0xff] }
 0x12c   : > { %4336 = vrot.lane.b32.xlu0 %v4323_v20, %s5856_s22  ;;  %v7145_v26 = vrot.slane %v3958_v19, %v5906_v7  ;;  %v4188_v49 = vunpack.c.l.b16 %v7129_v11  ;;  %v3937_v10 = vrot.slane %v3930_v4, %v5906_v7  ;;  %v8175_v20 = vunpack.c.l.b16 %v7138_v37 }
 0x12d   : > { %v3979_v58 = vrot.slane %v3972_v8, %v5906_v7  ;;  %v3993_v25 = vrot.slane %v3986_v23, %v5906_v7  ;;  %v4007_v40 = vrot.slane %v4000_v14, %v5906_v7  ;;  %v7154_v45 = vunpack.c.l.b16 %v3923_v59 }
 0x12e   : > { %v8177_v61 = vunpack.c.l.b16 %v7133_v22  ;;  %v8179_v13 = vunpack.c.l.b16 %v7145_v26  ;;  %v7159_v53 = vunpack.c.l.b16 %v3937_v10  ;;  %v4290_v4 = vrot.slane %v8175_v20, 7 }
 0x12f   : > { %v7161_v11 = vunpack.c.l.b16 %v3979_v58  ;;  %v7163_v19 = vunpack.c.l.b16 %v3993_v25  ;;  %v7167_v8 = vunpack.c.l.b16 %v4007_v40  ;;  %v4292_v23 = vrot.slane %v7154_v45, 6 }
 0x130   : > { %v4296_v59 = vrot.slane %v8177_v61, 4  ;;  %v4298_v14 = vrot.slane %v8179_v13, 3  ;;  %v4291_v10 = vsel %vm2824_vm2, %v4290_v4, %v4188_v49  ;;  %v4294_v58 = vrot.slane %v7159_v53, 5 }
 0x131   : > { %v4300_v25 = vrot.slane %v7161_v11, 2  ;;  %v4302_v39 = vrot.slane %v7163_v19, 1  ;;  %vm272_vm5 = vcmp.ge.f32.partialorder %v240_v44, 0.0  ;;  %v4293_v40 = vsel %vm2827_vm4, %v4292_v23, %v4291_v10 }
 0x132   : > { %v453_v20 = vshrl.u32 %v7118_v48, 16  ;;  %v456_v50 = vshll.u32 %v7118_v48, 16  ;;  %v8266_v61 = vunpack.c.l.b16 %v7055_v16  ;;  %v4295_v13 = vsel %vm2830_vm6, %v4294_v58, %v4293_v40 }
 0x133   : > { %v4421_v4 = vrot.slane %v7079_v27, 7  ;;  %v4423_v63 = vrot.slane %v7085_v12, 6  ;;  %v8267_v35 = vunpack.c.l.b16 %v7068_v29  ;;  %v4297_v62 = vsel %vm2833_vm7, %v4296_v59, %v4295_v13  ;;  %v241_v29 = vld [vmem:[%s5911_s20 + $0xf8] sm:$0xff] }
 0x134   : > { %v4419_v57 = vrot.slane %v8266_v61, 1  ;;  %v455_v23 = vrot.slane %v453_v20, 7  ;;  %v8268_v10 = vunpack.c.l.b16 %v7062_v41  ;;  %v8269_v48 = vunpack.c.l.b16 %v7074_v51 }
 0x135   : > { %v4425_v9 = vrot.slane %v8267_v35, 5  ;;  %v4299_v61 = vsel %vm2836_vm10, %v4298_v14, %v4297_v62  ;;  %v4429_v27 = vrot.slane %v7090_v32, 3  ;;  %v4431_v12 = vrot.slane %v7095_v47, 2 }
 0x136   : > { %v4420_v2 = vsel %vm2824_vm2, %v8268_v10, %v4419_v57  ;;  %v4427_v16 = vrot.slane %v8269_v48, 4  ;;  %v4301_v35 = vsel %vm2839_vm11, %v4300_v25, %v4299_v61  ;;  %v458_v13 = vor.u32 %v456_v50, %v455_v23 }
 0x137   : > { %v4422_v58 = vsel %vm2827_vm4, %v4421_v4, %v4420_v2  ;;  %v531_v41 = vsel %vm5983_vm13, %v455_v23, 0  ;;  %v4303_v51 = vsel %vm2842_vm12, %v4302_v39, %v4301_v35  ;;  %v4433_v2 = vrot.slane %v7059_v56, 1 }
 0x138   : > { %v4424_v57 = vsel %vm2830_vm6, %v4423_v63, %v4422_v58  ;;  %v1615_v20 = vrot.slane %v531_v41, %v5906_v7  ;;  %v4324_v32 = vpack.c.b16 %v7167_v8, %v4303_v51  ;;  %v515_v47 = vsel %vm5983_vm13, 0, %v458_v13 }
 0x139   : > { %v4426_v62 = vsel %vm2833_vm7, %v4425_v9, %v4424_v57  ;;  %vm273_vm9 = vcmp.ge.f32.partialorder %v241_v29, 0.0  ;;  %v1560_v59 = vcombine.high %v515_v47, %v515_v47  ;;  %v1567_v14 = vrot.slane %v515_v47, %v5906_v7 }
 0x13a   : > { %v4428_v50 = vsel %vm2836_vm10, %v4427_v16, %v4426_v62  ;;  %v1622_v63 = vrot.slane %v1615_v20, %v5906_v7  ;;  %4338 = vrot.lane.b32.xlu1 %v4324_v32, %s5856_s22  ;;  %v304_v56 = vmul.f32 0.2, %v240_v44  ;;  %v305_v25 = vmul.f32 0.2, %v241_v29 }
 0x13b   : > { %v4430_v39 = vsel %vm2839_vm11, %v4429_v27, %v4428_v50  ;;  %v4434_v40 = vrot.slane %v4188_v49, 1  ;;  %v1574_v4 = vrot.slane %v1560_v59, %v5906_v7  ;;  %v1575_v23 = vcombine.high %v1567_v14, %v1567_v14 }
 0x13c   : > { %v4432_v9 = vsel %vm2842_vm12, %v4431_v12, %v4430_v39  ;;  %v1583_v10 = vrot.slane %v1567_v14, %v5906_v7  ;;  %v4126_v48 = vrot.slane %v1622_v63, %v5906_v7  ;;  %v336_v61 = vsel %vm272_vm5, %v240_v44, %v304_v56 }
 0x13d   : > { %v4469_v16 = vpack.c.b16 %v4433_v2, %v4432_v9  ;;  %v337_v58 = vsel %vm273_vm9, %v241_v29, %v305_v25  ;;  %v8270_v27 = vunpack.c.l.b16 %v7138_v37  ;;  %v1576_v12 = vcombine.high %v1574_v4, %v1574_v4 }
 0x13e   : > { %v1590_v13 = vrot.slane %v1574_v4, %v5906_v7  ;;  %v1597_v49 = vrot.slane %v1575_v23, %v5906_v7  ;;  %v1605_v41 = vcombine.high %v1583_v10, %v1583_v10  ;;  %v4014_v57 = vrot.slane %v1583_v10, %v5906_v7 }
 0x13f   : > { %v4435_v35 = vsel %vm2824_vm2, %v8270_v27, %v4434_v40  ;;  %v4133_v51 = vrot.slane %v4126_v48, %v5906_v7  ;;  %4482 = vrot.lane.b32.xlu1 %v4469_v16, %s5857_s23  ;;  %v353_v20 = vpack.c.bf16 %v337_v58, %v336_v61  ;;  %v4436_v44 = vrot.slane %v7154_v45, 7 }
 0x140   : > { %v1604_v29 = vrot.slane %v1576_v12, %v5906_v7  ;;  %v1606_v37 = vcombine.high %v1590_v13, %v1590_v13  ;;  %v1607_v62 = vcombine.high %v1597_v49, %v1597_v49  ;;  %v4028_v2 = vrot.slane %v1597_v49, %v5906_v7 }
 0x141   : > { %v4021_v32 = vrot.slane %v4014_v57, %v5906_v7  ;;  %v4042_v47 = vrot.slane %v1605_v41, %v5906_v7  ;;  %v4070_v50 = vrot.slane %v1590_v13, %v5906_v7  ;;  %v7235_v59 = vunpack.c.l.b16 %v4133_v51 }
 0x142   : > { %v1608_v14 = vcombine.high %v1604_v29, %v1604_v29  ;;  %v7238_v63 = vrot.slane %v4028_v2, %v5906_v7  ;;  %v4056_v45 = vrot.slane %v1607_v62, %v5906_v7  ;;  %v4084_v39 = vrot.slane %v1604_v29, %v5906_v7 }
 0x143   : > { %v4049_v9 = vrot.slane %v4042_v47, %v5906_v7  ;;  %v7244_v56 = vrot.slane %v4070_v50, %v5906_v7  ;;  %v4098_v25 = vrot.slane %v1606_v37, %v5906_v7  ;;  %v4197_v40 = vunpack.c.l.b16 %v4021_v32 }
 0x144   : > { %v4063_v4 = vrot.slane %v4056_v45, %v5906_v7  ;;  %v7249_v23 = vrot.slane %v4084_v39, %v5906_v7  ;;  %v4112_v10 = vrot.slane %v1608_v14, %v5906_v7  ;;  %v4198_v48 = vunpack.c.l.b16 %v7238_v63 }
 0x145   : > { %v4105_v16 = vrot.slane %v4098_v25, %v5906_v7  ;;  %v7254_v61 = vunpack.c.l.b16 %v4049_v9  ;;  %v4201_v58 = vunpack.c.l.b16 %v7244_v56  ;;  %v460_v27 = vshrl.u32 %v353_v20, 16 }
 0x146   : > { %v4119_v12 = vrot.slane %v4112_v10, %v5906_v7  ;;  %v7258_v13 = vunpack.c.l.b16 %v4063_v4  ;;  %v8186_v49 = vunpack.c.l.b16 %v7249_v23  ;;  %v4304_v41 = vrot.slane %v4198_v48, 7 }
 0x147   : > { %v7261_v57 = vunpack.c.l.b16 %v4105_v16  ;;  %v4306_v51 = vrot.slane %v7254_v61, 6  ;;  %v4310_v29 = vrot.slane %v4201_v58, 4  ;;  %v462_v37 = vrot.slane %v460_v27, 7 }
 0x148   : > { %v7266_v62 = vunpack.c.l.b16 %v4119_v12  ;;  %v4305_v2 = vsel %vm2824_vm2, %v4304_v41, %v4197_v40  ;;  %v4308_v32 = vrot.slane %v7258_v13, 5  ;;  %v4312_v47 = vrot.slane %v8186_v49, 3 }
 0x149   : > { %v4307_v50 = vsel %vm2827_vm4, %v4306_v51, %v4305_v2  ;;  %v4314_v14 = vrot.slane %v7261_v57, 2  ;;  %v463_v63 = vshll.u32 %v353_v20, 16  ;;  %v532_v45 = vsel %vm5983_vm13, %v462_v37, 0 }
 0x14a   : > { %v4309_v39 = vsel %vm2830_vm6, %v4308_v32, %v4307_v50  ;;  %v4316_v9 = vrot.slane %v7266_v62, 1  ;;  %v1095_v25 = vrot.slane %v532_v45, %v5906_v7  ;;  %v4437_v4 = vsel %vm2827_vm4, %v4436_v44, %v4435_v35 }
 0x14b   : > { %v4311_v10 = vsel %vm2833_vm7, %v4310_v29, %v4309_v39  ;;  %v465_v16 = vor.u32 %v463_v63, %v462_v37  ;;  %v4438_v27 = vrot.slane %v7159_v53, 6  ;;  %v8271_v12 = vunpack.c.l.b16 %v7133_v22  ;;  %v7300_v63 = vpop.permute.xlu0 %3108 }
 0x14c   : > { %v8272_v20 = vunpack.c.l.b16 %v6095_v30  ;;  %v4313_v2 = vsel %vm2836_vm10, %v4312_v47, %v4311_v10  ;;  %v1102_v32 = vrot.slane %v1095_v25, %v5906_v7  ;;  %v8273_v50 = vunpack.c.l.b16 %v7145_v26 }
 0x14d   : > { %v4440_v41 = vrot.slane %v8271_v12, 5  ;;  %v4315_v35 = vsel %vm2839_vm11, %v4314_v14, %v4313_v2  ;;  %v516_v44 = vsel %vm5983_vm13, 0, %v465_v16  ;;  %v4439_v53 = vsel %vm2830_vm6, %v4438_v27, %v4437_v4 }
 0x14e   : > { %v7286_v51 = vrot.slane %v8272_v20, 7  ;;  %v4442_v45 = vrot.slane %v8273_v50, 4  ;;  %v4444_v22 = vrot.slane %v7161_v11, 3  ;;  %v4317_v30 = vsel %vm2842_vm12, %v4316_v9, %v4315_v35 }
 0x14f   : > { %v1040_v29 = vcombine.high %v516_v44, %v516_v44  ;;  %v1047_v37 = vrot.slane %v516_v44, %v5906_v7  ;;  %v2735_v47 = vrot.slane %v1102_v32, %v5906_v7  ;;  %v4325_v26 = vpack.c.b16 %v7235_v59, %v4317_v30  ;;  %v7320_v44 = vpop.permute.xlu1 %3112  ;;  %v7324_v30 = vpop.permute.xlu0 %3110 }
 0x150   : > { %v4441_v14 = vsel %vm2833_vm7, %v4440_v41, %v4439_v53  ;;  %v4446_v39 = vrot.slane %v7163_v19, 2  ;;  %v4449_v25 = vrot.slane %v4197_v40, 1  ;;  %v4448_v27 = vrot.slane %v7167_v8, 1 }
 0x151   : > { %v1054_v4 = vrot.slane %v1040_v29, %v5906_v7  ;;  %v1055_v10 = vcombine.high %v1047_v37, %v1047_v37  ;;  %v1063_v11 = vrot.slane %v1047_v37, %v5906_v7  ;;  %v2742_v9 = vrot.slane %v2735_v47, %v5906_v7  ;;  %4340 = vrot.lane.b32.xlu0 %v4325_v26, %s5856_s22 }
 0x152   : > { %v4443_v16 = vsel %vm2836_vm10, %v4442_v45, %v4441_v14  ;;  %v4450_v12 = vsel %vm2824_vm2, %v4198_v48, %v4449_v25  ;;  %v4451_v41 = vrot.slane %v7254_v61, 7  ;;  %v4453_v45 = vrot.slane %v7258_v13, 6 }
 0x153   : > { %v1056_v20 = vcombine.high %v1054_v4, %v1054_v4  ;;  %v1070_v19 = vrot.slane %v1054_v4, %v5906_v7  ;;  %v1077_v40 = vrot.slane %v1055_v10, %v5906_v7  ;;  %v1085_v2 = vcombine.high %v1063_v11, %v1063_v11 }
 0x154   : > { %v2623_v32 = vrot.slane %v1063_v11, %v5906_v7  ;;  %v7316_v50 = vunpack.c.l.b16 %v2742_v9  ;;  %v4445_v35 = vsel %vm2839_vm11, %v4444_v22, %v4443_v16  ;;  %v4452_v22 = vsel %vm2827_vm4, %v4451_v41, %v4450_v12 }
 0x155   : > { %v1084_v8 = vrot.slane %v1056_v20, %v5906_v7  ;;  %v1086_v48 = vcombine.high %v1070_v19, %v1070_v19  ;;  %v1087_v61 = vcombine.high %v1077_v40, %v1077_v40  ;;  %v2637_v53 = vrot.slane %v1077_v40, %v5906_v7 }
 0x156   : > { %v7327_v29 = vrot.slane %v2623_v32, %v5906_v7  ;;  %v2651_v37 = vrot.slane %v1085_v2, %v5906_v7  ;;  %v2679_v47 = vrot.slane %v1070_v19, %v5906_v7  ;;  %v8275_v17 = vunpack.c.l.b16 %v7249_v23 }
 0x157   : > { %v1088_v13 = vcombine.high %v1084_v8, %v1084_v8  ;;  %v7333_v26 = vrot.slane %v2637_v53, %v5906_v7  ;;  %v2665_v14 = vrot.slane %v1087_v61, %v5906_v7  ;;  %v2693_v25 = vrot.slane %v1084_v8, %v5906_v7  ;;  %v7355_v8 = vpop.permute.xlu1 %3114 }
 0x158   : > { %v2658_v4 = vrot.slane %v2651_v37, %v5906_v7  ;;  %v7339_v10 = vrot.slane %v2679_v47, %v5906_v7  ;;  %v2707_v11 = vrot.slane %v1086_v48, %v5906_v7  ;;  %v8185_v9 = vunpack.c.l.b16 %v7327_v29  ;;  %v7362_v47 = vpop.permute.xlu0 %4326 }
 0x159   : > { %v2672_v16 = vrot.slane %v2665_v14, %v5906_v7  ;;  %v7345_v12 = vrot.slane %v2693_v25, %v5906_v7  ;;  %v2721_v41 = vrot.slane %v1088_v13, %v5906_v7  ;;  %v8187_v20 = vunpack.c.l.b16 %v7333_v26  ;;  %8274 = vst [vmem:[#allocation51_spill] sm:$0xff] %v7362_v47 }
 0x15a   : > { %v2714_v19 = vrot.slane %v2707_v11, %v5906_v7  ;;  %v7350_v40 = vunpack.c.l.b16 %v2658_v4  ;;  %v8188_v2 = vunpack.c.l.b16 %v7339_v10  ;;  %v3084_v32 = vrot.slane %v8185_v9, 1 }
 0x15b   : > { %v2728_v48 = vrot.slane %v2721_v41, %v5906_v7  ;;  %v7358_v61 = vunpack.c.l.b16 %v2672_v16  ;;  %v8191_v53 = vunpack.c.l.b16 %v7345_v12  ;;  %v3098_v37 = vrot.slane %v7316_v50, 1 }
 0x15c   : > { %v7364_v13 = vunpack.c.l.b16 %v2714_v19  ;;  %v3085_v14 = vsel %vm2824_vm2, %v8187_v20, %v3084_v32  ;;  %v3086_v25 = vrot.slane %v7350_v40, 7  ;;  %v3090_v4 = vrot.slane %v8188_v2, 5 }
 0x15d   : > { %v7372_v7 = vunpack.c.l.b16 %v2728_v48  ;;  %v3088_v11 = vrot.slane %v7358_v61, 6  ;;  %v3092_v16 = vrot.slane %v8191_v53, 4  ;;  %v4447_v41 = vsel %vm2842_vm12, %v4446_v39, %v4445_v35 }
 0x15e   : > { %v3087_v19 = vsel %vm2827_vm4, %v3086_v25, %v3085_v14  ;;  %v3094_v9 = vrot.slane %v7364_v13, 3  ;;  %v4470_v49 = vpack.c.b16 %v4448_v27, %v4447_v41  ;;  %v4454_v32 = vsel %vm2830_vm6, %v4453_v45, %v4452_v22  ;;  %v7392_v45 = vpop.permute.xlu1 %4328 }
 0x15f   : > { %v3089_v20 = vsel %vm2830_vm6, %v3088_v11, %v3087_v19  ;;  %v3096_v2 = vrot.slane %v7372_v7, 2  ;;  %v4455_v48 = vrot.slane %v4201_v58, 5  ;;  %v4457_v47 = vrot.slane %v8275_v17, 4  ;;  %v8279_v11 = vld [vmem:[#allocation18_spill] sm:$0xff] }
 0x160   : > { %v3091_v53 = vsel %vm2833_vm7, %v3090_v4, %v3089_v20  ;;  %4484 = vrot.lane.b32.xlu1 %v4470_v49, %s5857_s23  ;;  %v4459_v39 = vrot.slane %v7261_v57, 3  ;;  %v4461_v27 = vrot.slane %v7266_v62, 2  ;;  %v4463_v35 = vrot.slane %v7235_v59, 1  ;;  %v7399_v20 = vpop.permute.xlu0 %4330 }
 0x161   : > { %v3093_v22 = vsel %vm2836_vm10, %v3092_v16, %v3091_v53  ;;  %v4456_v56 = vsel %vm2833_vm7, %v4455_v48, %v4454_v32  ;;  %v2829_v58 = vrot.slane %v5956_v55, 5  ;;  %v8276_v17 = vunpack.c.l.b16 %v5934_v36  ;;  %v8278_v36 = vld [vmem:[#allocation3_spill] sm:$0xff]  ;;  %v8281_v32 = vld [vmem:[#allocation6_spill] sm:$0xff] }
 0x162   : > { %v3095_v49 = vsel %vm2839_vm11, %v3094_v9, %v3093_v22  ;;  %v4458_v57 = vsel %vm2836_vm10, %v4457_v47, %v4456_v56  ;;  %v8277_v62 = vunpack.c.l.b16 %v5943_v43  ;;  %v2838_v14 = vrot.slane %v5952_v52, 2  ;;  %v8286_v56 = vld [vmem:[#allocation11_spill] sm:$0xff] }
 0x163   : > { %v2832_v23 = vrot.slane %v8276_v17, 4  ;;  %v3097_v53 = vsel %vm2842_vm12, %v3096_v2, %v3095_v49  ;;  %v4460_v25 = vsel %vm2839_vm11, %v4459_v39, %v4458_v57  ;;  %v2831_v55 = vsel %vm2830_vm6, %v2829_v58, %v5971_v5  ;;  %v8283_v39 = vld [vmem:[#allocation8_spill] sm:$0xff]  ;;  %v4333_v49 = vpop.permute.xlu1 %4332 }
 0x164   : > { %v2835_v59 = vrot.slane %v8277_v62, 3  ;;  %v2841_v4 = vrot.slane %v8278_v36, 1  ;;  %v8280_v16 = vunpack.c.l.b16 %v8279_v11  ;;  %v3107_v9 = vpack.c.b16 %v3098_v37, %v3097_v53  ;;  %v8287_v17 = vld [vmem:[#allocation12_spill] sm:$0xff]  ;;  %v8293_v36 = vld [vmem:[#allocation2_spill] sm:$0xff] }
 0x165   : > { %v4462_v47 = vsel %vm2842_vm12, %v4461_v27, %v4460_v25  ;;  %v2834_v43 = vsel %vm2833_vm7, %v2832_v23, %v2831_v55  ;;  %v8282_v2 = vunpack.c.l.b16 %v8281_v32  ;;  %v8284_v5 = vunpack.c.l.b16 %v8283_v39  ;;  %v8291_v25 = vld [vmem:[#allocation10_spill] sm:$0xff] }
 0x166   : > { %v2872_v41 = vrot.slane %v8280_v16, 7  ;;  %v4471_v19 = vpack.c.b16 %v4463_v35, %v4462_v47  ;;  %v2837_v52 = vsel %vm2836_vm10, %v2835_v59, %v2834_v43  ;;  %3124 = vrot.lane.b32.xlu0 %v3107_v9, %s5855_s21  ;;  %v8285_v27 = vrot.slane %v6040_v18, 6  ;;  %v7439_v18 = vpop.permute.xlu0 %4472  ;;  %v8294_v9 = vld [vmem:[#allocation13_spill] sm:$0xff] }
 0x167   : > { %v2859_v48 = vsel %vm2824_vm2, %v6614_v3, %v8282_v2  ;;  %v2845_v22 = vsel %vm2824_vm2, %v7286_v51, %v8284_v5  ;;  %v2840_v37 = vsel %vm2839_vm11, %v2838_v14, %v2837_v52  ;;  %v2846_v58 = vrot.slane %v8286_v56, 6  ;;  %v8289_v51 = vld [vmem:[#allocation9_spill] sm:$0xff]  ;;  %v8295_v52 = vld [vmem:[#allocation15_spill] sm:$0xff]  ;;  %v8296_v2 = vld [vmem:[#allocation16_spill] sm:$0xff] }
 0x168   : > { %v2861_v35 = vsel %vm2827_vm4, %v8285_v27, %v2859_v48  ;;  %v2848_v23 = vrot.slane %v8287_v17, 5  ;;  %v2843_v3 = vsel %vm2842_vm12, %v2841_v4, %v2840_v37  ;;  %v8288_v57 = vrot.slane %v6046_v21, 5  ;;  %v8300_v27 = vld [vmem:[#allocation21_spill] sm:$0xff] }
 0x169   : > { %v8290_v59 = vunpack.c.l.b16 %v8289_v51  ;;  %v8292_v14 = vunpack.c.l.b16 %v8291_v25  ;;  %v7442_v11 = vpack.c.b16 %v8293_v36, %v2843_v3  ;;  %v2847_v4 = vsel %vm2827_vm4, %v2846_v58, %v2845_v22  ;;  %v8302_v58 = vld [vmem:[#allocation22_spill] sm:$0xff] }
 0x16a   : > { %v2863_v62 = vsel %vm2830_vm6, %v8288_v57, %v2861_v35  ;;  %v2854_v21 = vrot.slane %v8294_v9, 2  ;;  %v2849_v43 = vsel %vm2830_vm6, %v2848_v23, %v2847_v4  ;;  %v2856_v32 = vrot.slane %v8295_v52, 1  ;;  %4486 = vrot.lane.b32.xlu0 %v4471_v19, %s5857_s23  ;;  %v8303_v19 = vld [vmem:[#allocation19_spill] sm:$0xff]  ;;  %v8309_v4 = vld [vmem:[#allocation24_spill] sm:$0xff]  ;;  %v8311_v52 = vld [vmem:[#allocation14_spill] sm:$0xff] }
 0x16b   : > { %v2850_v53 = vrot.slane %v8290_v59, 4  ;;  %v2852_v55 = vrot.slane %v8292_v14, 3  ;;  %v2865_v16 = vsel %vm2833_vm7, %v6629_v15, %v2863_v62  ;;  %v8297_v48 = vunpack.c.l.b16 %v8296_v2  ;;  %4342 = vrot.lane.b32.xlu1 %v7442_v11, %s5856_s22  ;;  %v8305_v57 = vld [vmem:[#allocation7_spill] sm:$0xff]  ;;  %v8306_v59 = vld [vmem:[#allocation20_spill] sm:$0xff]  ;;  %v4475_v14 = vpop.permute.xlu1 %4474 }
 0x16c   : > { %v2867_v47 = vsel %vm2836_vm10, %v6842_v54, %v2865_v16  ;;  %v8298_v5 = vunpack.c.l.b16 %v6652_v42  ;;  %v8299_v15 = vrot.slane %v6049_v24, 2  ;;  %v2874_v35 = vrot.slane %v8300_v27, 6 }
 0x16d   : > { %v2873_v39 = vsel %vm2824_vm2, %v2872_v41, %v8297_v48  ;;  %v2851_v22 = vsel %vm2833_vm7, %v2850_v53, %v2849_v43  ;;  %v8301_v56 = vrot.slane %v6057_v28, 1  ;;  %v2876_v17 = vrot.slane %v8302_v58, 5  ;;  %v8310_v43 = vld [vmem:[#allocation5_spill] sm:$0xff] }
 0x16e   : > { %v2886_v37 = vrot.slane %v8298_v5, 7  ;;  %v2869_v54 = vsel %vm2839_vm11, %v8299_v15, %v2867_v47  ;;  %v2853_v42 = vsel %vm2836_vm10, %v2852_v55, %v2851_v22  ;;  %v8304_v23 = vunpack.c.l.b16 %v8303_v19  ;;  %v8308_v55 = vld [vmem:[#allocation23_spill] sm:$0xff]  ;;  %v3117_v47 = vpop.permute.xlu0 %3116  ;;  %4488 = vrot.lane.b32.xlu0 %v8310_v43, %s5857_s23 }
 0x16f   : > { %v2871_v41 = vsel %vm2842_vm12, %v8301_v56, %v2869_v54  ;;  %v2855_v24 = vsel %vm2839_vm11, %v2854_v21, %v2853_v42  ;;  %v2875_v51 = vsel %vm2827_vm4, %v2874_v35, %v2873_v39  ;;  %v8307_v53 = vunpack.c.l.b16 %v8306_v59  ;;  %v8313_v35 = vld [vmem:[#allocation17_spill] sm:$0xff]  ;;  %v4477_v42 = vpop.permute.xlu1 %4476 }
 0x170   : > { %v2878_v3 = vrot.slane %v8304_v23, 4  ;;  %v2958_v62 = vpack.c.b16 %v8305_v57, %v2871_v41  ;;  %v2857_v28 = vsel %vm2842_vm12, %v2856_v32, %v2855_v24  ;;  %v2877_v36 = vsel %vm2830_vm6, %v2876_v17, %v2875_v51 }
 0x171   : > { %v2880_v25 = vrot.slane %v8307_v53, 3  ;;  %v2882_v16 = vrot.slane %v8308_v55, 2  ;;  %v2884_v9 = vrot.slane %v8309_v4, 1  ;;  %v2957_v21 = vpack.c.b16 %v8311_v52, %v2857_v28 }
 0x172   : > { %v2879_v2 = vsel %vm2833_vm7, %v2878_v3, %v2877_v36  ;;  %v4499_v32 = vsel %vm4490_vm14, %v2958_v62, %v7320_v44  ;;  %vm4537_vm0 = vcmask 97280   ;;  %v8312_v22 = vunpack.c.l.b16 %v6647_v0  ;;  %v4479_v0 = vpop.permute.xlu0 %4478 }
 0x173   : > { %v2881_v48 = vsel %vm2836_vm10, %v2880_v25, %v2879_v2  ;;  %v4496_v39 = vsel %vm4490_vm14, %v2957_v21, %v7324_v30  ;;  %v2888_v30 = vrot.slane %v6669_v46, 6  ;;  %v2890_v41 = vrot.slane %v6675_v1, 5  ;;  %v4335_v24 = vpop.permute.xlu1 %4334 }
 0x174   : > { %v2883_v5 = vsel %vm2839_vm11, %v2882_v16, %v2881_v48  ;;  %v4522_v54 = vsel %vm4518_vm15, %v4496_v39, %v7392_v45  ;;  %v2887_v27 = vsel %vm2824_vm2, %v2886_v37, %v8312_v22  ;;  %v4524_v58 = vsel %vm4518_vm15, %v4499_v32, %v7399_v20 }
 0x175   : > { %v2885_v15 = vsel %vm2842_vm12, %v2884_v9, %v2883_v5  ;;  %v7499_v44 = vsel %vm4537_vm0, %v4522_v54, %v4475_v14  ;;  %v8314_v45 = vunpack.c.l.b16 %v6658_v38  ;;  %v2889_v19 = vsel %vm2827_vm4, %v2888_v30, %v2887_v27  ;;  %v8322_v5 = vld [vmem:[#allocation25_spill] sm:$0xff] }
 0x176   : > { %v2959_v56 = vpack.c.b16 %v8313_v35, %v2885_v15  ;;  %4628 = vrot.lane.b32.xlu1 %v7499_v44, %s5858_s24  ;;  %v8315_v46 = vunpack.c.l.b16 %v6664_v60  ;;  %v2896_v23 = vrot.slane %v6680_v31, 2  ;;  %v2891_v38 = vsel %vm2830_vm6, %v2890_v41, %v2889_v19  ;;  %v4481_v51 = vpop.permute.xlu0 %4480  ;;  %v8324_v54 = vld [vmem:[#allocation29_spill] sm:$0xff]  ;;  %v8325_v35 = vld [vmem:[#allocation26_spill] sm:$0xff] }
 0x177   : > { %v2892_v17 = vrot.slane %v8314_v45, 4  ;;  %v2898_v3 = vrot.slane %v6688_v6, 1  ;;  %v7519_v57 = vsel %vm4537_vm0, %v4524_v58, %v4477_v42  ;;  %v8316_v14 = vunpack.c.l.b16 %v7333_v26  ;;  %v8327_v42 = vld [vmem:[#allocation27_spill] sm:$0xff] }
 0x178   : > { %v4502_v37 = vsel %vm4490_vm14, %v2959_v56, %v7355_v8  ;;  %v2894_v1 = vrot.slane %v8315_v46, 3  ;;  %4630 = vrot.lane.b32.xlu0 %v7519_v57, %s5858_s24  ;;  %v8317_v36 = vunpack.c.l.b16 %v7327_v29  ;;  %v2946_v16 = vrot.slane %v7358_v61, 5  ;;  %v8330_v46 = vld [vmem:[#allocation31_spill] sm:$0xff] }
 0x179   : > { %v4526_v20 = vsel %vm4518_vm15, %v4502_v37, %v4333_v49  ;;  %v2893_v62 = vsel %vm2833_vm7, %v2892_v17, %v2891_v38  ;;  %v2942_v28 = vrot.slane %v8316_v14, 7  ;;  %v8318_v4 = vunpack.c.l.b16 %v7339_v10  ;;  %v3119_v17 = vpop.permute.xlu1 %3118 }
 0x17a   : > { %v7523_v8 = vsel %vm4537_vm0, %v4526_v20, %v4479_v0  ;;  %v2895_v60 = vsel %vm2836_vm10, %v2894_v1, %v2893_v62  ;;  %v2952_v52 = vrot.slane %v7364_v13, 2  ;;  %v2954_v29 = vrot.slane %v7372_v7, 1  ;;  %v8321_v13 = vld [vmem:[#allocation28_spill] sm:$0xff]  ;;  %v8329_v0 = vld [vmem:[#allocation30_spill] sm:$0xff]  ;;  %v3121_v38 = vpop.permute.xlu0 %3120 }
 0x17b   : > { %4632 = vrot.lane.b32.xlu1 %v7523_v8, %s5858_s24  ;;  %v2897_v31 = vsel %vm2839_vm11, %v2896_v23, %v2895_v60  ;;  %v2943_v55 = vsel %vm2824_vm2, %v2942_v28, %v8317_v36  ;;  %v2948_v9 = vrot.slane %v8318_v4, 4  ;;  %v8320_v48 = vunpack.c.l.b16 %v6806_v33  ;;  %v8331_v62 = vld [vmem:[#allocation32_spill] sm:$0xff]  ;;  %v8334_v36 = vld [vmem:[#allocation37_spill] sm:$0xff] }
 0x17c   : > { %v2899_v6 = vsel %vm2842_vm12, %v2898_v3, %v2897_v31  ;;  %v2902_v39 = vrot.slane %v8321_v13, 6  ;;  %v8323_v15 = vunpack.c.l.b16 %v8322_v5  ;;  %v2904_v22 = vrot.slane %v8324_v54, 5  ;;  %v8344_v5 = vld [vmem:[#allocation46_spill] sm:$0xff] }
 0x17d   : > { %v2960_v49 = vpack.c.b16 %v6678_v34, %v2899_v6  ;;  %v2944_v34 = vrot.slane %v7350_v40, 6  ;;  %v2900_v32 = vrot.slane %v8320_v48, 7  ;;  %v8326_v56 = vunpack.c.l.b16 %v8325_v35  ;;  %v8342_v48 = vld [vmem:[#allocation36_spill] sm:$0xff] }
 0x17e   : > { %v8328_v58 = vunpack.c.l.b16 %v8327_v42  ;;  %v2910_v37 = vrot.slane %v8329_v0, 2  ;;  %v2912_v1 = vrot.slane %v8330_v46, 1  ;;  %vm5370_vm1 = vcmask 1043456  }
 0x17f   : > { %v4505_v59 = vsel %vm4490_vm14, %v2960_v49, %v3117_v47  ;;  %v8319_v47 = vunpack.c.l.b16 %v7345_v12  ;;  %v2945_v26 = vsel %vm2827_vm4, %v2944_v34, %v2943_v55  ;;  %v2901_v7 = vsel %vm2824_vm2, %v2900_v32, %v8323_v15  ;;  %v8335_v34 = vld [vmem:[#allocation33_spill] sm:$0xff] }
 0x180   : > { %v4528_v53 = vsel %vm4518_vm15, %v4505_v59, %v4335_v24  ;;  %v2947_v21 = vsel %vm2830_vm6, %v2946_v16, %v2945_v26  ;;  %v2903_v27 = vsel %vm2827_vm4, %v2902_v39, %v2901_v7  ;;  %v2906_v30 = vrot.slane %v8326_v56, 4  ;;  %v8338_v26 = vld [vmem:[#allocation35_spill] sm:$0xff]  ;;  %v8345_v7 = vld [vmem:[#allocation42_spill] sm:$0xff] }
 0x181   : > { %v7536_v25 = vsel %vm4537_vm0, %v4528_v53, %v4481_v51  ;;  %v2950_v43 = vrot.slane %v8319_v47, 3  ;;  %v2949_v2 = vsel %vm2833_vm7, %v2948_v9, %v2947_v21  ;;  %v2905_v41 = vsel %vm2830_vm6, %v2904_v22, %v2903_v27  ;;  %v8332_v53 = vld [vmem:[#allocation34_spill] sm:$0xff]  ;;  %v8347_v27 = vld [vmem:[#allocation40_spill] sm:$0xff] }
 0x182   : > { %4634 = vrot.lane.b32.xlu0 %v7536_v25, %s5858_s24  ;;  %v2908_v45 = vrot.slane %v8328_v58, 3  ;;  %v2907_v33 = vsel %vm2833_vm7, %v2906_v30, %v2905_v41  ;;  %v8333_v14 = vunpack.c.l.b16 %v8332_v53  ;;  %v2916_v55 = vrot.slane %v8334_v36, 6  ;;  %v8337_v9 = vld [vmem:[#allocation38_spill] sm:$0xff]  ;;  %v8348_v30 = vld [vmem:[#allocation47_spill] sm:$0xff]  ;;  %v8349_v58 = vld [vmem:[#allocation41_spill] sm:$0xff] }
 0x183   : > { %v2951_v40 = vsel %vm2836_vm10, %v2950_v43, %v2949_v2  ;;  %v8336_v16 = vunpack.c.l.b16 %v8335_v34  ;;  %v2918_v47 = vrot.slane %v8337_v9, 5  ;;  %v8343_v32 = vunpack.c.l.b16 %v8342_v48  ;;  %v8356_v53 = vld [vmem:[#allocation50_spill] sm:$0xff] }
 0x184   : > { %v2953_v61 = vsel %vm2839_vm11, %v2952_v52, %v2951_v40  ;;  %v2909_v19 = vsel %vm2836_vm10, %v2908_v45, %v2907_v33  ;;  %v2914_v28 = vrot.slane %v8333_v14, 7  ;;  %v8339_v52 = vunpack.c.l.b16 %v8338_v26 }
 0x185   : > { %v7559_v10 = vsel %vm2842_vm12, %v2954_v29, %v2953_v61  ;;  %v2911_v23 = vsel %vm2839_vm11, %v2910_v37, %v2909_v19  ;;  %v8340_v29 = vld [vmem:[#allocation43_spill] sm:$0xff]  ;;  %v2922_v13 = vrot.slane %v8343_v32, 3  ;;  %v2930_v15 = vrot.slane %v8344_v5, 6 }
 0x186   : > { %v2964_v12 = vpack.c.b16 %v7316_v50, %v7559_v10  ;;  %v2913_v3 = vsel %vm2842_vm12, %v2912_v1, %v2911_v23  ;;  %v2915_v4 = vsel %vm2824_vm2, %v2914_v28, %v8336_v16  ;;  %v2920_v21 = vrot.slane %v8339_v52, 4  ;;  %v8352_v1 = vld [vmem:[#allocation45_spill] sm:$0xff] }
 0x187   : > { %v2961_v60 = vpack.c.b16 %v8331_v62, %v2913_v3  ;;  %v2917_v43 = vsel %vm2827_vm4, %v2916_v55, %v2915_v4  ;;  %v8341_v2 = vunpack.c.l.b16 %v8340_v29  ;;  %v8346_v54 = vunpack.c.l.b16 %v8345_v7  ;;  %v5838_v7 = vld [vmem:[%s8082_s1 + $0x8] sm:$0xff]  }
 0x188   : > { %v2919_v61 = vsel %vm2830_vm6, %v2918_v47, %v2917_v43  ;;  %v2924_v35 = vrot.slane %v8347_v27, 2  ;;  %v2932_v41 = vrot.slane %v8348_v30, 5  ;;  %v2926_v45 = vrot.slane %v8349_v58, 1  ;;  %v8357_v47 = vld [vmem:[#allocation51_spill] sm:$0xff]  ;;  %v5839_v30 = vld [vmem:[%s8082_s1] sm:$0xff]  }
 0x189   : > { %v3123_v20 = vpop.permute.xlu1 %3122  ;;  %v4508_v49 = vsel %vm4490_vm14, %v2961_v60, %v3119_v17  ;;  %v2928_v40 = vrot.slane %v8341_v2, 7  ;;  %v2921_v39 = vsel %vm2833_vm7, %v2920_v21, %v2919_v61  ;;  %v8350_v17 = vld [vmem:[#allocation44_spill] sm:$0xff]  ;;  %v8353_v23 = vunpack.c.l.b16 %v8352_v1  ;;  %v8354_v60 = vld [vmem:[#allocation39_spill] sm:$0xff] }
 0x18a   : > { %v2923_v56 = vsel %vm2836_vm10, %v2922_v13, %v2921_v39  ;;  %v8351_v0 = vunpack.c.l.b16 %v8350_v17  ;;  %v2940_v14 = vrot.slane %v8356_v53, 1  ;;  %v4493_v4 = vsel %vm4490_vm14, %v7442_v11, %v7300_v63  ;;  %v5836_v63 = vld [vmem:[%s8082_s1 + $0x18] sm:$0xff]   ;;  %v5837_v2 = vld [vmem:[%s8082_s1 + $0x10] sm:$0xff]  }
 0x18b   : > { %v2929_v22 = vsel %vm2824_vm2, %v2928_v40, %v8346_v54  ;;  %v2925_v33 = vsel %vm2839_vm11, %v2924_v35, %v2923_v56  ;;  %v2936_v3 = vrot.slane %v8353_v23, 3  ;;  %v4520_v43 = vsel %vm4518_vm15, %v4493_v4, %v8357_v47  ;;  %5778 = vmatprep.subr.bf16.mxu0 %v5836_v63 }
 0x18c   : > { %v2931_v42 = vsel %vm2827_vm4, %v2930_v15, %v2929_v22  ;;  %v2934_v37 = vrot.slane %v8351_v0, 4  ;;  %v2927_v46 = vsel %vm2842_vm12, %v2926_v45, %v2925_v33  ;;  %5779 = vmatpush3.bf16.msra.mxu0 %v5836_v63  ;;  %v4570_v61 = vshll.u32 %v7519_v57, 16 }
 0x18d   : > { %v2933_v19 = vsel %vm2830_vm6, %v2932_v41, %v2931_v42  ;;  %5780 = vmatprep.subr.bf16.mxu0 %v5837_v2  ;;  %v4576_v50 = vshll.u32 %v7523_v8, 16  ;;  %v4562_v35 = vshrl.u32 %v7499_v44, 16  ;;  %v4568_v56 = vshrl.u32 %v7519_v57, 16 }
 0x18e   : > { %v2935_v62 = vsel %vm2833_vm7, %v2934_v37, %v2933_v19  ;;  %v4572_v54 = vrot.slane %v4570_v61, 1  ;;  %v4574_v45 = vshrl.u32 %v7523_v8, 16  ;;  %v4582_v33 = vshll.u32 %v7536_v25, 16 }
 0x18f   : > { %v4578_v58 = vrot.slane %v4576_v50, 1  ;;  %vm4666_vm2 = vcmask 130048   ;;  %vm4683_vm4 = vcmask 261120   ;;  %vm4700_vm6 = vcmask 392192  }
 0x190   : > { %5781 = vmatpush3.bf16.msra.mxu0 %v5837_v2  ;;  %v4573_v41 = vor.u32 %v4572_v54, %v4568_v56  ;;  %v4584_v19 = vrot.slane %v4582_v33, 1  ;;  %vm4769_vm7 = vcmask 523264   ;;  %vm5235_vm3 = vcmask 326656  }
 0x191   : > { %5782 = vmatprep.subr.bf16.mxu0 %v5838_v7  ;;  %v4579_v17 = vor.u32 %v4578_v58, %v4574_v45  ;;  %vm5268_vm5 = vcmask 457728   ;;  %vm5357_vm9 = vcmask 588800  }
 0x194   : > { %5783 = vmatpush3.bf16.msra.mxu0 %v5838_v7 }
 0x195   : > { %5784 = vmatprep.subr.bf16.mxu0 %v5839_v30 }
 0x198   : > { %5785 = vmatpush3.bf16.msra.mxu0 %v5839_v30 }
 0x19e   : > { %v4337_v6 = vpop.permute.xlu0 %4336 }
 0x19f   : > { %v4530_v24 = vsel %vm4518_vm15, %v4508_v49, %v4337_v6  ;;  %v2962_v6 = vpack.c.b16 %v8354_v60, %v2927_v46  ;;  %v8355_v49 = vld [vmem:[#allocation49_spill] sm:$0xff]  ;;  %v4580_v46 = vshrl.u32 %v7536_v25, 16 }
 0x1a1   : > { %v4511_v28 = vsel %vm4490_vm14, %v2962_v6, %v3121_v38  ;;  %v7643_v38 = vsel %vm4537_vm0, %v4520_v43, %v7439_v18  ;;  %v4564_v18 = vshll.u32 %v7499_v44, 16  ;;  %v4585_v23 = vor.u32 %v4584_v19, %v4580_v46 }
 0x1a2   : > { %v4558_v11 = vshll.u32 %v7643_v38, 16  ;;  %v4556_v5 = vshrl.u32 %v7643_v38, 16 }
 0x1a3   : > { %v4566_v22 = vrot.slane %v4564_v18, 1 }
 0x1a4   : > { %v4560_v40 = vrot.slane %v4558_v11, 1 }
 0x1a5   : > { %v4567_v42 = vor.u32 %v4566_v22, %v4562_v35 }
 0x1ac   : > { %v4339_v31 = vpop.permute.xlu1 %4338 }
 0x1ad   : > { %v4532_v55 = vsel %vm4518_vm15, %v4511_v28, %v4339_v31  ;;  %v8358_v31 = vld [vmem:[#allocation48_spill] sm:$0xff] }
 0x1b1   : > { %v4483_v51 = vpop.permute.xlu1 %4482 }
 0x1b2   : > { %v7586_v59 = vsel %vm4537_vm0, %v4530_v24, %v4483_v51  ;;  %v2938_v24 = vrot.slane %v8355_v49, 2  ;;  %v2937_v51 = vsel %vm2836_vm10, %v2936_v3, %v2935_v62  ;;  %vm4951_vm10 = vcmask 1044480  }
 0x1b3   : > { %4636 = vrot.lane.b32.xlu1 %v7586_v59, %s5858_s24  ;;  %v4588_v0 = vshll.u32 %v7586_v59, 16  ;;  %v4586_v60 = vshrl.u32 %v7586_v59, 16 }
 0x1b4   : > { %v2939_v36 = vsel %vm2839_vm11, %v2938_v24, %v2937_v51  ;;  %vm4952_vm11 = vsmask.f32 4352 }
 0x1b5   : > { %v2941_v26 = vsel %vm2842_vm12, %v2940_v14, %v2939_v36  ;;  %v4590_v62 = vrot.slane %v4588_v0, 1  ;;  %vm7751_vm12 = vmand %vm4951_vm10, %vm4952_vm11 }
 0x1b6   : > { %v2963_v52 = vpack.c.b16 %v8358_v31, %v2941_v26 }
 0x1b7   : > { %v4591_v24 = vor.u32 %v4590_v62, %v4586_v60 }
 0x1b8   : > { %v4514_v29 = vsel %vm4490_vm14, %v2963_v52, %v3123_v20 }
 0x1c3   : > { %v4341_v34 = vpop.permute.xlu0 %4340 }
 0x1c4   : > { %v4534_v48 = vsel %vm4518_vm15, %v4514_v29, %v4341_v34 }
 0x1d2   : > { %v4485_v16 = vpop.permute.xlu1 %4484 }
 0x1d3   : > { %v7634_v9 = vsel %vm4537_vm0, %v4532_v55, %v4485_v16  ;;  %v8359_v16 = vmov 0  }
 0x1d4   : > { %4638 = vrot.lane.b32.xlu0 %v7634_v9, %s5858_s24  ;;  %v4594_v37 = vshll.u32 %v7634_v9, 16  ;;  %v4592_v6 = vshrl.u32 %v7634_v9, 16 }
 0x1d6   : > { %v4596_v3 = vrot.slane %v4594_v37, 1 }
 0x1d8   : > { %v3125_v21 = vpop.permute.xlu0 %3124  ;;  %v4597_v49 = vor.u32 %v4596_v3, %v4592_v6 }
 0x1d9   : > { %v4517_v39 = vsel %vm4490_vm14, %v2964_v12, %v3125_v21  ;;  %v4561_v12 = vor.u32 %v4560_v40, %v4556_v5  ;;  %vm5530_vm14 = vcmask 60416  }
 0x1dc   : > { %v4487_v32 = vpop.permute.xlu0 %4486 }
 0x1dd   : > { %v4343_v13 = vpop.permute.xlu1 %4342  ;;  %v7662_v20 = vsel %vm4537_vm0, %v4534_v48, %v4487_v32 }
 0x1de   : > { %4640 = vrot.lane.b32.xlu1 %v7662_v20, %s5858_s24  ;;  %v4536_v15 = vsel %vm4518_vm15, %v4517_v39, %v4343_v13  ;;  %v4600_v1 = vshll.u32 %v7662_v20, 16  ;;  %v4598_v53 = vshrl.u32 %v7662_v20, 16 }
 0x1e0   : > { %v4489_v10 = vpop.permute.xlu0 %4488  ;;  %v4602_v51 = vrot.slane %v4600_v1, 1 }
 0x1e1   : > { %v4555_v27 = vsel %vm4537_vm0, %v4536_v15, %v4489_v10 }
 0x1e2   : > { %4604 = vrot.lane.b32.xlu1 %v4561_v12, %s5859_s5  ;;  %4642 = vrot.lane.b32.xlu0 %v4555_v27, %s5858_s24  ;;  %v4646_v14 = vshll.u32 %v4555_v27, 16  ;;  %v4603_v28 = vor.u32 %v4602_v51, %v4598_v53  ;;  %v4644_v55 = vshrl.u32 %v4555_v27, 16 }
 0x1e4   : > { %v4648_v36 = vrot.slane %v4646_v14, 1 }
 0x1e6   : > { %4608 = vrot.lane.b32.xlu1 %v4573_v41, %s5859_s5  ;;  %4606 = vrot.lane.b32.xlu0 %v4567_v42, %s5859_s5  ;;  %v4649_v34 = vor.u32 %v4648_v36, %v4644_v55 }
 0x1e8   : > { %v4629_v4 = vpop.permute.xlu1 %4628 }
 0x1ea   : > { %4650 = vrot.lane.b32.xlu1 %v4567_v42, %s5860_s8  ;;  %4610 = vrot.lane.b32.xlu0 %v4579_v17, %s5859_s5  ;;  %v4631_v47 = vpop.permute.xlu0 %4630 }
 0x1ed   : > { %v4633_v43 = vpop.permute.xlu1 %4632 }
 0x1ee   : > { %4654 = vrot.lane.b32.xlu1 %v4579_v17, %s5860_s8  ;;  %4652 = vrot.lane.b32.xlu0 %v4573_v41, %s5860_s8 }
 0x1f2   : > { %4612 = vrot.lane.b32.xlu1 %v4585_v23, %s5859_s5  ;;  %4656 = vrot.lane.b32.xlu0 %v4585_v23, %s5860_s8 }
 0x1f4   : > { %v4635_v26 = vpop.permute.xlu0 %4634 }
 0x1f6   : > { %4616 = vrot.lane.b32.xlu1 %v4597_v49, %s5859_s5  ;;  %4614 = vrot.lane.b32.xlu0 %v4591_v24, %s5859_s5 }
 0x1fa   : > { %4658 = vrot.lane.b32.xlu1 %v4591_v24, %s5860_s8  ;;  %4618 = vrot.lane.b32.xlu0 %v4603_v28, %s5859_s5 }
 0x1fe   : > { %4662 = vrot.lane.b32.xlu1 %v4603_v28, %s5860_s8  ;;  %4660 = vrot.lane.b32.xlu0 %v4597_v49, %s5860_s8 }
 0x202   : > { %4664 = vrot.lane.b32.xlu0 %v4649_v34, %s5860_s8 }
 0x206   : > { %5136 = vrot.lane.b32.xlu0 %v8359_v16, %s5860_s8 }
 0x225   : > { %v4637_v31 = vpop.permute.xlu1 %4636 }
 0x246   : > { %v4639_v52 = vpop.permute.xlu0 %4638 }
 0x250   : > { %v4641_v63 = vpop.permute.xlu1 %4640 }
 0x254   : > { %v4605_v11 = vpop.permute.xlu1 %4604  ;;  %v4643_v21 = vpop.permute.xlu0 %4642 }
 0x255   : > { %v4668_v61 = vsel %vm4666_vm2, %v7643_v38, %v4605_v11 }
 0x256   : > { %v4685_v32 = vsel %vm4683_vm4, %v4668_v61, %v4629_v4 }
 0x258   : > { %v4609_v29 = vpop.permute.xlu1 %4608  ;;  %v4607_v2 = vpop.permute.xlu0 %4606 }
 0x259   : > { %v4670_v48 = vsel %vm4666_vm2, %v7499_v44, %v4607_v2  ;;  %v4672_v15 = vsel %vm4666_vm2, %v7519_v57, %v4609_v29 }
 0x25a   : > { %v4687_v39 = vsel %vm4683_vm4, %v4670_v48, %v4631_v47  ;;  %v4689_v10 = vsel %vm4683_vm4, %v4672_v15, %v4633_v43 }
 0x25c   : > { %v4651_v40 = vpop.permute.xlu1 %4650  ;;  %v4611_v18 = vpop.permute.xlu0 %4610 }
 0x25d   : > { %v4702_v7 = vsel %vm4700_vm6, %v4685_v32, %v4651_v40  ;;  %v4674_v38 = vsel %vm4666_vm2, %v7523_v8, %v4611_v18 }
 0x25e   : > { %v4691_v54 = vsel %vm4683_vm4, %v4674_v38, %v4635_v26 }
 0x260   : > { %v4655_v13 = vpop.permute.xlu1 %4654  ;;  %v4653_v5 = vpop.permute.xlu0 %4652 }
 0x261   : > { %v4704_v50 = vsel %vm4700_vm6, %v4687_v39, %v4653_v5  ;;  %v4706_v27 = vsel %vm4700_vm6, %v4689_v10, %v4655_v13 }
 0x262   : > { %v5692_v44 = vcombine.low %v4702_v7, %v4704_v50 }
 0x264   : > { %v4613_v12 = vpop.permute.xlu1 %4612  ;;  %5786 = vmatprep.mubr.msk.bf16.mxu0 %vm4769_vm7, %v5692_v44  ;;  %v4657_v22 = vpop.permute.xlu0 %4656 }
 0x265   : > { %v4708_v57 = vsel %vm4700_vm6, %v4691_v54, %v4657_v22  ;;  %v4676_v42 = vsel %vm4666_vm2, %v7536_v25, %v4613_v12 }
 0x266   : > { %v5693_v35 = vcombine.low %v4706_v27, %v4708_v57  ;;  %v4693_v45 = vsel %vm4683_vm4, %v4676_v42, %v4637_v31 }
 0x268   : > { %v4617_v56 = vpop.permute.xlu1 %4616  ;;  %5787 = vmatmul.mubr.msk.bf16.vlgmr.msra.gmra.mxu0 %vm4769_vm7, %v5693_v35  ;;  %v4615_v8 = vpop.permute.xlu0 %4614 }
 0x269   : > { %v4678_v58 = vsel %vm4666_vm2, %v7586_v59, %v4615_v8  ;;  %v4680_v0 = vsel %vm4666_vm2, %v7634_v9, %v4617_v56 }
 0x26a   : > { %v4695_v33 = vsel %vm4683_vm4, %v4678_v58, %v4639_v52  ;;  %v4697_v23 = vsel %vm4683_vm4, %v4680_v0, %v4641_v63 }
 0x26c   : > { %v4659_v30 = vpop.permute.xlu1 %4658  ;;  %v4619_v41 = vpop.permute.xlu0 %4618 }
 0x26d   : > { %v4710_v37 = vsel %vm4700_vm6, %v4693_v45, %v4659_v30  ;;  %v4682_v19 = vsel %vm4666_vm2, %v7662_v20, %v4619_v41  ;;  %v7743_v20 = vrot.slane %v8359_v16, 1 }
 0x26e   : > { %v4699_v59 = vsel %vm4683_vm4, %v4682_v19, %v4643_v21 }
 0x26f   : > { %5018 = vrot.lane.b32.xlu1 %v7743_v20, %s5856_s22  ;;  %5152 = vrot.lane.b32.xlu0 %v7743_v20, %s5861_s9 }
 0x270   : > { %v4661_v17 = vpop.permute.xlu0 %4660  ;;  %v4663_v1 = vpop.permute.xlu1 %4662 }
 0x271   : > { %v4712_v46 = vsel %vm4700_vm6, %v4695_v33, %v4661_v17  ;;  %v4714_v62 = vsel %vm4700_vm6, %v4697_v23, %v4663_v1 }
 0x272   : > { %v5694_v25 = vcombine.low %v4710_v37, %v4712_v46 }
 0x273   : > { %5049 = vrot.lane.b32.xlu1 %v7743_v20, %s5859_s5 }
 0x274   : > { %5790 = vmatprep.mubr.msk.bf16.mxu0 %vm4769_vm7, %v5694_v25  ;;  %v4665_v3 = vpop.permute.xlu0 %4664 }
 0x275   : > { %v4716_v9 = vsel %vm4700_vm6, %v4699_v59, %v4665_v3 }
 0x276   : > { %v5695_v60 = vcombine.low %v4714_v62, %v4716_v9 }
 0x278   : > { %5791 = vmatmul.mubr.msk.bf16.gmra.mxu0 %vm4769_vm7, %v5695_v60 }
 0x328   : > { %v5788_v6 = vpop.f32.mrf.mxu0 }
 0x329   : > { %v4849_v49 = vmax.f32 %v5788_v6, 0.0 }
 0x32a   : > { %v4816_v24 = vpop.f32.mrf.mxu0 }
 0x32b   : > { %v5747_v51 = vpack.c.bf16 %v4849_v49, %v4849_v49  ;;  %v4847_v53 = vmax.f32 %v4816_v24, 0.0 }
 0x32c   : > { %v5789_v14 = vpop.f32.mrf.mxu0 }
 0x32d   : > { %v4894_v28 = vshrl.u32 %v5747_v51, 16  ;;  %v5745_v36 = vpack.c.bf16 %v4847_v53, %v4847_v53  ;;  %v4850_v55 = vmax.f32 %v5789_v14, 0.0  ;;  %v4897_v16 = vshll.u32 %v5747_v51, 16 }
 0x32e   : > { %v4819_v63 = vpop.f32.mrf.mxu0 }
 0x32f   : > { %v4896_v34 = vrot.slane %v4894_v28, 7  ;;  %v4880_v4 = vshrl.u32 %v5745_v36, 16  ;;  %v4883_v31 = vshll.u32 %v5745_v36, 16  ;;  %v5748_v52 = vpack.c.bf16 %v4850_v55, %v4850_v55 }
 0x330   : > { %v4848_v18 = vmax.f32 %v4819_v63, 0.0 }
 0x331   : > { %v4899_v47 = vor.u32 %v4897_v16, %v4896_v34  ;;  %v4882_v26 = vrot.slane %v4880_v4, 7  ;;  %v4901_v40 = vshrl.u32 %v5748_v52, 16  ;;  %v4904_v5 = vshll.u32 %v5748_v52, 16 }
 0x332   : > { %v5746_v39 = vpack.c.bf16 %v4848_v18, %v4848_v18 }
 0x333   : > { %v4945_v21 = vsel %vm5983_vm13, 0, %v4899_v47  ;;  %v4885_v29 = vor.u32 %v4883_v31, %v4882_v26  ;;  %v4903_v13 = vrot.slane %v4901_v40, 7 }
 0x334   : > { %v7759_v2 = vsel %vm7751_vm12, %v4945_v21, 0  ;;  %v4887_v7 = vshrl.u32 %v5746_v39, 16  ;;  %v4890_v12 = vshll.u32 %v5746_v39, 16  ;;  %v5840_v39 = vld [vmem:[%s8083_s2 + $0x20] ss:$0 sps:$4 sm:$0xff]  }
 0x335   : > { %5124 = vrot.lane.b32.xlu0 %v7759_v2, %s5860_s8  ;;  %5070 = vrot.lane.b32.xlu1 %v7759_v2, %s5862_s10  ;;  %v4943_v61 = vsel %vm5983_vm13, 0, %v4885_v29  ;;  %v5044_v48 = vrot.slane %v7759_v2, 1  ;;  %v4906_v15 = vor.u32 %v4904_v5, %v4903_v13  ;;  %v4986_v50 = vshll.u32 %v7759_v2, 16 }
 0x336   : > { %v7770_v32 = vsel %vm7751_vm12, %v4943_v61, 0  ;;  %v4889_v10 = vrot.slane %v4887_v7, 7  ;;  %v4984_v57 = vshrl.u32 %v7759_v2, 16  ;;  %v5372_v7 = vsel %vm5370_vm1, %v5840_v39, 0  ;;  %5812 = vmatprep.subr.msk.bf16.mxu1 %vm5370_vm1, %v5840_v39 }
 0x337   : > { %v5042_v38 = vrot.slane %v7770_v32, 1  ;;  %v4946_v44 = vsel %vm5983_vm13, 0, %v4906_v15  ;;  %v4988_v54 = vrot.slane %v4986_v50, 1  ;;  %v4972_v33 = vshll.u32 %v7770_v32, 16  ;;  %5795 = vmatpush3.bf16.msra.mxu1 %v5372_v7  ;;  %v5841_v50 = vld [vmem:[%s8083_s2 + $0x18] sm:$0xff]  }
 0x338   : > { %v7785_v22 = vsel %vm7751_vm12, %v4946_v44, 0  ;;  %v4892_v27 = vor.u32 %v4890_v12, %v4889_v10  ;;  %v5792_v35 = vpop.f32.mrf.mxu0  ;;  %v4970_v1 = vshrl.u32 %v7770_v32, 16  ;;  %5796 = vmatprep.subr.bf16.mxu1 %v5841_v50 }
 0x339   : > { %5055 = vrot.lane.b32.xlu0 %v5044_v48, %s5859_s5  ;;  %5066 = vrot.lane.b32.xlu1 %v7770_v32, %s5862_s10  ;;  %v4989_v56 = vor.u32 %v4988_v54, %v4984_v57  ;;  %v4853_v30 = vmax.f32 %v5792_v35, 0.0  ;;  %v5045_v45 = vrot.slane %v7785_v22, 1  ;;  %v4974_v37 = vrot.slane %v4972_v33, 1 }
 0x33a   : > { %v4944_v8 = vsel %vm5983_vm13, 0, %v4892_v27  ;;  %v4832_v58 = vpop.f32.mrf.mxu0  ;;  %v4993_v9 = vshll.u32 %v7785_v22, 16  ;;  %v4991_v14 = vshrl.u32 %v7785_v22, 16  ;;  %v5842_v27 = vld [vmem:[%s8083_s2 + $0x10] sm:$0xff]  }
 0x33b   : > { %v7798_v41 = vsel %vm7751_vm12, %v4944_v8, 0  ;;  %v5751_v42 = vpack.c.bf16 %v4853_v30, %v4853_v30  ;;  %v4851_v0 = vmax.f32 %v4832_v58, 0.0  ;;  %v4975_v23 = vor.u32 %v4974_v37, %v4970_v1  ;;  %5797 = vmatpush3.bf16.msra.mxu1 %v5841_v50  ;;  %v5843_v30 = vld [vmem:[%s8083_s2 + $0x8] sm:$0xff]   ;;  %v5844_v58 = vld [vmem:[%s8083_s2] sm:$0xff]  }
 0x33c   : > { %v5043_v59 = vrot.slane %v7798_v41, 1  ;;  %v4995_v24 = vrot.slane %v4993_v9, 1  ;;  %v5793_v28 = vpop.f32.mrf.mxu0  ;;  %v4979_v16 = vshll.u32 %v7798_v41, 16  ;;  %v4977_v29 = vshrl.u32 %v7798_v41, 16  ;;  %5798 = vmatprep.subr.bf16.mxu1 %v5842_v27 }
 0x33d   : > { %5156 = vrot.lane.b32.xlu0 %v5044_v48, %s5863_s11  ;;  %5110 = vrot.lane.b32.xlu1 %v5044_v48, %s5864_s12  ;;  %v4922_v17 = vshrl.u32 %v5751_v42, 16  ;;  %v5749_v46 = vpack.c.bf16 %v4851_v0, %v4851_v0  ;;  %v4925_v25 = vshll.u32 %v5751_v42, 16  ;;  %v4854_v34 = vmax.f32 %v5793_v28, 0.0 }
 0x33e   : > { %v4996_v36 = vor.u32 %v4995_v24, %v4991_v14  ;;  %v4835_v26 = vpop.f32.mrf.mxu0  ;;  %v4981_v52 = vrot.slane %v4979_v16, 1 }
 0x33f   : > { %v4924_v19 = vrot.slane %v4922_v17, 7  ;;  %v4908_v62 = vshrl.u32 %v5749_v46, 16  ;;  %v4911_v49 = vshll.u32 %v5749_v46, 16  ;;  %v5752_v47 = vpack.c.bf16 %v4854_v34, %v4854_v34  ;;  %5799 = vmatpush3.bf16.msra.mxu1 %v5842_v27 }
 0x340   : > { %v4852_v21 = vmax.f32 %v4835_v26, 0.0  ;;  %v4982_v40 = vor.u32 %v4981_v52, %v4977_v29  ;;  %5800 = vmatprep.subr.bf16.mxu1 %v5843_v30 }
 0x341   : > { %5106 = vrot.lane.b32.xlu1 %v5042_v38, %s5864_s12  ;;  %5051 = vrot.lane.b32.xlu0 %v5042_v38, %s5859_s5  ;;  %v4927_v3 = vor.u32 %v4925_v25, %v4924_v19  ;;  %v4910_v6 = vrot.slane %v4908_v62, 7  ;;  %v4929_v63 = vshrl.u32 %v5752_v47, 16  ;;  %v4932_v48 = vshll.u32 %v5752_v47, 16  ;;  %v5019_v62 = vpop.permute.xlu1 %5018 }
 0x342   : > { %v5750_v61 = vpack.c.bf16 %v4852_v21, %v4852_v21  ;;  %v5171_v14 = vsel %vm4518_vm15, 0, %v5019_v62 }
 0x343   : > { %v4949_v60 = vsel %vm5983_vm13, 0, %v4927_v3  ;;  %v4913_v53 = vor.u32 %v4911_v49, %v4910_v6  ;;  %v4931_v18 = vrot.slane %v4929_v63, 7  ;;  %5801 = vmatpush3.bf16.msra.mxu1 %v5843_v30 }
 0x344   : > { %v7821_v51 = vsel %vm7751_vm12, %v4949_v60, 0  ;;  %v4915_v15 = vshrl.u32 %v5750_v61, 16  ;;  %v4918_v12 = vshll.u32 %v5750_v61, 16  ;;  %5802 = vmatprep.subr.bf16.mxu1 %v5844_v58 }
 0x345   : > { %5126 = vrot.lane.b32.xlu1 %v7785_v22, %s5860_s8  ;;  %5072 = vrot.lane.b32.xlu0 %v7785_v22, %s5862_s10  ;;  %v4947_v55 = vsel %vm5983_vm13, 0, %v4913_v53  ;;  %v7841_v31 = vrot.slane %v7821_v51, 1  ;;  %v4934_v5 = vor.u32 %v4932_v48, %v4931_v18  ;;  %v5014_v38 = vshll.u32 %v7821_v51, 16  ;;  %v5050_v49 = vpop.permute.xlu1 %5049 }
 0x346   : > { %v7835_v4 = vsel %vm7751_vm12, %v4947_v55, 0  ;;  %v4917_v44 = vrot.slane %v4915_v15, 7  ;;  %v5187_v28 = vsel %vm4666_vm2, %v5171_v14, %v5050_v49 }
 0x347   : > { %v5046_v13 = vrot.slane %v7835_v4, 1  ;;  %v4950_v10 = vsel %vm5983_vm13, 0, %v4934_v5  ;;  %v5016_v54 = vrot.slane %v5014_v38, 1  ;;  %v5000_v33 = vshll.u32 %v7835_v4, 16  ;;  %5803 = vmatpush3.bf16.msra.mxu1 %v5844_v58 }
 0x348   : > { %v4961_v57 = vsel %vm7751_vm12, %v4950_v10, 0  ;;  %v4920_v35 = vor.u32 %v4918_v12, %v4917_v44  ;;  %v4998_v43 = vshrl.u32 %v7835_v4, 16 }
 0x349   : > { %5093 = vrot.lane.b32.xlu1 %v4989_v56, %s5858_s24  ;;  %5024 = vrot.lane.b32.xlu0 %v4989_v56, %s5856_s22  ;;  %v5105_v11 = vrot.slane %v4961_v57, 1  ;;  %v5002_v17 = vrot.slane %v5000_v33, 1  ;;  %v5085_v19 = vshll.u32 %v4961_v57, 16  ;;  %v5083_v25 = vshrl.u32 %v4961_v57, 16 }
 0x34a   : > { %v4948_v42 = vsel %vm5983_vm13, 0, %v4920_v35  ;;  %vm5202_vm13 = vcmask 195584  }
 0x34b   : > { %v5003_v0 = vor.u32 %v5002_v17, %v4998_v43  ;;  %v5087_v46 = vrot.slane %v5085_v19, 1 }
 0x34d   : > { %5122 = vrot.lane.b32.xlu1 %v7798_v41, %s5860_s8  ;;  %5068 = vrot.lane.b32.xlu0 %v7798_v41, %s5862_s10 }
 0x351   : > { %5158 = vrot.lane.b32.xlu1 %v5045_v45, %s5863_s11  ;;  %5112 = vrot.lane.b32.xlu0 %v5045_v45, %s5864_s12 }
 0x355   : > { %5057 = vrot.lane.b32.xlu1 %v5045_v45, %s5859_s5  ;;  %5140 = vrot.lane.b32.xlu0 %v4989_v56, %s5861_s9  ;;  %v5012_v56 = vshrl.u32 %v7821_v51, 16  ;;  %v7885_v45 = vsel %vm7751_vm12, %v4948_v42, 0 }
 0x356   : > { %v5047_v37 = vrot.slane %v7885_v45, 1  ;;  %v5007_v1 = vshll.u32 %v7885_v45, 16  ;;  %v5005_v9 = vshrl.u32 %v7885_v45, 16 }
 0x357   : > { %v5017_v8 = vor.u32 %v5016_v54, %v5012_v56 }
 0x358   : > { %v5009_v3 = vrot.slane %v5007_v1, 1 }
 0x359   : > { %5020 = vrot.lane.b32.xlu0 %v4975_v23, %s5856_s22  ;;  %5053 = vrot.lane.b32.xlu1 %v5043_v59, %s5859_s5 }
 0x35a   : > { %v5010_v60 = vor.u32 %v5009_v3, %v5005_v9 }
 0x35d   : > { %5108 = vrot.lane.b32.xlu0 %v5043_v59, %s5864_s12  ;;  %5089 = vrot.lane.b32.xlu1 %v4975_v23, %s5858_s24  ;;  %v5088_v23 = vor.u32 %v5087_v46, %v5083_v25 }
 0x361   : > { %5154 = vrot.lane.b32.xlu1 %v5043_v59, %s5863_s11  ;;  %5132 = vrot.lane.b32.xlu0 %v7821_v51, %s5860_s8  ;;  %v7905_v59 = vpop.permute.xlu0 %5136 }
 0x365   : > { %5095 = vrot.lane.b32.xlu0 %v4996_v36, %s5858_s24  ;;  %5078 = vrot.lane.b32.xlu1 %v7821_v51, %s5862_s10  ;;  %v7912_v6 = vpop.permute.xlu0 %5152 }
 0x369   : > { %5142 = vrot.lane.b32.xlu1 %v4996_v36, %s5861_s9  ;;  %5128 = vrot.lane.b32.xlu0 %v7835_v4, %s5860_s8 }
 0x36d   : > { %5026 = vrot.lane.b32.xlu1 %v4996_v36, %s5856_s22  ;;  %5063 = vrot.lane.b32.xlu0 %v7841_v31, %s5859_s5 }
 0x371   : > { %5074 = vrot.lane.b32.xlu1 %v7835_v4, %s5862_s10  ;;  %5091 = vrot.lane.b32.xlu0 %v4982_v40, %s5858_s24 }
 0x375   : > { %5118 = vrot.lane.b32.xlu1 %v7841_v31, %s5864_s12  ;;  %5160 = vrot.lane.b32.xlu0 %v5046_v13, %s5863_s11 }
 0x379   : > { %5022 = vrot.lane.b32.xlu1 %v4982_v40, %s5856_s22  ;;  %5059 = vrot.lane.b32.xlu0 %v5046_v13, %s5859_s5 }
 0x37d   : > { %5138 = vrot.lane.b32.xlu1 %v4982_v40, %s5861_s9  ;;  %5080 = vrot.lane.b32.xlu0 %v4961_v57, %s5862_s10 }
 0x381   : > { %5114 = vrot.lane.b32.xlu1 %v5046_v13, %s5864_s12  ;;  %5032 = vrot.lane.b32.xlu0 %v5017_v8, %s5856_s22 }
 0x385   : > { %5134 = vrot.lane.b32.xlu1 %v4961_v57, %s5860_s8  ;;  %5076 = vrot.lane.b32.xlu0 %v7885_v45, %s5862_s10 }
 0x389   : > { %5101 = vrot.lane.b32.xlu1 %v5017_v8, %s5858_s24  ;;  %5120 = vrot.lane.b32.xlu0 %v5105_v11, %s5864_s12 }
 0x38d   : > { %5130 = vrot.lane.b32.xlu1 %v7885_v45, %s5860_s8  ;;  %5148 = vrot.lane.b32.xlu0 %v5017_v8, %s5861_s9 }
 0x391   : > { %5144 = vrot.lane.b32.xlu0 %v5003_v0, %s5861_s9  ;;  %5061 = vrot.lane.b32.xlu1 %v5047_v37, %s5859_s5  ;;  %s5867_s5 = smov 116  }
 0x395   : > { %5028 = vrot.lane.b32.xlu0 %v5003_v0, %s5856_s22  ;;  %5097 = vrot.lane.b32.xlu1 %v5003_v0, %s5858_s24 }
 0x399   : > { %5116 = vrot.lane.b32.xlu0 %v5047_v37, %s5864_s12  ;;  %5162 = vrot.lane.b32.xlu1 %v5047_v37, %s5863_s11 }
 0x39d   : > { %5103 = vrot.lane.b32.xlu0 %v5088_v23, %s5858_s24  ;;  %5150 = vrot.lane.b32.xlu1 %v5088_v23, %s5861_s9 }
 0x3a1   : > { %5099 = vrot.lane.b32.xlu0 %v5010_v60, %s5858_s24  ;;  %5030 = vrot.lane.b32.xlu1 %v5010_v60, %s5856_s22  ;;  %s5744_s22 = sshll.u32 %s8364_s16, 6 }
 0x3a2   : > { %s8013_s28 = scalar_lea.vmem %s8084_s3, %s5744_s22 }
 0x3a5   : > { %5164 = vrot.lane.b32.xlu0 %v7841_v31, %s5863_s11  ;;  %5146 = vrot.lane.b32.xlu1 %v5010_v60, %s5861_s9  ;;  %s208_s9 = scalar_lea.vmem %s8085_s4, %s5691_s6 }
 0x3a7   : > { %v5071_v24 = vpop.permute.xlu1 %5070  ;;  %v5125_v53 = vpop.permute.xlu0 %5124 }
 0x3a9   : > { %5168 = vrot.lane.b32.xlu0 %v7743_v20, %s5863_s11  ;;  %5166 = vrot.lane.b32.xlu1 %v5105_v11, %s5863_s11 }
 0x3ab   : > { %v5067_v36 = vpop.permute.xlu1 %5066  ;;  %v5056_v55 = vpop.permute.xlu0 %5055 }
 0x3ac   : > { %v5204_v34 = vsel %vm5202_vm13, %v5187_v28, %v5067_v36 }
 0x3af   : > { %v5111_v16 = vpop.permute.xlu1 %5110  ;;  %v5157_v47 = vpop.permute.xlu0 %5156 }
 0x3b3   : > { %v5107_v26 = vpop.permute.xlu1 %5106  ;;  %v5052_v31 = vpop.permute.xlu0 %5051 }
 0x3b7   : > { %v5127_v52 = vpop.permute.xlu1 %5126  ;;  %v5073_v63 = vpop.permute.xlu0 %5072 }
 0x3bb   : > { %v5094_v21 = vpop.permute.xlu1 %5093  ;;  %v5025_v29 = vpop.permute.xlu0 %5024 }
 0x3bc   : > { %v5177_v20 = vsel %vm4518_vm15, %v7759_v2, %v5025_v29 }
 0x3bd   : > { %v5193_v40 = vsel %vm4666_vm2, %v5177_v20, %v5056_v55 }
 0x3be   : > { %v5210_v18 = vsel %vm5202_vm13, %v5193_v40, %v5073_v63 }
 0x3bf   : > { %v5123_v61 = vpop.permute.xlu1 %5122  ;;  %v5069_v48 = vpop.permute.xlu0 %5068 }
 0x3c3   : > { %v5159_v13 = vpop.permute.xlu1 %5158  ;;  %v5113_v39 = vpop.permute.xlu0 %5112 }
 0x3c7   : > { %v7927_v5 = vpop.permute.xlu1 %5057  ;;  %v5141_v15 = vpop.permute.xlu0 %5140 }
 0x3cb   : > { %v5054_v7 = vpop.permute.xlu1 %5053  ;;  %v5021_v38 = vpop.permute.xlu0 %5020 }
 0x3cc   : > { %v5173_v35 = vsel %vm4518_vm15, %v7770_v32, %v5021_v38 }
 0x3cd   : > { %v5189_v30 = vsel %vm4666_vm2, %v5173_v35, %v5052_v31 }
 0x3ce   : > { %v5206_v58 = vsel %vm5202_vm13, %v5189_v30, %v5069_v48 }
 0x3cf   : > { %v5090_v50 = vpop.permute.xlu1 %5089  ;;  %v5109_v44 = vpop.permute.xlu0 %5108 }
 0x3d0   : > { %v5220_v46 = vsel %vm4683_vm4, %v5204_v34, %v5090_v50 }
 0x3d1   : > { %v5237_v23 = vsel %vm5235_vm3, %v5220_v46, %v5107_v26 }
 0x3d2   : > { %v5253_v49 = vsel %vm4700_vm6, %v5237_v23, %v5123_v61 }
 0x3d3   : > { %v5155_v10 = vpop.permute.xlu1 %5154  ;;  %v7929_v12 = vpop.permute.xlu0 %5132 }
 0x3d7   : > { %v7931_v54 = vpop.permute.xlu1 %5078  ;;  %v5096_v2 = vpop.permute.xlu0 %5095 }
 0x3d8   : > { %v5226_v20 = vsel %vm4683_vm4, %v5210_v18, %v5096_v2 }
 0x3d9   : > { %v5243_v48 = vsel %vm5235_vm3, %v5226_v20, %v5113_v39 }
 0x3db   : > { %v5143_v27 = vpop.permute.xlu1 %5142  ;;  %v5129_v57 = vpop.permute.xlu0 %5128 }
 0x3df   : > { %v5027_v56 = vpop.permute.xlu1 %5026  ;;  %v5064_v8 = vpop.permute.xlu0 %5063 }
 0x3e0   : > { %v5179_v39 = vsel %vm4518_vm15, %v7785_v22, %v5027_v56 }
 0x3e1   : > { %v5195_v30 = vsel %vm4666_vm2, %v5179_v39, %v7927_v5 }
 0x3e3   : > { %v5075_v42 = vpop.permute.xlu1 %5074  ;;  %v5092_v11 = vpop.permute.xlu0 %5091 }
 0x3e4   : > { %v5222_v33 = vsel %vm4683_vm4, %v5206_v58, %v5092_v11 }
 0x3e5   : > { %v5239_v17 = vsel %vm5235_vm3, %v5222_v33, %v5109_v44  ;;  %v5212_v33 = vsel %vm5202_vm13, %v5195_v30, %v5075_v42 }
 0x3e6   : > { %v5255_v43 = vsel %vm4700_vm6, %v5239_v17, %v5125_v53 }
 0x3e7   : > { %v7940_v0 = vpop.permute.xlu1 %5118  ;;  %v5161_v37 = vpop.permute.xlu0 %5160  ;;  %v5272_v32 = vsel %vm5268_vm5, %v5255_v43, %v5141_v15 }
 0x3e8   : > { %v5288_v19 = vsel %vm4769_vm7, %v5272_v32, %v5157_v47 }
 0x3eb   : > { %v5023_v1 = vpop.permute.xlu1 %5022  ;;  %v5060_v25 = vpop.permute.xlu0 %5059 }
 0x3ec   : > { %v5175_v3 = vsel %vm4518_vm15, %v7798_v41, %v5023_v1 }
 0x3ed   : > { %v5191_v62 = vsel %vm4666_vm2, %v5175_v3, %v5054_v7 }
 0x3ee   : > { %v5208_v9 = vsel %vm5202_vm13, %v5191_v62, %v5071_v24 }
 0x3ef   : > { %v5224_v60 = vsel %vm4683_vm4, %v5208_v9, %v5094_v21  ;;  %v5139_v53 = vpop.permute.xlu1 %5138  ;;  %v5081_v14 = vpop.permute.xlu0 %5080 }
 0x3f0   : > { %v5241_v28 = vsel %vm5235_vm3, %v5224_v60, %v5111_v16  ;;  %v5270_v36 = vsel %vm5268_vm5, %v5253_v49, %v5139_v53 }
 0x3f1   : > { %v5286_v55 = vsel %vm4769_vm7, %v5270_v36, %v5155_v10  ;;  %v5257_v34 = vsel %vm4700_vm6, %v5241_v28, %v5127_v52  ;;  %v5259_v52 = vsel %vm4700_vm6, %v5243_v48, %v5129_v57 }
 0x3f2   : > { %v5712_v41 = vcombine.low %v5286_v55, %v5288_v19  ;;  %v5274_v47 = vsel %vm5268_vm5, %v5257_v34, %v5143_v27 }
 0x3f3   : > { %v5115_v26 = vpop.permute.xlu1 %5114  ;;  %v5033_v24 = vpop.permute.xlu0 %5032  ;;  %v5290_v31 = vsel %vm4769_vm7, %v5274_v47, %v5159_v13 }
 0x3f4   : > { %5804 = vmatprep.mubr.msk.bf16.mxu1 %vm5357_vm9, %v5712_v41  ;;  %v5185_v18 = vsel %vm4518_vm15, %v7821_v51, %v5033_v24 }
 0x3f5   : > { %v5201_v35 = vsel %vm4666_vm2, %v5185_v18, %v5064_v8 }
 0x3f6   : > { %v5218_v43 = vsel %vm5202_vm13, %v5201_v35, %v5081_v14 }
 0x3f7   : > { %v5135_v63 = vpop.permute.xlu1 %5134  ;;  %v5077_v21 = vpop.permute.xlu0 %5076 }
 0x3fb   : > { %v5102_v29 = vpop.permute.xlu1 %5101  ;;  %v5121_v16 = vpop.permute.xlu0 %5120 }
 0x3ff   : > { %v5131_v40 = vpop.permute.xlu1 %5130  ;;  %v5149_v61 = vpop.permute.xlu0 %5148 }
 0x403   : > { %v5062_v15 = vpop.permute.xlu1 %5061  ;;  %v5145_v7 = vpop.permute.xlu0 %5144 }
 0x404   : > { %v5276_v38 = vsel %vm5268_vm5, %v5259_v52, %v5145_v7 }
 0x405   : > { %v5292_v13 = vsel %vm4769_vm7, %v5276_v38, %v5161_v37 }
 0x406   : > { %v5713_v50 = vcombine.low %v5290_v31, %v5292_v13 }
 0x407   : > { %v5098_v44 = vpop.permute.xlu1 %5097  ;;  %v5029_v10 = vpop.permute.xlu0 %5028 }
 0x408   : > { %5805 = vmatmul.mubr.msk.bf16.vlgmr.msra.gmra.mxu1 %vm5357_vm9, %v5713_v50  ;;  %v5181_v57 = vsel %vm4518_vm15, %v7835_v4, %v5029_v10  ;;  %v5228_v51 = vsel %vm4683_vm4, %v5212_v33, %v5098_v44 }
 0x409   : > { %v5197_v17 = vsel %vm4666_vm2, %v5181_v57, %v5060_v25  ;;  %v5245_v8 = vsel %vm5235_vm3, %v5228_v51, %v5115_v26 }
 0x40a   : > { %v5214_v4 = vsel %vm5202_vm13, %v5197_v17, %v5077_v21  ;;  %v5261_v3 = vsel %vm4700_vm6, %v5245_v8, %v5131_v40 }
 0x40b   : > { %v5163_v2 = vpop.permute.xlu1 %5162  ;;  %v5117_v27 = vpop.permute.xlu0 %5116 }
 0x40f   : > { %v5151_v58 = vpop.permute.xlu1 %5150  ;;  %v5104_v11 = vpop.permute.xlu0 %5103 }
 0x410   : > { %v5234_v22 = vsel %vm4683_vm4, %v5218_v43, %v5104_v11 }
 0x411   : > { %v5251_v42 = vsel %vm5235_vm3, %v5234_v22, %v5121_v16 }
 0x413   : > { %v5031_v56 = vpop.permute.xlu1 %5030  ;;  %v5100_v37 = vpop.permute.xlu0 %5099 }
 0x414   : > { %v5183_v5 = vsel %vm4518_vm15, %v7885_v45, %v5031_v56  ;;  %v5230_v32 = vsel %vm4683_vm4, %v5214_v4, %v5100_v37  ;;  %vm5520_vm15 = vcmask 25600  }
 0x415   : > { %v5199_v19 = vsel %vm4666_vm2, %v5183_v5, %v5062_v15  ;;  %v5247_v46 = vsel %vm5235_vm3, %v5230_v32, %v5117_v27 }
 0x416   : > { %v5216_v1 = vsel %vm5202_vm13, %v5199_v19, %v7931_v54  ;;  %v5263_v25 = vsel %vm4700_vm6, %v5247_v46, %v7929_v12  ;;  %v5267_v54 = vsel %vm4700_vm6, %v5251_v42, %v7905_v59 }
 0x417   : > { %v5232_v23 = vsel %vm4683_vm4, %v5216_v1, %v5102_v29  ;;  %v5147_v62 = vpop.permute.xlu1 %5146  ;;  %v5280_v45 = vsel %vm5268_vm5, %v5263_v25, %v5149_v61  ;;  %v5165_v9 = vpop.permute.xlu0 %5164  ;;  %v5284_v34 = vsel %vm5268_vm5, %v5267_v54, %v7912_v6 }
 0x418   : > { %v5278_v60 = vsel %vm5268_vm5, %v5261_v3, %v5147_v62  ;;  %v5296_v49 = vsel %vm4769_vm7, %v5280_v45, %v5165_v9  ;;  %v5249_v53 = vsel %vm5235_vm3, %v5232_v23, %v7940_v0 }
 0x419   : > { %v5294_v12 = vsel %vm4769_vm7, %v5278_v60, %v5163_v2  ;;  %v5265_v14 = vsel %vm4700_vm6, %v5249_v53, %v5135_v63 }
 0x41a   : > { %v5714_v28 = vcombine.low %v5294_v12, %v5296_v49  ;;  %v5282_v36 = vsel %vm5268_vm5, %v5265_v14, %v5151_v58 }
 0x41b   : > { %v5167_v55 = vpop.permute.xlu1 %5166  ;;  %v5169_v41 = vpop.permute.xlu0 %5168 }
 0x41c   : > { %v5298_v47 = vsel %vm4769_vm7, %v5282_v36, %v5167_v55  ;;  %v5300_v26 = vsel %vm4769_vm7, %v5284_v34, %v5169_v41  ;;  %5808 = vmatprep.mubr.msk.bf16.mxu1 %vm5357_vm9, %v5714_v28 }
 0x41d   : > { %v5715_v0 = vcombine.low %v5298_v47, %v5300_v26 }
 0x41f   : > { %5809 = vmatmul.mubr.msk.bf16.gmra.mxu1 %vm5357_vm9, %v5715_v0 }
 0x4c8   : > { %v5806_v59 = vpop.f32.mrf.mxu1 }
 0x4c9   : > { %v5524_v6 = vpack.c.bf16 %v5806_v59, %v5806_v59  ;;  %v5462_v7 = vmul.f32 %v5806_v59, %v5806_v59  ;;  %v5442_v50 = vsel %vm4666_vm2, %v5806_v59, 0.0 }
 0x4ca   : > { %v5408_v24 = vpop.f32.mrf.mxu1 }
 0x4cb   : > { %5533 = vst.msk [vmem:[%s8013_s28 + $0x10] sm:$0xf] %vm5530_vm14, %v5524_v6  ;;  %v5522_v31 = vpack.c.bf16 %v5408_v24, %v5408_v24  ;;  %5567 = vrot.lane.b32.xlu1 %v5524_v6, %s5865_s29  ;;  %v5460_v40 = vmul.f32 %v5408_v24, %v5408_v24  ;;  %v5439_v48 = vsel %vm4666_vm2, %v5408_v24, 0.0  ;;  %v5471_v18 = vsel %vm4666_vm2, %v5462_v7, 0.0 }
 0x4cc   : > { %v5807_v63 = vpop.f32.mrf.mxu1 }
 0x4cd   : > { %5531 = vst.msk [vmem:[%s8013_s28] sm:$0xf] %vm5530_vm14, %v5522_v31  ;;  %v5525_v21 = vpack.c.bf16 %v5807_v63, %v5807_v63  ;;  %v5468_v38 = vsel %vm4666_vm2, %v5460_v40, 0.0  ;;  %v5463_v2 = vmul.f32 %v5807_v63, %v5807_v63  ;;  %v5444_v35 = vsel %vm4666_vm2, %v5807_v63, 0.0 }
 0x4ce   : > { %v5411_v29 = vpop.f32.mrf.mxu1 }
 0x4cf   : > { %5534 = vst.msk [vmem:[%s8013_s28 + $0x18] sm:$0xf] %vm5530_vm14, %v5525_v21  ;;  %v5523_v16 = vpack.c.bf16 %v5411_v29, %v5411_v29  ;;  %5563 = vrot.lane.b32.xlu1 %v5522_v31, %s5865_s29  ;;  %5569 = vrot.lane.b32.xlu0 %v5525_v21, %s5865_s29  ;;  %v5461_v20 = vmul.f32 %v5411_v29, %v5411_v29  ;;  %v5440_v61 = vsel %vm4666_vm2, %v5411_v29, 0.0  ;;  %v5473_v51 = vsel %vm4666_vm2, %v5463_v2, 0.0 }
 0x4d0   : > { %v5441_v15 = vadd.f32 %v5440_v61, %v5439_v48 }
 0x4d1   : > { %5532 = vst.msk [vmem:[%s8013_s28 + $0x8] sm:$0xf] %vm5530_vm14, %v5523_v16  ;;  %v5469_v52 = vsel %vm4666_vm2, %v5461_v20, 0.0 }
 0x4d2   : > { %v5470_v13 = vadd.f32 %v5469_v52, %v5468_v38  ;;  %v5443_v44 = vadd.f32 %v5442_v50, %v5441_v15 }
 0x4d3   : > { %5565 = vrot.lane.b32.xlu0 %v5523_v16, %s5865_s29 }
 0x4d4   : > { %v5472_v39 = vadd.f32 %v5471_v18, %v5470_v13  ;;  %v5445_v33 = vadd.f32 %v5444_v35, %v5443_v44 }
 0x4d6   : > { %v5474_v4 = vadd.f32 %v5473_v51, %v5472_v39 }
 0x4df   : > { %v5810_v10 = vpop.f32.mrf.mxu1 }
 0x4e0   : > { %v5528_v27 = vpack.c.bf16 %v5810_v10, %v5810_v10  ;;  %v5466_v8 = vmul.f32 %v5810_v10, %v5810_v10  ;;  %v5450_v1 = vsel %vm4666_vm2, %v5810_v10, 0.0 }
 0x4e1   : > { %v5424_v57 = vpop.f32.mrf.mxu1 }
 0x4e2   : > { %5537 = vst.msk [vmem:[%s8013_s28 + $0x30] sm:$0xf] %vm5530_vm14, %v5528_v27  ;;  %v5446_v30 = vsel %vm4666_vm2, %v5424_v57, 0.0  ;;  %v5464_v58 = vmul.f32 %v5424_v57, %v5424_v57  ;;  %v5526_v11 = vpack.c.bf16 %v5424_v57, %v5424_v57  ;;  %v5479_v45 = vsel %vm4666_vm2, %v5466_v8, 0.0 }
 0x4e3   : > { %v5811_v17 = vpop.f32.mrf.mxu1  ;;  %v5447_v56 = vadd.f32 %v5446_v30, %v5445_v33 }
 0x4e4   : > { %v5475_v43 = vsel %vm4666_vm2, %v5464_v58, 0.0  ;;  %5535 = vst.msk [vmem:[%s8013_s28 + $0x20] sm:$0xf] %vm5530_vm14, %v5526_v11  ;;  %v5529_v22 = vpack.c.bf16 %v5811_v17, %v5811_v17  ;;  %v5467_v25 = vmul.f32 %v5811_v17, %v5811_v17  ;;  %v5452_v9 = vsel %vm4666_vm2, %v5811_v17, 0.0 }
 0x4e5   : > { %v5427_v37 = vpop.f32.mrf.mxu1  ;;  %v5476_v19 = vadd.f32 %v5475_v43, %v5474_v4 }
 0x4e6   : > { %5538 = vst.msk [vmem:[%s8013_s28 + $0x38] sm:$0xf] %vm5530_vm14, %v5529_v22  ;;  %v5448_v5 = vsel %vm4666_vm2, %v5427_v37, 0.0  ;;  %v5465_v32 = vmul.f32 %v5427_v37, %v5427_v37  ;;  %v5527_v42 = vpack.c.bf16 %v5427_v37, %v5427_v37  ;;  %v5481_v53 = vsel %vm4666_vm2, %v5467_v25, 0.0 }
 0x4e7   : > { %v5449_v46 = vadd.f32 %v5448_v5, %v5447_v56 }
 0x4e8   : > { %v5477_v23 = vsel %vm4666_vm2, %v5465_v32, 0.0  ;;  %5536 = vst.msk [vmem:[%s8013_s28 + $0x28] sm:$0xf] %vm5530_vm14, %v5527_v42 }
 0x4e9   : > { %v5451_v3 = vadd.f32 %v5450_v1, %v5449_v46  ;;  %v5478_v62 = vadd.f32 %v5477_v23, %v5476_v19 }
 0x4eb   : > { %v5453_v60 = vadd.f32 %v5452_v9, %v5451_v3  ;;  %v5480_v49 = vadd.f32 %v5479_v45, %v5478_v62 }
 0x4ed   : > { %v5454_v54 = vrot.slane %v5453_v60, 4  ;;  %v5482_v12 = vadd.f32 %v5481_v53, %v5480_v49 }
 0x4ef   : > { %v5455_v14 = vadd.f32 %v5454_v54, %v5453_v60  ;;  %v5483_v28 = vrot.slane %v5482_v12, 4 }
 0x4f1   : > { %v5456_v36 = vrot.slane %v5455_v14, 2  ;;  %v5484_v55 = vadd.f32 %v5483_v28, %v5482_v12 }
 0x4f3   : > { %v5457_v34 = vadd.f32 %v5456_v36, %v5455_v14  ;;  %v5485_v41 = vrot.slane %v5484_v55, 2 }
 0x4f5   : > { %v5458_v47 = vrot.slane %v5457_v34, 1  ;;  %v5486_v26 = vadd.f32 %v5485_v41, %v5484_v55 }
 0x4f7   : > { %v5459_v0 = vadd.f32 %v5458_v47, %v5457_v34  ;;  %v5487_v59 = vrot.slane %v5486_v26, 1 }
 0x4f9   : > { %5490 = vrot.lane.b32.xlu0 %v5459_v0, %s5866_s30  ;;  %v5488_v6 = vadd.f32 %v5487_v59, %v5486_v26 }
 0x4fb   : > { %5503 = vrot.lane.b32.xlu1 %v5488_v6, %s5866_s30 }
 0x4fd   : > { %5494 = vrot.lane.b32.xlu0 %v5459_v0, %s5865_s29 }
 0x4ff   : > { %5507 = vrot.lane.b32.xlu1 %v5488_v6, %s5865_s29 }
 0x501   : > { %5498 = vrot.lane.b32.xlu0 %v5459_v0, %s5867_s5 }
 0x503   : > { %5511 = vrot.lane.b32.xlu1 %v5488_v6, %s5867_s5 }
 0x505   : > { %5573 = vrot.lane.b32.xlu0 %v5527_v42, %s5865_s29 }
 0x507   : > { %5571 = vrot.lane.b32.xlu1 %v5526_v11, %s5865_s29 }
 0x509   : > { %5577 = vrot.lane.b32.xlu0 %v5529_v22, %s5865_s29 }
 0x50b   : > { %5575 = vrot.lane.b32.xlu1 %v5528_v27, %s5865_s29 }
 0x53d   : > { %v5568_v24 = vpop.permute.xlu1 %5567 }
 0x53e   : > { %5735 = vst.msk [vmem:[%s8013_s28 + $0x14] sm:$0xf] %vm5530_vm14, %v5568_v24 }
 0x541   : > { %v5564_v31 = vpop.permute.xlu1 %5563  ;;  %v5570_v63 = vpop.permute.xlu0 %5569 }
 0x542   : > { %5733 = vst.msk [vmem:[%s8013_s28 + $0x4] sm:$0xf] %vm5530_vm14, %v5564_v31  ;;  %5736 = vst.msk [vmem:[%s8013_s28 + $0x1c] sm:$0xf] %vm5530_vm14, %v5570_v63 }
 0x545   : > { %v5566_v21 = vpop.permute.xlu0 %5565 }
 0x546   : > { %5734 = vst.msk [vmem:[%s8013_s28 + $0xc] sm:$0xf] %vm5530_vm14, %v5566_v21 }
 0x56b   : > { %v5491_v29 = vpop.permute.xlu0 %5490 }
 0x56c   : > { %v5493_v52 = vadd.f32 %v5491_v29, %v5459_v0 }
 0x56d   : > { %v5504_v16 = vpop.permute.xlu1 %5503 }
 0x56e   : > { %v5506_v61 = vadd.f32 %v5504_v16, %v5488_v6 }
 0x56f   : > { %v5495_v20 = vpop.permute.xlu0 %5494 }
 0x570   : > { %v5497_v38 = vadd.f32 %v5495_v20, %v5493_v52 }
 0x571   : > { %v5508_v40 = vpop.permute.xlu1 %5507 }
 0x572   : > { %v5510_v15 = vadd.f32 %v5508_v40, %v5506_v61 }
 0x573   : > { %v5499_v48 = vpop.permute.xlu0 %5498 }
 0x574   : > { %v5501_v44 = vadd.f32 %v5499_v48, %v5497_v38 }
 0x575   : > { %v5512_v7 = vpop.permute.xlu1 %5511 }
 0x576   : > { %v5514_v13 = vadd.f32 %v5512_v7, %v5510_v15 }
 0x577   : > { %v5574_v50 = vpop.permute.xlu0 %5573 }
 0x578   : > { %v5516_v10 = vrot.slane %v5514_v13, 7  ;;  %5738 = vst.msk [vmem:[%s8013_s28 + $0x2c] sm:$0xf] %vm5530_vm14, %v5574_v50 }
 0x579   : > { %v5572_v18 = vpop.permute.xlu1 %5571 }
 0x57a   : > { %v5519_v2 = vsel %vm498_vm8, %v5501_v44, %v5516_v10  ;;  %5737 = vst.msk [vmem:[%s8013_s28 + $0x24] sm:$0xf] %vm5530_vm14, %v5572_v18 }
 0x57b   : > { %5521 = vst.msk [vmem:[%s208_s9] sm:$0x3] %vm5520_vm15, %v5519_v2  ;;  %v5578_v27 = vpop.permute.xlu0 %5577 }
 0x57c   : > { %5740 = vst.msk [vmem:[%s8013_s28 + $0x3c] sm:$0xf] %vm5530_vm14, %v5578_v27 }
 0x57d   : > { %v5576_v39 = vpop.permute.xlu1 %5575 }
 0x57e   : > { %5739 = vst.msk [vmem:[%s8013_s28 + $0x34] sm:$0xf] %vm5530_vm14, %v5576_v39 }
 0x57f PF: > { %s15_s15 = sadd.s32 1, %s5851_s15  }
 0x580   : > { %p12_p4 = scmp.ge.s32.totalorder %s15_s15, 4  }
 0x582   :  { %14 = sbr.rel (!%p12_p4) target bundleno = 1 (0x1), region = 75 }

</bundles_post_ra>
